<compile_context>
chip_gen: v6e
topology: v6e:2x2x1
jax: 0.10.0
libtpu: 0.0.40
codegen_flags: <defaults>
</compile_context>

<pallas_src>
import functools

import jax
import jax.numpy as jnp
from jax import lax
from jax.experimental import pallas as pl
from jax.experimental.pallas import tpu as pltpu


def _round_up(v, m):
    return ((v + m - 1) // m) * m


def bottleneck_kernel(x_ref, w1_ref, b1_ref, w2_ref, b2_ref, w3_ref, b3_ref,
                      o_ref, hpad_ref, *, H, W, pad):
    HW = H * W
    Pp = hpad_ref.shape[1]

    x = x_ref[0]                                      # (HW, Cp)   bf16

    # ---- conv1 (1x1, BN1 scale folded into w1) + bias + relu -----------------
    h1 = jnp.dot(x, w1_ref[...], preferred_element_type=jnp.float32)
    h1 = jnp.maximum(h1 + b1_ref[...], 0.0)           # (HW, Pp)   f32

    # ---- conv2 (3x3, stride=1, pad=1) as 9 accumulated dots ------------------
    # h1 is cast to bf16 once and parked in the middle of a row-padded bf16
    # VMEM scratch (pad rows of zeros on both ends cover the +-(W+1) row
    # shifts); each of the 9 taps is a slice of the scratch ref, masked for
    # column wraparound with two hoisted lane-broadcast masks, and streamed
    # straight into the MXU.  Results accumulate into one f32 accumulator
    # (no im2col buffer, no concatenate).
    zeros_band = jnp.zeros((pad, Pp), jnp.bfloat16)
    hpad_ref[pl.ds(0, pad), :] = zeros_band
    hpad_ref[pl.ds(pad + HW, pad), :] = zeros_band
    hpad_ref[pl.ds(pad, HW), :] = h1.astype(jnp.bfloat16)

    col = lax.broadcasted_iota(jnp.int32, (HW, 1), 0) % W
    left_ok = col >= 1             # dx = -1 reads column x-1
    right_ok = col <= W - 2        # dx = +1 reads column x+1

    acc = None
    k = 0
    for dy in (-1, 0, 1):
        for dx in (-1, 0, 1):
            s = dy * W + dx                            # static shift
            t = hpad_ref[pl.ds(pad + s, HW), :]        # (HW, Pp) bf16
            if dx == -1:
                t = jnp.where(left_ok, t, jnp.zeros_like(t))
            elif dx == 1:
                t = jnp.where(right_ok, t, jnp.zeros_like(t))
            d = jnp.dot(t, w2_ref[k], preferred_element_type=jnp.float32)
            acc = d if acc is None else acc + d
            k += 1

    h2 = jnp.maximum(acc + b2_ref[...], 0.0)            # (HW, Pp)   f32

    # ---- conv3 (1x1, BN3 scale folded) + bias --------------------------------
    h3 = jnp.dot(h2.astype(jnp.bfloat16), w3_ref[...],
                 preferred_element_type=jnp.float32)
    h3 = h3 + b3_ref[...]                              # (HW, Cop)  f32

    # ---- residual add + relu (downsample=None => Cin == Cout) ----------------
    out = jnp.maximum(h3 + x.astype(jnp.float32), 0.0)
    o_ref[0] = out.astype(jnp.bfloat16)


def bottleneck_pallas(x_nchw, params, eps=1e-5):
    """Fused Bottleneck forward.  Returns bf16 NCHW (math matches the module)."""
    N, Cin, H, W = x_nchw.shape
    P = params["w2_t"].shape[0]             # planes
    Cout = params["w3_t"].shape[0]          # planes * expansion
    HW = H * W
    assert Cin == Cout, "identity residual requires inplanes == planes*expansion"

    LANE = 128
    Cp = _round_up(Cin, LANE)
    Pp = _round_up(P, LANE)
    Cop = _round_up(Cout, LANE)

    # Fold BatchNorm (running stats) into per-channel scale & bias.
    def fold(gamma, beta, mean, var):
        scale = gamma / jnp.sqrt(var + eps)
        bias = beta - mean * scale
        return scale, bias

    s1, b1 = fold(*params["bn1"])
    s2, b2 = fold(*params["bn2"])
    s3, b3 = fold(*params["bn3"])

    # Conv weights -> matmul layouts, BN scale folded into output columns (f32
    # math, cast to bf16 once at the end).
    w1 = jnp.transpose(params["w1_t"][:, :, 0, 0], (1, 0)) * s1[None, :]     # (Cin, P)
    w2 = (jnp.transpose(params["w2_t"], (2, 3, 1, 0)).reshape(9, P, P)
          * s2[None, None, :])                                               # (k, Pin, Pout)
    w3 = jnp.transpose(params["w3_t"][:, :, 0, 0], (1, 0)) * s3[None, :]     # (P, Cout)

    # Pad channel dims to lane-dense multiples of 128 (zeros keep semantics).
    w1b = jnp.zeros((Cp, Pp), jnp.float32).at[:Cin, :P].set(w1).astype(jnp.bfloat16)
    w2b = jnp.zeros((9, Pp, Pp), jnp.float32).at[:, :P, :P].set(w2).astype(jnp.bfloat16)
    w3b = jnp.zeros((Pp, Cop), jnp.float32).at[:P, :Cout].set(w3).astype(jnp.bfloat16)
    b1p = jnp.zeros((1, Pp), jnp.float32).at[0, :P].set(b1)
    b2p = jnp.zeros((1, Pp), jnp.float32).at[0, :P].set(b2)
    b3p = jnp.zeros((1, Cop), jnp.float32).at[0, :Cout].set(b3)

    # NCHW -> (N, H*W, Cp) in bf16 (cast before pad/transpose so wrapper passes
    # move half the bytes; skip the padded copy when already lane-aligned).
    x_nhwc = jnp.transpose(x_nchw.astype(jnp.bfloat16), (0, 2, 3, 1)).reshape(N, HW, Cin)
    if Cp == Cin:
        xp = x_nhwc
    else:
        xp = jnp.zeros((N, HW, Cp), jnp.bfloat16).at[:, :, :Cin].set(x_nhwc)

    # Row padding for the conv2 scratch: covers |dy*W+dx| <= W+1, keeps the
    # dx=0 taps sublane-pair aligned for bf16 when W is a multiple of 16.
    pad = _round_up(W + 1, 16)

    flops = 2 * N * HW * (Cp * Pp + 9 * Pp * Pp + Pp * Cop)
    weight_bytes = (Cp * Pp + 9 * Pp * Pp + Pp * Cop) * 2 + (2 * Pp + Cop) * 4
    bytes_accessed = N * HW * Cp * 2 + N * HW * Cop * 2 + weight_bytes

    # Right-size the VMEM request: double-buffered x/out blocks + (currently
    # double-buffered) constant operands + scratch + headroom for f32
    # intermediates.  Cap at 48 MiB so v7x (64 MiB physical) keeps prefetch.
    block_bytes = (2 * HW * Cp * 2 + 2 * HW * Cop * 2
                   + 2 * weight_bytes
                   + (HW + 2 * pad) * Pp * 2
                   + 4 * HW * max(Pp, Cop) * 4)
    vmem_limit = min(48 * 1024 * 1024, max(16 * 1024 * 1024, 2 * block_bytes))

    kernel = functools.partial(bottleneck_kernel, H=H, W=W, pad=pad)
    out = pl.pallas_call(
        kernel,
        out_shape=jax.ShapeDtypeStruct((N, HW, Cop), jnp.bfloat16),
        grid=(N,),
        in_specs=[
            pl.BlockSpec((1, HW, Cp), lambda n: (n, 0, 0)),
            pl.BlockSpec((Cp, Pp), lambda n: (0, 0)),
            pl.BlockSpec((1, Pp), lambda n: (0, 0)),
            pl.BlockSpec((9, Pp, Pp), lambda n: (0, 0, 0)),
            pl.BlockSpec((1, Pp), lambda n: (0, 0)),
            pl.BlockSpec((Pp, Cop), lambda n: (0, 0)),
            pl.BlockSpec((1, Cop), lambda n: (0, 0)),
        ],
        out_specs=pl.BlockSpec((1, HW, Cop), lambda n: (n, 0, 0)),
        scratch_shapes=[pltpu.VMEM((HW + 2 * pad, Pp), jnp.bfloat16)],
        compiler_params=pltpu.CompilerParams(
            dimension_semantics=("parallel",),
            vmem_limit_bytes=vmem_limit),
        cost_estimate=pl.CostEstimate(flops=flops, transcendentals=0,
                                      bytes_accessed=bytes_accessed),
    )(xp, w1b, b1p, w2b, b2p, w3b, b3p)

    # Stay in bf16 through the slice / reshape / transpose.
    out = out[:, :, :Cout]
    return jnp.transpose(out.reshape(N, H, W, Cout), (0, 3, 1, 2))


# ------------------------- pure-JAX reference (NCHW, f32) ---------------------
def bottleneck_ref(x, params, eps=1e-5):
    def bn(y, gamma, beta, mean, var):
        sh = (1, -1, 1, 1)
        return ((y - mean.reshape(sh)) / jnp.sqrt(var.reshape(sh) + eps)
                * gamma.reshape(sh) + beta.reshape(sh))

    def conv(y, w, pad):
        return lax.conv_general_dilated(
            y, w, (1, 1), [(pad, pad), (pad, pad)],
            dimension_numbers=("NCHW", "OIHW", "NCHW"))

    out = jax.nn.relu(bn(conv(x, params["w1_t"], 0), *params["bn1"]))
    out = jax.nn.relu(bn(conv(out, params["w2_t"], 1), *params["bn2"]))
    out = bn(conv(out, params["w3_t"], 0), *params["bn3"])
    return jax.nn.relu(out + x)


if __name__ == "__main__":
    key = jax.random.PRNGKey(0)
    ks = jax.random.split(key, 16)

    # Bottleneck(inplanes=16, planes=4), expansion=4 -> out channels = 16
    inplanes, planes, expansion = 16, 4, 4
    cout = planes * expansion
    N, H, W = 2, 16, 16

    def bn_params(k, c):
        k1, k2, k3, k4 = jax.random.split(k, 4)
        gamma = jax.random.uniform(k1, (c,), jnp.float32, 0.5, 1.5)
        beta = 0.1 * jax.random.normal(k2, (c,), jnp.float32)
        mean = 0.1 * jax.random.normal(k3, (c,), jnp.float32)
        var = jax.random.uniform(k4, (c,), jnp.float32, 0.5, 1.5)
        return gamma, beta, mean, var

    params = {
        "w1_t": jax.random.normal(ks[0], (planes, inplanes, 1, 1), jnp.float32)
                / jnp.sqrt(inplanes),
        "w2_t": jax.random.normal(ks[1], (planes, planes, 3, 3), jnp.float32)
                / jnp.sqrt(planes * 9.0),
        "w3_t": jax.random.normal(ks[2], (cout, planes, 1, 1), jnp.float32)
                / jnp.sqrt(planes),
        "bn1": bn_params(ks[3], planes),
        "bn2": bn_params(ks[4], planes),
        "bn3": bn_params(ks[5], cout),
    }

    x = jax.random.normal(ks[10], (N, inplanes, H, W), jnp.float32)

    out = jax.block_until_ready(bottleneck_pallas(x, params))
    ref = jax.block_until_ready(bottleneck_ref(x, params))

    assert out.shape == ref.shape == (N, cout, H, W)
    max_err = float(jnp.max(jnp.abs(out.astype(jnp.float32) - ref)))
    # bf16 operands + bf16 output, f32 accumulation.
    tol = 3e-2 * float(jnp.max(jnp.abs(ref))) + 2e-2
    assert max_err < tol, f"mismatch vs reference: max abs err = {max_err} (tol {tol})"
    print("KERNEL_OK")
</pallas_src>

<mosaic_0001>
module attributes {stable_mosaic.version = 11 : i64} {
  func.func @bottleneck_kernel(%arg0: i32, %arg1: memref<1x256x128xbf16, #tpu.memory_space<vmem>>, %arg2: memref<128x128xbf16, #tpu.memory_space<vmem>>, %arg3: memref<1x128xf32, #tpu.memory_space<vmem>>, %arg4: memref<9x128x128xbf16, #tpu.memory_space<vmem>>, %arg5: memref<1x128xf32, #tpu.memory_space<vmem>>, %arg6: memref<128x128xbf16, #tpu.memory_space<vmem>>, %arg7: memref<1x128xf32, #tpu.memory_space<vmem>>, %arg8: memref<1x256x128xbf16, #tpu.memory_space<vmem>>, %arg9: memref<320x128xbf16, #tpu.memory_space<vmem>>) attributes {dimension_semantics = [#tpu.dimension_semantics<parallel>], iteration_bounds = array<i64: 2>, scalar_prefetch = 0 : i64, scratch_operands = 1 : i64, tpu.core_type = #tpu.core_type<tc>, window_params = [{transform_indices = @transform_0, window_bounds = array<i64: 1, 256, 128>}, {pipeline_mode = #tpu.pipeline_mode<synchronous>, transform_indices = @transform_1, window_bounds = array<i64: 128, 128>}, {pipeline_mode = #tpu.pipeline_mode<synchronous>, transform_indices = @transform_2, window_bounds = array<i64: 1, 128>}, {pipeline_mode = #tpu.pipeline_mode<synchronous>, transform_indices = @transform_3, window_bounds = array<i64: 9, 128, 128>}, {pipeline_mode = #tpu.pipeline_mode<synchronous>, transform_indices = @transform_4, window_bounds = array<i64: 1, 128>}, {pipeline_mode = #tpu.pipeline_mode<synchronous>, transform_indices = @transform_5, window_bounds = array<i64: 128, 128>}, {pipeline_mode = #tpu.pipeline_mode<synchronous>, transform_indices = @transform_6, window_bounds = array<i64: 1, 128>}, {transform_indices = @transform_7, window_bounds = array<i64: 1, 256, 128>}]} {
    %c0 = arith.constant 0 : index
    %c0_0 = arith.constant 0 : index
    %c0_1 = arith.constant 0 : index
    %0 = vector.load %arg1[%c0, %c0_0, %c0_1] : memref<1x256x128xbf16, #tpu.memory_space<vmem>>, vector<1x256x128xbf16>
    %1 = vector.shape_cast %0 : vector<1x256x128xbf16> to vector<256x128xbf16>
    %c0_2 = arith.constant 0 : index
    %c0_3 = arith.constant 0 : index
    %2 = vector.load %arg2[%c0_2, %c0_3] : memref<128x128xbf16, #tpu.memory_space<vmem>>, vector<128x128xbf16>
    %cst = arith.constant dense<0.000000e+00> : vector<256x128xf32>
    %3 = tpu.matmul %1, %2, %cst {dimension_numbers = #tpu.dot_dimension_numbers<[1], [0], [0], [1], [0, 0, 1, 1], [], []>} : vector<256x128xbf16>, vector<128x128xbf16>, vector<256x128xf32> -> vector<256x128xf32>
    %c0_4 = arith.constant 0 : index
    %c0_5 = arith.constant 0 : index
    %4 = vector.load %arg3[%c0_4, %c0_5] : memref<1x128xf32, #tpu.memory_space<vmem>>, vector<1x128xf32>
    %5 = vector.broadcast %4 : vector<1x128xf32> to vector<256x128xf32>
    %6 = arith.addf %3, %5 : vector<256x128xf32>
    %cst_6 = arith.constant 0.000000e+00 : f32
    %7 = vector.broadcast %cst_6 : f32 to vector<256x128xf32>
    %8 = arith.maximumf %6, %7 : vector<256x128xf32>
    %cst_7 = arith.constant 0.000000e+00 : bf16
    %9 = vector.broadcast %cst_7 : bf16 to vector<32x128xbf16>
    %c0_8 = arith.constant 0 : index
    %c0_9 = arith.constant 0 : index
    %10 = vector.load %arg9[%c0_8, %c0_9] : memref<320x128xbf16, #tpu.memory_space<vmem>>, vector<32x128xbf16>
    tpu.vector_store %arg9[%c0_8, %c0_9], %9 {strides = array<i32>} : memref<320x128xbf16, #tpu.memory_space<vmem>>, vector<32x128xbf16>,
    %c288 = arith.constant 288 : index
    %c0_10 = arith.constant 0 : index
    %11 = vector.load %arg9[%c288, %c0_10] : memref<320x128xbf16, #tpu.memory_space<vmem>>, vector<32x128xbf16>
    tpu.vector_store %arg9[%c288, %c0_10], %9 {strides = array<i32>} : memref<320x128xbf16, #tpu.memory_space<vmem>>, vector<32x128xbf16>,
    %12 = arith.truncf %8 : vector<256x128xf32> to vector<256x128xbf16>
    %c32 = arith.constant 32 : index
    %c0_11 = arith.constant 0 : index
    %13 = vector.load %arg9[%c32, %c0_11] : memref<320x128xbf16, #tpu.memory_space<vmem>>, vector<256x128xbf16>
    tpu.vector_store %arg9[%c32, %c0_11], %12 {strides = array<i32>} : memref<320x128xbf16, #tpu.memory_space<vmem>>, vector<256x128xbf16>,
    %14 = tpu.iota {dimensions = array<i32: 0>} : vector<256x1xi32>
    %c16_i32 = arith.constant 16 : i32
    %c0_i32 = arith.constant 0 : i32
    %15 = arith.cmpi eq, %c16_i32, %c0_i32 : i32
    %c1_i32 = arith.constant 1 : i32
    %16 = arith.select %15, %c1_i32, %c16_i32 : i32
    %17 = vector.broadcast %16 : i32 to vector<256x1xi32>
    %18 = arith.remsi %14, %17 : vector<256x1xi32>
    %c0_i32_12 = arith.constant 0 : i32
    %19 = vector.broadcast %c0_i32_12 : i32 to vector<256x1xi32>
    %20 = arith.cmpi ne, %18, %19 : vector<256x1xi32>
    %c0_i32_13 = arith.constant 0 : i32
    %21 = vector.broadcast %c0_i32_13 : i32 to vector<256x1xi32>
    %22 = arith.cmpi slt, %18, %21 : vector<256x1xi32>
    %c0_i32_14 = arith.constant 0 : i32
    %23 = arith.cmpi slt, %16, %c0_i32_14 : i32
    %24 = vector.broadcast %23 : i1 to vector<256x1xi1>
    %25 = vector.broadcast %24 : vector<256x1xi1> to vector<256x1xi1>
    %26 = arith.xori %22, %25 : vector<256x1xi1>
    %27 = arith.andi %26, %20 : vector<256x1xi1>
    %28 = vector.broadcast %16 : i32 to vector<256x1xi32>
    %29 = arith.addi %18, %28 : vector<256x1xi32>
    %30 = arith.select %27, %29, %18 : vector<256x1xi1>, vector<256x1xi32>
    %c1_i32_15 = arith.constant 1 : i32
    %31 = vector.broadcast %c1_i32_15 : i32 to vector<256x1xi32>
    %32 = arith.cmpi sge, %30, %31 : vector<256x1xi32>
    %c14_i32 = arith.constant 14 : i32
    %33 = vector.broadcast %c14_i32 : i32 to vector<256x1xi32>
    %34 = arith.cmpi sle, %30, %33 : vector<256x1xi32>
    %c15 = arith.constant 15 : index
    %c0_16 = arith.constant 0 : index
    %35 = vector.load %arg9[%c15, %c0_16] : memref<320x128xbf16, #tpu.memory_space<vmem>>, vector<256x128xbf16>
    %cst_17 = arith.constant 0.000000e+00 : bf16
    %36 = vector.broadcast %cst_17 : bf16 to vector<256x128xbf16>
    %37 = vector.shape_cast %32 : vector<256x1xi1> to vector<256x1xi1>
    %38 = vector.broadcast %37 : vector<256x1xi1> to vector<256x128xi1>
    %39 = arith.select %38, %35, %36 : vector<256x128xi1>, vector<256x128xbf16>
    %c0_18 = arith.constant 0 : index
    %c0_19 = arith.constant 0 : index
    %c0_20 = arith.constant 0 : index
    %40 = vector.load %arg4[%c0_18, %c0_19, %c0_20] : memref<9x128x128xbf16, #tpu.memory_space<vmem>>, vector<1x128x128xbf16>
    %41 = vector.shape_cast %40 : vector<1x128x128xbf16> to vector<128x128xbf16>
    %cst_21 = arith.constant dense<0.000000e+00> : vector<256x128xf32>
    %42 = tpu.matmul %39, %41, %cst_21 {dimension_numbers = #tpu.dot_dimension_numbers<[1], [0], [0], [1], [0, 0, 1, 1], [], []>} : vector<256x128xbf16>, vector<128x128xbf16>, vector<256x128xf32> -> vector<256x128xf32>
    %c16 = arith.constant 16 : index
    %c0_22 = arith.constant 0 : index
    %43 = vector.load %arg9[%c16, %c0_22] : memref<320x128xbf16, #tpu.memory_space<vmem>>, vector<256x128xbf16>
    %c1 = arith.constant 1 : index
    %c0_23 = arith.constant 0 : index
    %c0_24 = arith.constant 0 : index
    %44 = vector.load %arg4[%c1, %c0_23, %c0_24] : memref<9x128x128xbf16, #tpu.memory_space<vmem>>, vector<1x128x128xbf16>
    %45 = vector.shape_cast %44 : vector<1x128x128xbf16> to vector<128x128xbf16>
    %cst_25 = arith.constant dense<0.000000e+00> : vector<256x128xf32>
    %46 = tpu.matmul %43, %45, %cst_25 {dimension_numbers = #tpu.dot_dimension_numbers<[1], [0], [0], [1], [0, 0, 1, 1], [], []>} : vector<256x128xbf16>, vector<128x128xbf16>, vector<256x128xf32> -> vector<256x128xf32>
    %47 = arith.addf %42, %46 : vector<256x128xf32>
    %c17 = arith.constant 17 : index
    %c0_26 = arith.constant 0 : index
    %48 = vector.load %arg9[%c17, %c0_26] : memref<320x128xbf16, #tpu.memory_space<vmem>>, vector<256x128xbf16>
    %cst_27 = arith.constant 0.000000e+00 : bf16
    %49 = vector.broadcast %cst_27 : bf16 to vector<256x128xbf16>
    %50 = vector.shape_cast %34 : vector<256x1xi1> to vector<256x1xi1>
    %51 = vector.broadcast %50 : vector<256x1xi1> to vector<256x128xi1>
    %52 = arith.select %51, %48, %49 : vector<256x128xi1>, vector<256x128xbf16>
    %c2 = arith.constant 2 : index
    %c0_28 = arith.constant 0 : index
    %c0_29 = arith.constant 0 : index
    %53 = vector.load %arg4[%c2, %c0_28, %c0_29] : memref<9x128x128xbf16, #tpu.memory_space<vmem>>, vector<1x128x128xbf16>
    %54 = vector.shape_cast %53 : vector<1x128x128xbf16> to vector<128x128xbf16>
    %cst_30 = arith.constant dense<0.000000e+00> : vector<256x128xf32>
    %55 = tpu.matmul %52, %54, %cst_30 {dimension_numbers = #tpu.dot_dimension_numbers<[1], [0], [0], [1], [0, 0, 1, 1], [], []>} : vector<256x128xbf16>, vector<128x128xbf16>, vector<256x128xf32> -> vector<256x128xf32>
    %56 = arith.addf %47, %55 : vector<256x128xf32>
    %c31 = arith.constant 31 : index
    %c0_31 = arith.constant 0 : index
    %57 = vector.load %arg9[%c31, %c0_31] : memref<320x128xbf16, #tpu.memory_space<vmem>>, vector<256x128xbf16>
    %cst_32 = arith.constant 0.000000e+00 : bf16
    %58 = vector.broadcast %cst_32 : bf16 to vector<256x128xbf16>
    %59 = vector.shape_cast %32 : vector<256x1xi1> to vector<256x1xi1>
    %60 = vector.broadcast %59 : vector<256x1xi1> to vector<256x128xi1>
    %61 = arith.select %60, %57, %58 : vector<256x128xi1>, vector<256x128xbf16>
    %c3 = arith.constant 3 : index
    %c0_33 = arith.constant 0 : index
    %c0_34 = arith.constant 0 : index
    %62 = vector.load %arg4[%c3, %c0_33, %c0_34] : memref<9x128x128xbf16, #tpu.memory_space<vmem>>, vector<1x128x128xbf16>
    %63 = vector.shape_cast %62 : vector<1x128x128xbf16> to vector<128x128xbf16>
    %cst_35 = arith.constant dense<0.000000e+00> : vector<256x128xf32>
    %64 = tpu.matmul %61, %63, %cst_35 {dimension_numbers = #tpu.dot_dimension_numbers<[1], [0], [0], [1], [0, 0, 1, 1], [], []>} : vector<256x128xbf16>, vector<128x128xbf16>, vector<256x128xf32> -> vector<256x128xf32>
    %65 = arith.addf %56, %64 : vector<256x128xf32>
    %c32_36 = arith.constant 32 : index
    %c0_37 = arith.constant 0 : index
    %66 = vector.load %arg9[%c32_36, %c0_37] : memref<320x128xbf16, #tpu.memory_space<vmem>>, vector<256x128xbf16>
    %c4 = arith.constant 4 : index
    %c0_38 = arith.constant 0 : index
    %c0_39 = arith.constant 0 : index
    %67 = vector.load %arg4[%c4, %c0_38, %c0_39] : memref<9x128x128xbf16, #tpu.memory_space<vmem>>, vector<1x128x128xbf16>
    %68 = vector.shape_cast %67 : vector<1x128x128xbf16> to vector<128x128xbf16>
    %cst_40 = arith.constant dense<0.000000e+00> : vector<256x128xf32>
    %69 = tpu.matmul %66, %68, %cst_40 {dimension_numbers = #tpu.dot_dimension_numbers<[1], [0], [0], [1], [0, 0, 1, 1], [], []>} : vector<256x128xbf16>, vector<128x128xbf16>, vector<256x128xf32> -> vector<256x128xf32>
    %70 = arith.addf %65, %69 : vector<256x128xf32>
    %c33 = arith.constant 33 : index
    %c0_41 = arith.constant 0 : index
    %71 = vector.load %arg9[%c33, %c0_41] : memref<320x128xbf16, #tpu.memory_space<vmem>>, vector<256x128xbf16>
    %cst_42 = arith.constant 0.000000e+00 : bf16
    %72 = vector.broadcast %cst_42 : bf16 to vector<256x128xbf16>
    %73 = vector.shape_cast %34 : vector<256x1xi1> to vector<256x1xi1>
    %74 = vector.broadcast %73 : vector<256x1xi1> to vector<256x128xi1>
    %75 = arith.select %74, %71, %72 : vector<256x128xi1>, vector<256x128xbf16>
    %c5 = arith.constant 5 : index
    %c0_43 = arith.constant 0 : index
    %c0_44 = arith.constant 0 : index
    %76 = vector.load %arg4[%c5, %c0_43, %c0_44] : memref<9x128x128xbf16, #tpu.memory_space<vmem>>, vector<1x128x128xbf16>
    %77 = vector.shape_cast %76 : vector<1x128x128xbf16> to vector<128x128xbf16>
    %cst_45 = arith.constant dense<0.000000e+00> : vector<256x128xf32>
    %78 = tpu.matmul %75, %77, %cst_45 {dimension_numbers = #tpu.dot_dimension_numbers<[1], [0], [0], [1], [0, 0, 1, 1], [], []>} : vector<256x128xbf16>, vector<128x128xbf16>, vector<256x128xf32> -> vector<256x128xf32>
    %79 = arith.addf %70, %78 : vector<256x128xf32>
    %c47 = arith.constant 47 : index
    %c0_46 = arith.constant 0 : index
    %80 = vector.load %arg9[%c47, %c0_46] : memref<320x128xbf16, #tpu.memory_space<vmem>>, vector<256x128xbf16>
    %cst_47 = arith.constant 0.000000e+00 : bf16
    %81 = vector.broadcast %cst_47 : bf16 to vector<256x128xbf16>
    %82 = vector.shape_cast %32 : vector<256x1xi1> to vector<256x1xi1>
    %83 = vector.broadcast %82 : vector<256x1xi1> to vector<256x128xi1>
    %84 = arith.select %83, %80, %81 : vector<256x128xi1>, vector<256x128xbf16>
    %c6 = arith.constant 6 : index
    %c0_48 = arith.constant 0 : index
    %c0_49 = arith.constant 0 : index
    %85 = vector.load %arg4[%c6, %c0_48, %c0_49] : memref<9x128x128xbf16, #tpu.memory_space<vmem>>, vector<1x128x128xbf16>
    %86 = vector.shape_cast %85 : vector<1x128x128xbf16> to vector<128x128xbf16>
    %cst_50 = arith.constant dense<0.000000e+00> : vector<256x128xf32>
    %87 = tpu.matmul %84, %86, %cst_50 {dimension_numbers = #tpu.dot_dimension_numbers<[1], [0], [0], [1], [0, 0, 1, 1], [], []>} : vector<256x128xbf16>, vector<128x128xbf16>, vector<256x128xf32> -> vector<256x128xf32>
    %88 = arith.addf %79, %87 : vector<256x128xf32>
    %c48 = arith.constant 48 : index
    %c0_51 = arith.constant 0 : index
    %89 = vector.load %arg9[%c48, %c0_51] : memref<320x128xbf16, #tpu.memory_space<vmem>>, vector<256x128xbf16>
    %c7 = arith.constant 7 : index
    %c0_52 = arith.constant 0 : index
    %c0_53 = arith.constant 0 : index
    %90 = vector.load %arg4[%c7, %c0_52, %c0_53] : memref<9x128x128xbf16, #tpu.memory_space<vmem>>, vector<1x128x128xbf16>
    %91 = vector.shape_cast %90 : vector<1x128x128xbf16> to vector<128x128xbf16>
    %cst_54 = arith.constant dense<0.000000e+00> : vector<256x128xf32>
    %92 = tpu.matmul %89, %91, %cst_54 {dimension_numbers = #tpu.dot_dimension_numbers<[1], [0], [0], [1], [0, 0, 1, 1], [], []>} : vector<256x128xbf16>, vector<128x128xbf16>, vector<256x128xf32> -> vector<256x128xf32>
    %93 = arith.addf %88, %92 : vector<256x128xf32>
    %c49 = arith.constant 49 : index
    %c0_55 = arith.constant 0 : index
    %94 = vector.load %arg9[%c49, %c0_55] : memref<320x128xbf16, #tpu.memory_space<vmem>>, vector<256x128xbf16>
    %cst_56 = arith.constant 0.000000e+00 : bf16
    %95 = vector.broadcast %cst_56 : bf16 to vector<256x128xbf16>
    %96 = vector.shape_cast %34 : vector<256x1xi1> to vector<256x1xi1>
    %97 = vector.broadcast %96 : vector<256x1xi1> to vector<256x128xi1>
    %98 = arith.select %97, %94, %95 : vector<256x128xi1>, vector<256x128xbf16>
    %c8 = arith.constant 8 : index
    %c0_57 = arith.constant 0 : index
    %c0_58 = arith.constant 0 : index
    %99 = vector.load %arg4[%c8, %c0_57, %c0_58] : memref<9x128x128xbf16, #tpu.memory_space<vmem>>, vector<1x128x128xbf16>
    %100 = vector.shape_cast %99 : vector<1x128x128xbf16> to vector<128x128xbf16>
    %cst_59 = arith.constant dense<0.000000e+00> : vector<256x128xf32>
    %101 = tpu.matmul %98, %100, %cst_59 {dimension_numbers = #tpu.dot_dimension_numbers<[1], [0], [0], [1], [0, 0, 1, 1], [], []>} : vector<256x128xbf16>, vector<128x128xbf16>, vector<256x128xf32> -> vector<256x128xf32>
    %102 = arith.addf %93, %101 : vector<256x128xf32>
    %c0_60 = arith.constant 0 : index
    %c0_61 = arith.constant 0 : index
    %103 = vector.load %arg5[%c0_60, %c0_61] : memref<1x128xf32, #tpu.memory_space<vmem>>, vector<1x128xf32>
    %104 = vector.broadcast %103 : vector<1x128xf32> to vector<256x128xf32>
    %105 = arith.addf %102, %104 : vector<256x128xf32>
    %cst_62 = arith.constant 0.000000e+00 : f32
    %106 = vector.broadcast %cst_62 : f32 to vector<256x128xf32>
    %107 = arith.maximumf %105, %106 : vector<256x128xf32>
    %108 = arith.truncf %107 : vector<256x128xf32> to vector<256x128xbf16>
    %c0_63 = arith.constant 0 : index
    %c0_64 = arith.constant 0 : index
    %109 = vector.load %arg6[%c0_63, %c0_64] : memref<128x128xbf16, #tpu.memory_space<vmem>>, vector<128x128xbf16>
    %cst_65 = arith.constant dense<0.000000e+00> : vector<256x128xf32>
    %110 = tpu.matmul %108, %109, %cst_65 {dimension_numbers = #tpu.dot_dimension_numbers<[1], [0], [0], [1], [0, 0, 1, 1], [], []>} : vector<256x128xbf16>, vector<128x128xbf16>, vector<256x128xf32> -> vector<256x128xf32>
    %c0_66 = arith.constant 0 : index
    %c0_67 = arith.constant 0 : index
    %111 = vector.load %arg7[%c0_66, %c0_67] : memref<1x128xf32, #tpu.memory_space<vmem>>, vector<1x128xf32>
    %112 = vector.broadcast %111 : vector<1x128xf32> to vector<256x128xf32>
    %113 = arith.addf %110, %112 : vector<256x128xf32>
    %114 = arith.extf %1 : vector<256x128xbf16> to vector<256x128xf32>
    %115 = arith.addf %113, %114 : vector<256x128xf32>
    %cst_68 = arith.constant 0.000000e+00 : f32
    %116 = vector.broadcast %cst_68 : f32 to vector<256x128xf32>
    %117 = arith.maximumf %115, %116 : vector<256x128xf32>
    %118 = arith.truncf %117 : vector<256x128xf32> to vector<256x128xbf16>
    %c0_69 = arith.constant 0 : index
    %c0_70 = arith.constant 0 : index
    %c0_71 = arith.constant 0 : index
    %119 = vector.load %arg8[%c0_69, %c0_70, %c0_71] : memref<1x256x128xbf16, #tpu.memory_space<vmem>>, vector<1x256x128xbf16>
    %120 = vector.shape_cast %119 : vector<1x256x128xbf16> to vector<256x128xbf16>
    %121 = vector.shape_cast %118 : vector<256x128xbf16> to vector<1x256x128xbf16>
    tpu.vector_store %arg8[%c0_69, %c0_70, %c0_71], %121 {strides = array<i32>} : memref<1x256x128xbf16, #tpu.memory_space<vmem>>, vector<1x256x128xbf16>,
    return
  }
  func.func @transform_0(%arg0: i32) -> (i32, i32, i32) {
    %c0_i32 = arith.constant 0 : i32
    %c0_i32_0 = arith.constant 0 : i32
    %c0_i32_1 = arith.constant 0 : i32
    return %arg0, %c0_i32, %c0_i32_0 : i32, i32, i32
  }
  func.func @transform_1(%arg0: i32) -> (i32, i32) {
    %c0_i32 = arith.constant 0 : i32
    %c0_i32_0 = arith.constant 0 : i32
    %c0_i32_1 = arith.constant 0 : i32
    return %c0_i32, %c0_i32_0 : i32, i32
  }
  func.func @transform_2(%arg0: i32) -> (i32, i32) {
    %c0_i32 = arith.constant 0 : i32
    %c0_i32_0 = arith.constant 0 : i32
    %c0_i32_1 = arith.constant 0 : i32
    return %c0_i32, %c0_i32_0 : i32, i32
  }
  func.func @transform_3(%arg0: i32) -> (i32, i32, i32) {
    %c0_i32 = arith.constant 0 : i32
    %c0_i32_0 = arith.constant 0 : i32
    %c0_i32_1 = arith.constant 0 : i32
    %c0_i32_2 = arith.constant 0 : i32
    return %c0_i32, %c0_i32_0, %c0_i32_1 : i32, i32, i32
  }
  func.func @transform_4(%arg0: i32) -> (i32, i32) {
    %c0_i32 = arith.constant 0 : i32
    %c0_i32_0 = arith.constant 0 : i32
    %c0_i32_1 = arith.constant 0 : i32
    return %c0_i32, %c0_i32_0 : i32, i32
  }
  func.func @transform_5(%arg0: i32) -> (i32, i32) {
    %c0_i32 = arith.constant 0 : i32
    %c0_i32_0 = arith.constant 0 : i32
    %c0_i32_1 = arith.constant 0 : i32
    return %c0_i32, %c0_i32_0 : i32, i32
  }
  func.func @transform_6(%arg0: i32) -> (i32, i32) {
    %c0_i32 = arith.constant 0 : i32
    %c0_i32_0 = arith.constant 0 : i32
    %c0_i32_1 = arith.constant 0 : i32
    return %c0_i32, %c0_i32_0 : i32, i32
  }
  func.func @transform_7(%arg0: i32) -> (i32, i32, i32) {
    %c0_i32 = arith.constant 0 : i32
    %c0_i32_0 = arith.constant 0 : i32
    %c0_i32_1 = arith.constant 0 : i32
    return %arg0, %c0_i32, %c0_i32_0 : i32, i32, i32
  }
}

</mosaic_0001>

<bundles_post_ra>
// kernel: tpu_custom_call.1
= control target key start
LH: loop header
LB: loop body
LE: loop exit
PB: predicated region body
PF: predicated region fallthrough
CT: control target
= control target key end

     0   :  { %s12816_s0 = inlined_call_operand.hbm [shape: bf16[2,256,128], index: 0, kind: input, shape index: {}]   ;;  %s12817_s1 = inlined_call_operand.hbm [shape: bf16[128,128], index: 1, kind: input, shape index: {}]   ;;  %s12818_s2 = inlined_call_operand.vmem [shape: f32[1,128], index: 2, kind: input, shape index: {}]   ;;  %s12819_s3 = inlined_call_operand.hbm [shape: bf16[9,128,128], index: 3, kind: input, shape index: {}]   ;;  %s12820_s4 = inlined_call_operand.vmem [shape: f32[1,128], index: 4, kind: input, shape index: {}]   ;;  %s12821_s5 = inlined_call_operand.hbm [shape: bf16[128,128], index: 5, kind: input, shape index: {}]   ;;  %s12822_s6 = inlined_call_operand.vmem [shape: f32[1,128], index: 6, kind: input, shape index: {}]   ;;  %s12823_s7 = inlined_call_operand.hbm [shape: bf16[2,256,128], index: 7, kind: output, shape index: {}]  }
   0x1   :  { %13067 = sst [smem:[#allocation98_spill]] %s12817_s1 }
   0x2   :  { %12 = vsyncpa [#allocation4], 0 }
   0x3   :  { %14 = vsyncpa [#allocation4 + $0x1], 0 }
   0x4   :  { %15 = vsyncpa [#allocation7], 0 }
   0x5   :  { %16 = vsyncpa [#allocation10], 0 }
   0x6   :  { %17 = vsyncpa [#allocation5], 0 }
   0x7   :  { %19 = vsyncpa [#allocation5 + $0x1], 0  ;;  %s9352_s24 = smov 0   ;;  %s9354_s25 = smov 0  }
   0x8   :  { %s9356_s26 = smov 0   ;;  %s9358_s27 = smov 0  }
   0x9 LB: > { %s9373_s28 = sadd.s32 4294967295, %s9299_s27   ;;  %s7399_s29 = sadd.s32 4294967294, %s9299_s27   ;;  %s9299_s27 = sphi %s9358_s27, %s13885_s27   ;;  %s9295_s26 = sphi %s9356_s26, %s13884_s26   ;;  %s9291_s25 = sphi %s9354_s25, %s13883_s25   ;;  %s9287_s24 = sphi %s9352_s24, %s13882_s24  }
   0xa   : > { %p45_p0 = scmp.ne.s32.totalorder %s9291_s25, %s9287_s24  ;;  %p12824_p1 = scmp.eq.s32.totalorder %s9373_s28, 0 }
   0xb   : > { %p195_p2 = scmp.eq.s32.totalorder %s9373_s28, 1  ;;  %p201_p3 = scmp.eq.s32.totalorder %s7399_s29, 1 }
   0xc   : > { %p9382_p4 = por %p12824_p1, %p45_p0  ;;  %p7400_p5 = scmp.ge.s32.totalorder %s9299_s27, 1 }
   0xd   : > { %p9387_p6 = por %p201_p3, %p45_p0  ;;  %p208_p7 = scmp.lt.s32.totalorder %s9299_s27, 3 }
   0xe   : > { %s13068_s30 = scalar_select %p9382_p4, 1, 0 }
   0xf   : > { %s13069_s8 = scalar_select %p9387_p6, 1, 0 }
  0x10   : > { %p9392_p8 = pnand %p7400_p5, %p208_p7  ;;  %s9301_s10 = smov [#allocation6]  }
  0x11   : > { %s220_s11 = sshll.u32 %s9301_s10, 4  ;;  %s9302_s13 = smov [#allocation8]   ;;  %s221_s11 = int_to_ptr.vmem [resolvable:$true] %s220_s11 }
  0x12   : > { %s13070_s9 = scalar_select %p9392_p8, 1, 0 }
  0x13   : > { %p8821_p9 = pneg %p9392_p8  ;;  %s236_s14 = sshll.u32 %s9302_s13, 4  ;;  %s237_s14 = int_to_ptr.vmem [resolvable:$true] %s236_s14 }
  0x14   : > { %s9303_s15 = smov [#allocation9]   ;;  %s9132_s17 = scalar_lea.vmem %s221_s11, 1024 }
  0x15   : > { %p9401_p11 = pnand %p8821_p9, %p12824_p1  ;;  %s252_s16 = sshll.u32 %s9303_s15, 4  ;;  %s253_s16 = int_to_ptr.vmem [resolvable:$true] %s252_s16 }
  0x16   : > { %p9133_p13 = scmp.ne.s32.totalorder %s221_s11, %s9132_s17  ;;  %p9140_p5 = scmp.lt.s32.totalorder %s221_s11, %s221_s11 }
  0x17   : > { %p9123_p12 = pneg %p9401_p11  ;;  %p9141_p7 = scmp.lt.s32.totalorder %s9132_s17, %s9132_s17 }
  0x19   : > { %p9135_p0 = pnand %p9133_p13, %p9123_p12  ;;  %p9142_p9 = por %p9141_p7, %p9140_p5 }
  0x1b   : > { %p9136_p3 = pneg %p9135_p0 }
  0x1d   : > { %p9143_p10 = pnand %p9142_p9, %p9136_p3 }
  0x1f   : > { %9146 = shalt.err (!%p9143_p10)
}
  0x20   : > { %s12825_s18 = smov 64   ;;  %s12826_s19 = smov 4  }
  0x21   : > { %s13072_s1 = sld [smem:[#allocation98_spill]]  ;;  %s9158_s22 = scalar_lea.vmem %s237_s14, 9216 }
  0x22   : > { %p9159_p13 = scmp.ne.s32.totalorder %s237_s14, %s9158_s22  ;;  %p9166_p3 = scmp.lt.s32.totalorder %s237_s14, %s237_s14 }
  0x23   : > { %p9167_p10 = scmp.lt.s32.totalorder %s9158_s22, %s9158_s22 }
  0x24   : > { %p9161_p0 = pnand %p9159_p13, %p9123_p12 }
  0x25   : > { %p9168_p7 = por %p9167_p10, %p9166_p3 }
  0x26   : > { %p9162_p5 = pneg %p9161_p0 }
  0x27   : > { %8824 = dma.hbm_to_vmem [thread:$0]  (!%p9401_p11), %s13072_s1, 1024, %s221_s11, [#allocation7], %s12825_s18, %s12825_s18, %s12826_s19  }
  0x28   : > { %p9169_p9 = pnand %p9168_p7, %p9162_p5 }
  0x2a   : > { %9172 = shalt.err (!%p9169_p9)
}
  0x2b   : > { %8827 = dma.hbm_to_vmem [thread:$0]  (!%p9401_p11), %s12819_s3, 9216, %s237_s14, [#allocation7], %s12825_s18, %s12825_s18, %s12826_s19  }
  0x2c   : > { %s9184_s10 = scalar_lea.vmem %s253_s16, 1024  ;;  %p9192_p3 = scmp.lt.s32.totalorder %s253_s16, %s253_s16 }
  0x2d   : > { %p9185_p1 = scmp.ne.s32.totalorder %s253_s16, %s9184_s10  ;;  %p9193_p5 = scmp.lt.s32.totalorder %s9184_s10, %s9184_s10 }
  0x2f   : > { %p9187_p13 = pnand %p9185_p1, %p9123_p12  ;;  %p9194_p10 = por %p9193_p5, %p9192_p3 }
  0x31   : > { %p9188_p0 = pneg %p9187_p13 }
  0x33   : > { %p9195_p7 = pnand %p9194_p10, %p9188_p0 }
  0x35   : > { %9198 = shalt.err (!%p9195_p7)
}
  0x36   : > { %8830 = dma.hbm_to_vmem [thread:$0]  (!%p9401_p11), %s12821_s5, 1024, %s253_s16, [#allocation10], %s12825_s18, %s12825_s18, %s12826_s19  }
  0x37   : > { %s9441_s14 = sadd.s32 1, %s9299_s27   ;;  %s32_s15 = sadd.s32 1, %s9295_s26 }
  0x38   : > { %s29_s12 = ssub.s32 %s9299_s27, %s9441_s14  ;;  %p39_p12 = scmp.ne.s32.totalorder %s9295_s26, %s9291_s25 }
  0x39   : > { %p30_p1 = scmp.eq.s32.totalorder %s29_s12, 0  ;;  %p40_p9 = scmp.eq.s32.totalorder %s9299_s27, 0 }
  0x3a   : > { %p8842_p13 = scmp.lt.s32.totalorder %s9299_s27, 2  ;;  %p9455_p3 = por %p195_p2, %p39_p12 }
  0x3b   : > { %s9451_s17 = scalar_select %p30_p1, %s9295_s26, %s32_s15  }
  0x3c   : > { %p41_p0 = por %p40_p9, %p39_p12  ;;  %s269_s21 = sand.u32 1, %s9295_s26  }
  0x3d   : > { %s13073_s20 = scalar_select %p9455_p3, 1, 0 }
  0x3e   : > { %s7740_s22 = sshll.u32 %s9299_s27, 11  ;;  %s7405_s16 = sshll.u32 %s269_s21, 7 }
  0x3f   : > { %s9464_s10 = scalar_lea.hbm %s12816_s0, %s7740_s22  ;;  %s273_s11 = scalar_lea.vmem [#allocation3], %s7405_s16 }
  0x40   : > { %s280_s13 = sshll.u32 %s273_s11, 4  ;;  %p9466_p11 = pnand %p8842_p13, %p41_p0  ;;  %s9470_s13 = int_to_ptr.vmem [resolvable:$true] %s280_s13 }
  0x41   : > { %s9472_s15 = scalar_lea.sflag [#allocation4], %s269_s21  ;;  %s9199_s18 = scalar_lea.hbm %s9464_s10, 2048 }
  0x42   : > { %p9200_p2 = scmp.ne.s32.totalorder %s9464_s10, %s9199_s18  ;;  %p9201_p5 = pneg %p9466_p11 }
  0x43   : > { %s9204_s16 = scalar_lea.hbm %s12816_s0, 4096  ;;  %p9205_p1 = scmp.lt.s32.totalorder %s9464_s10, %s12816_s0 }
  0x44   : > { %p9202_p10 = pnand %p9201_p5, %p9200_p2  ;;  %p9206_p12 = scmp.lt.s32.totalorder %s9204_s16, %s9199_s18 }
  0x46   : > { %p9203_p7 = pneg %p9202_p10  ;;  %p9207_p9 = por %p9206_p12, %p9205_p1 }
  0x48   : > { %p9208_p13 = pnand %p9207_p9, %p9203_p7 }
  0x4a   : > { %9211 = shalt.err (!%p9208_p13)
}
  0x4b   : > { %s9212_s21 = scalar_lea.vmem %s9470_s13, 2048  ;;  %s9306_s19 = smov [#allocation3]  }
  0x4c   : > { %p9213_p0 = scmp.ne.s32.totalorder %s9470_s13, %s9212_s21  ;;  %s9217_s1 = sshll.u32 %s9306_s19, 4  ;;  %s9218_s1 = int_to_ptr.vmem [resolvable:$false] %s9217_s1 }
  0x4d   : > { %s9219_s22 = scalar_lea.vmem %s9218_s1, 4096  ;;  %p9220_p10 = scmp.lt.s32.totalorder %s9470_s13, %s9218_s1 }
  0x4e   : > { %p9215_p6 = pnand %p9213_p0, %p9201_p5  ;;  %p9221_p3 = scmp.lt.s32.totalorder %s9219_s22, %s9212_s21 }
  0x50   : > { %p9216_p2 = pneg %p9215_p6  ;;  %p9222_p4 = por %p9221_p3, %p9220_p10 }
  0x52   : > { %p9223_p8 = pnand %p9222_p4, %p9216_p2 }
  0x54   : > { %9226 = shalt.err (!%p9223_p8)
}
  0x55   : > { %s13075_s18 = smov 4   ;;  %s13076_s23 = smov 64  }
  0x56   : > { %8834 = dma.hbm_to_vmem [thread:$0]  (!%p9466_p11), %s9464_s10, 2048, %s9470_s13, %s9472_s15, %s13076_s23, %s13076_s23, %s13075_s18  }
  0x57   : > { %p13077_p6 = scmp.ne.s32.totalorder %s13070_s9, 0 }
  0x59   : > { %292 = sbr.rel (%p13077_p6) target bundleno = 1174 (0x496), region = 48 }
  0x5e   : > { %s9499_s19 = sand.u32 1, %s9291_s25   ;;  %p13078_p4 = scmp.ne.s32.totalorder %s13068_s30, 0 }
  0x5f   : > { %s7409_s1 = sshll.u32 %s9499_s19, 7  ;;  %s295_s16 = scalar_lea.sflag [#allocation4], %s9499_s19 }
  0x60   : > { %s9505_s12 = scalar_lea.vmem [#allocation3], %s7409_s1 }
  0x61   : > { %9270 = dma.done.wait (%p13078_p4), %s295_s16, 2048  }
  0x62   : > { %9272 = vsyncadd (%p13078_p4), %s295_s16, 4294965248  ;;  %p13079_p8 = scmp.eq.s32.totalorder %s9373_s28, 0 }
  0x64   : > { %9274 = dma.done.wait (%p13079_p8), [#allocation7], 10240   ;;  %p13080_p3 = pmov %p13079_p8 }
  0x66   : > { %9276 = vsyncadd (%p13080_p3), [#allocation7], 4294957056  ;;  %p13081_p11 = pmov %p13080_p3 }
  0x67   : > { %p13082_p5 = pmov %p13080_p3 }
  0x68   : > { %9278 = dma.done.wait (%p13081_p11), [#allocation10], 1024  }
  0x69   : > { %9280 = vsyncadd (%p13082_p5), [#allocation10], 4294966272  ;;  %v12841_v0 = vmov 0   ;;  %v8888_v1 = vld [vmem:[#allocation6 + $0x38] sm:$0xff]   ;;  %v8889_v2 = vld [vmem:[#allocation6 + $0x30] sm:$0xff]   ;;  %v904_v38 = vlaneseq  ;;  %vm9308_vm2 = vmmov 1  }
  0x6a   : > { %737 = vst [vmem:[#allocation2 + $0x4] sm:$0xf] %v12841_v0  ;;  %738 = vst [vmem:[#allocation2 + $0x8] sm:$0xf] %v12841_v0  ;;  %8261 = vmatprep.subr.bf16.mxu0 %v8888_v1  ;;  %8789 = vmatprep.subr.bf16.mxu1 %v8888_v1  ;;  %v8890_v3 = vld [vmem:[#allocation6 + $0x28] sm:$0xff]   ;;  %v8891_v4 = vld [vmem:[#allocation6 + $0x20] sm:$0xff]  }
  0x6b   : > { %739 = vst [vmem:[#allocation2 + $0xc] sm:$0xf] %v12841_v0  ;;  %740 = vst [vmem:[#allocation2 + $0x90] sm:$0xf] %v12841_v0  ;;  %8262 = vmatpush3.bf16.msra.mxu0 %v8888_v1  ;;  %8797 = vmatpush3.bf16.msra.mxu1 %v8888_v1  ;;  %v344_v5 = vld [vmem:[%s9505_s12] sm:$0xff]   ;;  %v8892_v7 = vld [vmem:[#allocation6 + $0x18] sm:$0xff]  }
  0x6c   : > { %741 = vst [vmem:[#allocation2 + $0x94] sm:$0xf] %v12841_v0  ;;  %742 = vst [vmem:[#allocation2 + $0x98] sm:$0xf] %v12841_v0  ;;  %8263 = vmatprep.subr.bf16.mxu0 %v8889_v2  ;;  %8790 = vmatprep.subr.bf16.mxu1 %v8889_v2  ;;  %v360_v6 = vld [vmem:[%s9505_s12 + $0x40] sm:$0xff]   ;;  %v8893_v8 = vld [vmem:[#allocation6 + $0x10] sm:$0xff]  }
  0x6d   : > { %8277 = vmatprep.mubr.bf16.mxu0 %v344_v5  ;;  %8293 = vmatprep.mubr.bf16.mxu1 %v360_v6  ;;  %v8894_v9 = vld [vmem:[#allocation6 + $0x8] sm:$0xff]   ;;  %v8895_v10 = vld [vmem:[#allocation6] sm:$0xff]   ;;  %v348_v13 = vld [vmem:[%s9505_s12 + $0x10] sm:$0xff]   ;;  %v9547_v43 = vshrl.u32 %v904_v38, 7  ;;  %vm1546_vm10 = vsmask.f32 3328 }
  0x6e   : > { %v346_v11 = vld [vmem:[%s9505_s12 + $0x8] sm:$0xff]   ;;  %v364_v14 = vld [vmem:[%s9505_s12 + $0x50] sm:$0xff]   ;;  %v8912_v15 = vld [vmem:[#allocation8 + $0x78] sm:$0xff]   ;;  %vm1547_vm11 = vsmask.f32 7440  ;;  %s12710_s11 = scalar_lea.vmem [#allocation11], %s7409_s1 }
  0x6f   : > { %8264 = vmatpush3.bf16.msra.mxu0 %v8889_v2  ;;  %8798 = vmatpush3.bf16.msra.mxu1 %v8889_v2  ;;  %v362_v12 = vld [vmem:[%s9505_s12 + $0x48] sm:$0xff]   ;;  %v8913_v16 = vld [vmem:[#allocation8 + $0x70] sm:$0xff]   ;;  %v350_v17 = vld [vmem:[%s9505_s12 + $0x18] sm:$0xff]   ;;  %v941_v44 = vand.u32 15, %v9547_v43  ;;  %v907_v45 = vadd.s32 16, %v9547_v43  ;;  %v909_v49 = vadd.s32 32, %v9547_v43 }
  0x70   : > { %8265 = vmatprep.subr.bf16.mxu0 %v8890_v3  ;;  %8791 = vmatprep.subr.bf16.mxu1 %v8890_v3  ;;  %v366_v18 = vld [vmem:[%s9505_s12 + $0x58] sm:$0xff]   ;;  %v352_v19 = vld [vmem:[%s9505_s12 + $0x20] sm:$0xff]   ;;  %v8914_v21 = vld [vmem:[#allocation8 + $0x68] sm:$0xff]   ;;  %v911_v52 = vadd.s32 48, %v9547_v43  ;;  %s7805_s21 = sshll.u32 %s9373_s28, 11  ;;  %s7297_s22 = sshll.u32 %s12710_s11, 4  ;;  %s12771_s22 = int_to_ptr.vmem [resolvable:$true] %s7297_s22 }
  0x71   : > { %v368_v20 = vld [vmem:[%s9505_s12 + $0x60] sm:$0xff]   ;;  %v354_v22 = vld [vmem:[%s9505_s12 + $0x28] sm:$0xff]   ;;  %v356_v24 = vld [vmem:[%s9505_s12 + $0x30] sm:$0xff]   ;;  %vm1321_vm0 = vcmp.ge.s32.totalorder %v941_v44, 1  ;;  %v955_v48 = vand.u32 15, %v907_v45  ;;  %v969_v53 = vand.u32 15, %v909_v49  ;;  %s12769_s1 = scalar_lea.hbm %s12823_s7, %s7805_s21 }
  0x72   : > { %v370_v23 = vld [vmem:[%s9505_s12 + $0x68] sm:$0xff]   ;;  %v372_v25 = vld [vmem:[%s9505_s12 + $0x70] sm:$0xff]   ;;  %v358_v26 = vld [vmem:[%s9505_s12 + $0x38] sm:$0xff]   ;;  %v983_v57 = vand.u32 15, %v911_v52  ;;  %v925_v52 = vadd.s32 160, %v9547_v43  ;;  %s7284_s16 = scalar_lea.sflag [#allocation5], %s9499_s19 }
  0x73   : > { %8266 = vmatpush3.bf16.msra.mxu0 %v8890_v3  ;;  %8799 = vmatpush3.bf16.msra.mxu1 %v8890_v3  ;;  %v374_v27 = vld [vmem:[%s9505_s12 + $0x78] sm:$0xff]   ;;  %v8916_v29 = vld [vmem:[#allocation8 + $0x60] sm:$0xff]   ;;  %v8917_v30 = vld [vmem:[#allocation8 + $0x30] sm:$0xff]   ;;  %vm1323_vm4 = vcmp.ge.s32.totalorder %v955_v48, 1  ;;  %vm1325_vm6 = vcmp.ge.s32.totalorder %v969_v53, 1  ;;  %p13879_p1 = scmp.ne.s32.totalorder %s13073_s20, 0 }
  0x74   : > { %8267 = vmatprep.subr.bf16.mxu0 %v8891_v4  ;;  %8792 = vmatprep.subr.bf16.mxu1 %v8891_v4  ;;  %v8915_v28 = vld [vmem:[#allocation8 + $0x38] sm:$0xff]   ;;  %v8919_v32 = vld [vmem:[#allocation8 + $0x28] sm:$0xff]   ;;  %v8920_v33 = vld [vmem:[#allocation8 + $0x50] sm:$0xff]   ;;  %vm9562_vm8 = vcmp.ge.s32.totalorder %v983_v57, 1  ;;  %s9309_s28 = smov [#allocation11]  }
  0x75   : > { %v8918_v31 = vld [vmem:[#allocation8 + $0x58] sm:$0xff]   ;;  %v8921_v34 = vld [vmem:[#allocation8 + $0x20] sm:$0xff]   ;;  %v8922_v35 = vld [vmem:[#allocation8 + $0x48] sm:$0xff]   ;;  %s9231_s30 = sshll.u32 %s9309_s28, 4  ;;  %s9232_s30 = int_to_ptr.vmem [resolvable:$false] %s9231_s30 }
  0x76   : > { %v8923_v36 = vld [vmem:[#allocation8 + $0x18] sm:$0xff]   ;;  %v8924_v37 = vld [vmem:[#allocation8 + $0x40] sm:$0xff]   ;;  %v8925_v39 = vld [vmem:[#allocation8 + $0x10] sm:$0xff]   ;;  %s9233_s9 = scalar_lea.vmem %s9232_s30, 4096  ;;  %p9234_p13 = scmp.lt.s32.totalorder %s12771_s22, %s9232_s30 }
  0x77   : > { %8268 = vmatpush3.bf16.msra.mxu0 %v8891_v4  ;;  %8800 = vmatpush3.bf16.msra.mxu1 %v8891_v4  ;;  %v9541_v40 = vld [vmem:[#allocation2 + $0x8] sm:$0xf]  ;;  %v9543_v41 = vld [vmem:[#allocation2 + $0xc] sm:$0xf]  ;;  %v8928_v47 = vld [vmem:[#allocation8 + $0xb8] sm:$0xff]  }
  0x78   : > { %8269 = vmatprep.subr.bf16.mxu0 %v8892_v7  ;;  %8793 = vmatprep.subr.bf16.mxu1 %v8892_v7  ;;  %v7471_v42 = vcombine.low %v9541_v40, %v9543_v41  ;;  %v8930_v46 = vld [vmem:[#allocation8 + $0x8] sm:$0xff]   ;;  %vm1482_vm1 = vmpackc.low %vm1321_vm0, %vm1321_vm0  ;;  %v8931_v50 = vld [vmem:[#allocation8] sm:$0xff]  }
  0x79   : > { %vm1483_vm3 = vmpackc.low %vm9308_vm2, %vm9308_vm2  ;;  %v1514_v51 = vsel %vm1482_vm1, 65537, %v12841_v0 }
  0x7a   : > { %v9555_v54 = vsel %vm1483_vm3, 65537, %v12841_v0  ;;  %v1550_v55 = vshll.u32 %v1514_v51, 16  ;;  %v1553_v56 = vshrl.u32 %v1514_v51, 16  ;;  %vm1484_vm5 = vmpackc.low %vm1323_vm4, %vm1323_vm4 }
  0x7b   : > { %8270 = vmatpush3.bf16.msra.mxu0 %v8892_v7  ;;  %8801 = vmatpush3.bf16.msra.mxu1 %v8892_v7  ;;  %v1559_v58 = vshll.u32 %v9555_v54, 16  ;;  %v1516_v59 = vsel %vm1484_vm5, 65537, %v12841_v0  ;;  %v1563_v62 = vshrl.u32 %v9555_v54, 16  ;;  %vm1486_vm7 = vmpackc.low %vm1325_vm6, %vm1325_vm6  ;;  %v913_v7 = vadd.s32 64, %v9547_v43 }
  0x7c   : > { %8271 = vmatprep.subr.bf16.mxu0 %v8893_v8  ;;  %8794 = vmatprep.subr.bf16.mxu1 %v8893_v8  ;;  %v9559_v60 = vrot.slane %v1550_v55, 5  ;;  %v1555_v61 = vrot.slane %v1553_v56, 4  ;;  %v1569_v2 = vshll.u32 %v1516_v59, 16  ;;  %v1573_v3 = vshrl.u32 %v1516_v59, 16  ;;  %vm1488_vm9 = vmpackc.low %vm9562_vm8, %vm9562_vm8 }
  0x7d   : > { %v9568_v1 = vrot.slane %v1559_v58, 5  ;;  %v1565_v5 = vrot.slane %v1563_v62, 4  ;;  %v1518_v6 = vsel %vm1486_vm7, 65537, %v12841_v0  ;;  %vm9580_vm12 = vmor %vm1546_vm10, %vm1547_vm11 }
  0x7e   : > { %13083 = vst [vmem:[#allocation16_spill] sm:$0xff] %v9559_v60  ;;  %v1556_v4 = vor.u32 %v1555_v61, %v9559_v60  ;;  %vm12877_vm14 = vcmp.ne.s16.totalorder %v9559_v60, 0 }
  0x7f   : > { %8272 = vmatpush3.bf16.msra.mxu0 %v8893_v8  ;;  %8802 = vmatpush3.bf16.msra.mxu1 %v8893_v8  ;;  %v1571_v8 = vrot.slane %v1569_v2, 5 }
  0x80   : > { %8273 = vmatprep.subr.bf16.mxu0 %v8894_v9  ;;  %8795 = vmatprep.subr.bf16.mxu1 %v8894_v9 }
  0x83   : > { %8274 = vmatpush3.bf16.msra.mxu0 %v8894_v9  ;;  %8803 = vmatpush3.bf16.msra.mxu1 %v8894_v9  ;;  %v1575_v9 = vrot.slane %v1573_v3, 4 }
  0x84   : > { %8275 = vmatprep.subr.bf16.mxu0 %v8895_v10  ;;  %8796 = vmatprep.subr.bf16.mxu1 %v8895_v10 }
  0x87   : > { %8276 = vmatpush3.bf16.msra.mxu0 %v8895_v10  ;;  %8804 = vmatpush3.bf16.msra.mxu1 %v8895_v10  ;;  %v1589_v10 = vshll.u32 %v1518_v6, 16 }
  0x88   : > { %8309 = vmatprep.subr.bf16.mxu1 %v8912_v15  ;;  %8357 = vmatprep.subr.bf16.mxu0 %v8915_v28 }
  0x8a   : > { %8278 = vmatmul.mubr.bf16.vlgmr.msra.gmra.mxu0 %v346_v11  ;;  %8294 = vmatmul.mubr.bf16.vlgmr.msra.gmra.mxu1 %v362_v12  ;;  %v1557_v11 = vrot.slane %v1556_v4, 4  ;;  %v1566_v12 = vor.u32 %v1565_v5, %v9568_v1 }
  0x8b   : > { %8281 = vmatprep.mubr.bf16.mxu0 %v348_v13  ;;  %8297 = vmatprep.mubr.bf16.mxu1 %v364_v14  ;;  %v1520_v13 = vsel %vm1488_vm9, 65537, %v12841_v0  ;;  %v997_v14 = vand.u32 15, %v913_v7 }
  0x8c   : > { %8310 = vmatpush3.bf16.msra.mxu1 %v8912_v15  ;;  %8358 = vmatpush3.bf16.msra.mxu0 %v8915_v28  ;;  %v10943_v15 = vld [vmem:[#allocation8 + $0x178] sm:$0xff]  }
  0x8d   : > { %8311 = vmatprep.subr.bf16.mxu1 %v8913_v16  ;;  %8359 = vmatprep.subr.bf16.mxu0 %v8917_v30  ;;  %vm9593_vm13 = vcmp.ge.s32.totalorder %v997_v14, 1 }
  0x8e   : > { %vm1490_vm0 = vmpackc.low %vm9593_vm13, %vm9593_vm13 }
  0x8f   : > { %v1522_v45 = vsel %vm1490_vm0, 65537, %v12841_v0 }
  0x90   : > { %8312 = vmatpush3.bf16.msra.mxu1 %v8913_v16  ;;  %8360 = vmatpush3.bf16.msra.mxu0 %v8917_v30  ;;  %v1593_v16 = vshrl.u32 %v1518_v6, 16  ;;  %v1629_v56 = vshll.u32 %v1522_v45, 16  ;;  %v1633_v57 = vshrl.u32 %v1522_v45, 16  ;;  %v906_v6 = vadd.s32 8, %v9547_v43 }
  0x91   : > { %8313 = vmatprep.subr.bf16.mxu1 %v8914_v21  ;;  %8361 = vmatprep.subr.bf16.mxu0 %v8919_v32 }
  0x92   : > { %8282 = vmatmul.mubr.bf16.gmra.mxu0 %v350_v17  ;;  %8298 = vmatmul.mubr.bf16.gmra.mxu1 %v366_v18  ;;  %v1613_v17 = vshrl.u32 %v1520_v13, 16  ;;  %v917_v18 = vadd.s32 96, %v9547_v43  ;;  %v1635_v14 = vrot.slane %v1633_v57, 4 }
  0x93   : > { %8285 = vmatprep.mubr.bf16.mxu0 %v352_v19  ;;  %8301 = vmatprep.mubr.bf16.mxu1 %v368_v20  ;;  %v915_v19 = vadd.s32 80, %v9547_v43  ;;  %v1576_v20 = vor.u32 %v1575_v9, %v1571_v8 }
  0x94   : > { %8314 = vmatpush3.bf16.msra.mxu1 %v8914_v21  ;;  %8362 = vmatpush3.bf16.msra.mxu0 %v8919_v32  ;;  %v1609_v21 = vshll.u32 %v1520_v13, 16  ;;  %v1615_v28 = vrot.slane %v1613_v17, 4  ;;  %v9680_v13 = vrot.slane %v1629_v56, 5 }
  0x95   : > { %8315 = vmatprep.subr.bf16.mxu1 %v8916_v29  ;;  %8363 = vmatprep.subr.bf16.mxu0 %v8921_v34  ;;  %v1011_v30 = vand.u32 15, %v915_v19 }
  0x96   : > { %v9602_v32 = vrot.slane %v1609_v21, 5 }
  0x97   : > { %vm9626_vm2 = vcmp.ge.s32.totalorder %v1011_v30, 1  ;;  %v1636_v30 = vor.u32 %v1635_v14, %v9680_v13  ;;  %v933_v14 = vadd.s32 224, %v9547_v43 }
  0x98   : > { %8316 = vmatpush3.bf16.msra.mxu1 %v8916_v29  ;;  %8364 = vmatpush3.bf16.msra.mxu0 %v8921_v34  ;;  %v1025_v29 = vand.u32 15, %v917_v18  ;;  %v9608_v34 = vrot.slane %v1576_v20, 4  ;;  %vm1492_vm5 = vmpackc.low %vm9626_vm2, %vm9626_vm2 }
  0x99   : > { %8317 = vmatprep.subr.bf16.mxu1 %v8918_v31  ;;  %8365 = vmatprep.subr.bf16.mxu0 %v8923_v36  ;;  %v9728_v57 = vrot.slane %v1636_v30, 4 }
  0x9a   : > { %8286 = vmatmul.mubr.bf16.gmra.mxu0 %v354_v22  ;;  %8302 = vmatmul.mubr.bf16.gmra.mxu1 %v370_v23  ;;  %v1562_v22 = vsel %vm9580_vm12, %v1557_v11, %v9568_v1  ;;  %v9589_v23 = vrot.slane %v1566_v12, 4  ;;  %vm9621_vm1 = vcmp.ge.s32.totalorder %v1025_v29, 1  ;;  %v929_v29 = vadd.s32 192, %v9547_v43 }
  0x9b   : > { %8289 = vmatprep.mubr.bf16.mxu0 %v356_v24  ;;  %8305 = vmatprep.mubr.bf16.mxu1 %v372_v25  ;;  %v9591_v24 = vrot.slane %v1589_v10, 5  ;;  %vm9598_vm15 = vcmp.ne.s16.totalorder %v1562_v22, 0  ;;  %vm1494_vm4 = vmpackc.low %vm9621_vm1, %vm9621_vm1  ;;  %v1081_v10 = vand.u32 15, %v925_v52  ;;  %v927_v22 = vadd.s32 176, %v9547_v43 }
  0x9c   : > { %8318 = vmatpush3.bf16.msra.mxu1 %v8918_v31  ;;  %8366 = vmatpush3.bf16.msra.mxu0 %v8923_v36  ;;  %13088 = vst [vmem:[#allocation17_spill] sm:$0xff] %v9589_v23  ;;  %v1902_v36 = vsel %vm9598_vm15, %v9541_v40, 0  ;;  %v1572_v38 = vsel %vm9580_vm12, %v9589_v23, %v1571_v8  ;;  %v923_v40 = vadd.s32 144, %v9547_v43  ;;  %v1526_v4 = vsel %vm1494_vm4, 65537, %v12841_v0 }
  0x9d   : > { %8319 = vmatprep.subr.bf16.mxu1 %v8920_v33  ;;  %8367 = vmatprep.subr.bf16.mxu0 %v8925_v39  ;;  %vm9635_vm3 = vcmp.ne.s16.totalorder %v1572_v38, 0  ;;  %v1524_v8 = vsel %vm1492_vm5, 65537, %v12841_v0  ;;  %v1669_v17 = vshll.u32 %v1526_v4, 16  ;;  %v1673_v18 = vshrl.u32 %v1526_v4, 16 }
  0x9e   : > { %v1067_v2 = vand.u32 15, %v923_v40  ;;  %v1649_v21 = vshll.u32 %v1524_v8, 16  ;;  %v948_v25 = vand.u32 15, %v906_v6  ;;  %vm9701_vm11 = vcmp.ge.s32.totalorder %v1081_v10, 1 }
  0x9f   : > { %v9713_v38 = vrot.slane %v1669_v17, 5  ;;  %vm1502_vm0 = vmpackc.low %vm9701_vm11, %vm9701_vm11  ;;  %v1109_v52 = vand.u32 15, %v929_v29  ;;  %v935_v40 = vadd.s32 240, %v9547_v43  ;;  %v2900_v10 = vrot.slane %v1563_v62, 7 }
  0xa0   : > { %8320 = vmatpush3.bf16.msra.mxu1 %v8920_v33  ;;  %8368 = vmatpush3.bf16.msra.mxu0 %v8925_v39  ;;  %v921_v33 = vadd.s32 128, %v9547_v43  ;;  %vm9685_vm9 = vcmp.ge.s32.totalorder %v1067_v2, 1  ;;  %v9716_v44 = vrot.slane %v1649_v21, 5  ;;  %vm9721_vm1 = vcmp.le.s32.totalorder %v948_v25, 14 }
  0xa1   : > { %8321 = vmatprep.subr.bf16.mxu1 %v8922_v35  ;;  %8369 = vmatprep.subr.bf16.mxu0 %v8930_v46  ;;  %vm1500_vm13 = vmpackc.low %vm9685_vm9, %vm9685_vm9  ;;  %vm9743_vm5 = vcmp.ge.s32.totalorder %v1109_v52, 1 }
  0xa2   : > { %8290 = vmatmul.mubr.bf16.gmra.mxu0 %v358_v26  ;;  %8306 = vmatmul.mubr.bf16.gmra.mxu1 %v374_v27  ;;  %v1385_v26 = vld [vmem:[#allocation2 + $0x4] sm:$0x8]  ;;  %v1595_v27 = vrot.slane %v1593_v16, 4  ;;  %v1053_v48 = vand.u32 15, %v921_v33  ;;  %v1653_v16 = vshrl.u32 %v1524_v8, 16  ;;  %vm2831_vm2 = vmpackc.low %vm9721_vm1, %vm9721_vm1 }
  0xa3   : > { %8325 = vmatprep.mubr.bf16.mxu1 %v7471_v42  ;;  %v1616_v42 = vor.u32 %v1615_v28, %v9602_v32  ;;  %v2863_v28 = vsel %vm2831_vm2, 65537, %v12841_v0  ;;  %vm2895_vm1 = vsmask.f32 4368 }
  0xa4   : > { %8322 = vmatpush3.bf16.msra.mxu1 %v8922_v35  ;;  %8370 = vmatpush3.bf16.msra.mxu0 %v8930_v46  ;;  %v1901_v35 = vsel %vm12877_vm14, %v1385_v26, 0  ;;  %v1596_v39 = vor.u32 %v1595_v27, %v9591_v24  ;;  %vm9662_vm6 = vcmp.ge.s32.totalorder %v1053_v48, 1  ;;  %v1095_v46 = vand.u32 15, %v927_v22 }
  0xa5   : > { %8323 = vmatprep.subr.bf16.mxu1 %v8924_v37  ;;  %8371 = vmatprep.subr.bf16.mxu0 %v8931_v50  ;;  %v9645_v55 = vrot.slane %v1616_v42, 4  ;;  %vm1498_vm8 = vmpackc.low %vm9662_vm6, %vm9662_vm6  ;;  %v1675_v42 = vrot.slane %v1673_v18, 4 }
  0xa6   : > { %v9643_v53 = vrot.slane %v1596_v39, 4  ;;  %v1530_v33 = vsel %vm1498_vm8, 65537, %v12841_v0  ;;  %vm9736_vm4 = vcmp.ge.s32.totalorder %v1095_v46, 1  ;;  %vm1506_vm8 = vmpackc.low %vm9743_vm5, %vm9743_vm5 }
  0xa7   : > { %v1713_v48 = vshrl.u32 %v1530_v33, 16  ;;  %v1676_v5 = vor.u32 %v1675_v42, %v9713_v38 }
  0xa8   : > { %8324 = vmatpush3.bf16.msra.mxu1 %v8924_v37  ;;  %8372 = vmatpush3.bf16.msra.mxu0 %v8931_v50  ;;  %v919_v37 = vadd.s32 112, %v9547_v43  ;;  %v13097_v50 = vmov 0 }
  0xa9   : > { %8405 = vmatprep.subr.bf16.mxu1 %v8928_v47  ;;  %v7495_v47 = vcombine.low %v1901_v35, %v1902_v36  ;;  %v13098_v50 = vsel %vm9635_vm3, 4294967295, %v13097_v50  ;;  %v931_v35 = vadd.s32 208, %v9547_v43  ;;  %v908_v36 = vadd.s32 24, %v9547_v43 }
  0xaa   : > { %v1039_v51 = vand.u32 15, %v919_v37  ;;  %v1655_v37 = vrot.slane %v1653_v16, 4  ;;  %v1715_v18 = vrot.slane %v1713_v48, 4  ;;  %v2906_v48 = vshrl.u32 %v2863_v28, 16 }
  0xab   : > { %v2357_v3 = vshrl.u32 %v7495_v47, 16  ;;  %v2360_v7 = vshll.u32 %v7495_v47, 16  ;;  %v1709_v47 = vshll.u32 %v1530_v33, 16  ;;  %v1123_v2 = vand.u32 15, %v931_v35 }
  0xac   : > { %vm9668_vm7 = vcmp.ge.s32.totalorder %v1039_v51, 1  ;;  %v1532_v51 = vsel %vm1500_vm13, 65537, %v12841_v0  ;;  %v1656_v4 = vor.u32 %v1655_v37, %v9716_v44  ;;  %v9758_v33 = vrot.slane %v1676_v5, 4 }
  0xad   : > { %v9689_v20 = vrot.slane %v2357_v3, 3  ;;  %vm1496_vm10 = vmpackc.low %vm9668_vm7, %vm9668_vm7  ;;  %v9699_v27 = vrot.slane %v2360_v7, 4  ;;  %v962_v3 = vand.u32 15, %v908_v36  ;;  %v1534_v7 = vsel %vm1502_vm0, 65537, %v12841_v0  ;;  %v9765_v36 = vld [vmem:[#allocation8 + $0xf8] sm:$0xff]  }
  0xae   : > { %v1528_v39 = vsel %vm1496_vm10, 65537, %v12841_v0  ;;  %v1729_v8 = vshll.u32 %v1532_v51, 16  ;;  %v1733_v9 = vshrl.u32 %v1532_v51, 16  ;;  %v9741_v17 = vrot.slane %v1709_v47, 5  ;;  %vm1504_vm7 = vmpackc.low %vm9736_vm4, %vm9736_vm4  ;;  %8453 = vmatprep.subr.bf16.mxu0 %v9765_v36 }
  0xaf   : > { %v1693_v45 = vshrl.u32 %v1528_v39, 16  ;;  %v1689_v6 = vshll.u32 %v1528_v39, 16  ;;  %v1749_v21 = vshll.u32 %v1534_v7, 16  ;;  %v1753_v22 = vshrl.u32 %v1534_v7, 16 }
  0xb0   : > { %vm9747_vm6 = vcmp.ge.s32.totalorder %v1123_v2, 1  ;;  %v9756_v30 = vrot.slane %v1656_v4, 4  ;;  %v9771_v39 = vrot.slane %v1729_v8, 5  ;;  %v1735_v42 = vrot.slane %v1733_v9, 4 }
  0xb1   : > { %v1695_v16 = vrot.slane %v1693_v45, 4  ;;  %v9760_v35 = vrot.slane %v1689_v6, 5  ;;  %v1137_v45 = vand.u32 15, %v933_v14  ;;  %vm1508_vm9 = vmpackc.low %vm9747_vm6, %vm9747_vm6  ;;  %vm9785_vm10 = vcmp.le.s32.totalorder %v962_v3, 14 }
  0xb2   : > { %v1716_v52 = vor.u32 %v1715_v18, %v9741_v17  ;;  %v9791_v2 = vrot.slane %v1749_v21, 5  ;;  %v1755_v4 = vrot.slane %v1753_v22, 4  ;;  %v1536_v7 = vsel %vm1504_vm7, 65537, %v12841_v0  ;;  %vm2833_vm5 = vmpackc.low %vm9785_vm10, %vm9785_vm10 }
  0xb3   : > { %v1696_v51 = vor.u32 %v1695_v16, %v9760_v35  ;;  %v1736_v8 = vor.u32 %v1735_v42, %v9771_v39  ;;  %v1538_v9 = vsel %vm1506_vm8, 65537, %v12841_v0  ;;  %v1540_v14 = vsel %vm1508_vm9, 65537, %v12841_v0 }
  0xb4   : > { %13117 = vst [vmem:[#allocation18_spill] sm:$0xff] %v9791_v2  ;;  %vm9819_vm11 = vcmp.ge.s32.totalorder %v1137_v45, 1  ;;  %v1151_v18 = vand.u32 15, %v935_v40  ;;  %v9825_v21 = vrot.slane %v2906_v48, 7  ;;  %v2909_v22 = vshll.u32 %v2863_v28, 16 }
  0xb5   : > { %v9827_v25 = vrot.slane %v1696_v51, 4  ;;  %v9829_v42 = vrot.slane %v1716_v52, 4  ;;  %v1756_v19 = vor.u32 %v1755_v4, %v9791_v2  ;;  %v1769_v6 = vshll.u32 %v1536_v7, 16  ;;  %vm1510_vm13 = vmpackc.low %vm9819_vm11, %vm9819_vm11  ;;  %v2733_v51 = vld [vmem:[#allocation2 + $0x8] sm:$0xf] }
  0xb6   : > { %v1773_v56 = vshrl.u32 %v1536_v7, 16  ;;  %v1789_v3 = vshll.u32 %v1538_v9, 16  ;;  %vm2894_vm0 = vsmask.f32 256  ;;  %v1793_v28 = vshrl.u32 %v1538_v9, 16 }
  0xb7   : > { %v1809_v45 = vshll.u32 %v1540_v14, 16  ;;  %v910_v40 = vadd.s32 40, %v9547_v43  ;;  %v1813_v48 = vshrl.u32 %v1540_v14, 16  ;;  %vm9840_vm2 = vcmp.ge.s32.totalorder %v1151_v18, 1  ;;  %vm9858_vm4 = vmor %vm2894_vm0, %vm2895_vm1 }
  0xb8   : > { %v9844_v52 = vrot.slane %v2900_v10, 4  ;;  %v2911_v4 = vor.u32 %v2909_v22, %v9825_v21  ;;  %v9855_v16 = vrot.slane %v1736_v8, 4  ;;  %v1542_v14 = vsel %vm1510_vm13, 65537, %v12841_v0  ;;  %vm1512_vm6 = vmpackc.low %vm9840_vm2, %vm9840_vm2 }
  0xb9   : > { %v9862_v62 = vrot.slane %v1756_v19, 4  ;;  %v9864_v22 = vrot.slane %v1769_v6, 5  ;;  %v1775_v46 = vrot.slane %v1773_v56, 4  ;;  %v9866_v5 = vrot.slane %v1789_v3, 5 }
  0xba   : > { %v1795_v9 = vrot.slane %v1793_v28, 4  ;;  %v9871_v8 = vrot.slane %v1809_v45, 5  ;;  %v9878_v19 = vor.u32 %v2900_v10, %v1559_v58  ;;  %v976_v6 = vand.u32 15, %v910_v40 }
  0xbb   : > { %13124 = vst [vmem:[#allocation19_spill] sm:$0xff] %v9862_v62  ;;  %13125 = vst [vmem:[#allocation20_spill] sm:$0xff] %v9864_v22  ;;  %v1815_v7 = vrot.slane %v1813_v48, 4  ;;  %v1829_v56 = vshll.u32 %v1542_v14, 16  ;;  %v1833_v3 = vshrl.u32 %v1542_v14, 16  ;;  %v2912_v29 = vsel %vm9858_vm4, %v9844_v52, %v2911_v4 }
  0xbc   : > { %13126 = vst [vmem:[#allocation21_spill] sm:$0xff] %v9866_v5  ;;  %13127 = vst [vmem:[#allocation22_spill] sm:$0xff] %v9871_v8  ;;  %v912_v10 = vadd.s32 56, %v9547_v43  ;;  %v1776_v40 = vor.u32 %v1775_v46, %v9864_v22  ;;  %v1544_v48 = vsel %vm1512_vm6, 65537, %v12841_v0  ;;  %v2865_v4 = vsel %vm2833_vm5, 65537, %v12841_v0 }
  0xbd   : > { %13128 = vst [vmem:[#allocation23_spill] sm:$0xff] %v9878_v19  ;;  %v2734_v14 = vld [vmem:[#allocation2 + $0xc] sm:$0xf]  ;;  %vm12878_vm7 = vcmp.ne.s16.totalorder %v9878_v19, 0  ;;  %vm9909_vm8 = vcmp.ne.s16.totalorder %v2912_v29, 0  ;;  %v13129_v58 = vmov 0  ;;  %v1796_v54 = vor.u32 %v1795_v9, %v9866_v5 }
  0xbe   : > { %v13130_v58 = vsel %vm9909_vm8, 4294967295, %v13129_v58  ;;  %vm9913_vm9 = vcmp.le.s32.totalorder %v976_v6, 14  ;;  %v914_v46 = vadd.s32 72, %v9547_v43  ;;  %v1816_v28 = vor.u32 %v1815_v7, %v9871_v8 }
  0xbf   : > { %13131 = vst [vmem:[#allocation24_spill] sm:$0xff] %v13130_v58  ;;  %v9920_v47 = vrot.slane %v1829_v56, 5  ;;  %v1835_v37 = vrot.slane %v1833_v3, 4  ;;  %v2924_v26 = vshrl.u32 %v2865_v4, 16  ;;  %v990_v12 = vand.u32 15, %v912_v10  ;;  %vm2835_vm10 = vmpackc.low %vm9913_vm9, %vm9913_vm9 }
  0xc0   : > { %v1849_v59 = vshll.u32 %v1544_v48, 16  ;;  %v3217_v9 = vsel %vm12878_vm7, %v2733_v51, 0  ;;  %v3218_v7 = vsel %vm9909_vm8, %v2734_v14, 0  ;;  %v916_v56 = vadd.s32 88, %v9547_v43 }
  0xc1   : > { %13134 = vst [vmem:[#allocation25_spill] sm:$0xff] %v9920_v47  ;;  %v9938_v3 = vrot.slane %v1776_v40, 4  ;;  %v1853_v29 = vshrl.u32 %v1544_v48, 16  ;;  %v1004_v63 = vand.u32 15, %v914_v46  ;;  %v918_v6 = vadd.s32 104, %v9547_v43 }
  0xc2   : > { %v9941_v10 = vrot.slane %v1796_v54, 4  ;;  %v9943_v61 = vrot.slane %v1816_v28, 4  ;;  %v1836_v51 = vor.u32 %v1835_v37, %v9920_v47  ;;  %v920_v14 = vadd.s32 120, %v9547_v43 }
  0xc3   : > { %13135 = vst [vmem:[#allocation26_spill] sm:$0xff] %v9938_v3  ;;  %v7520_v11 = vcombine.low %v3217_v9, %v3218_v7  ;;  %v2867_v45 = vsel %vm2835_vm10, 65537, %v12841_v0  ;;  %vm9948_vm11 = vcmp.le.s32.totalorder %v990_v12, 14  ;;  %v922_v40 = vadd.s32 136, %v9547_v43 }
  0xc4   : > { %13136 = vst [vmem:[#allocation27_spill] sm:$0xff] %v9941_v10  ;;  %13137 = vst [vmem:[#allocation28_spill] sm:$0xff] %v9943_v61  ;;  %v9953_v48 = vrot.slane %v1849_v59, 5  ;;  %v2926_v46 = vrot.slane %v2924_v26, 7  ;;  %v2927_v54 = vshll.u32 %v2865_v4, 16  ;;  %v1018_v58 = vand.u32 15, %v916_v56 }
  0xc5   : > { %v1855_v28 = vrot.slane %v1853_v29, 4  ;;  %vm9955_vm13 = vcmp.le.s32.totalorder %v1004_v63, 14  ;;  %v1032_v37 = vand.u32 15, %v918_v6  ;;  %v924_v9 = vadd.s32 152, %v9547_v43  ;;  %vm2837_vm0 = vmpackc.low %vm9948_vm11, %vm9948_vm11 }
  0xc6   : > { %13140 = vst [vmem:[#allocation29_spill] sm:$0xff] %v9953_v48  ;;  %v2942_v26 = vshrl.u32 %v2867_v45, 16  ;;  %v1046_v63 = vand.u32 15, %v920_v14  ;;  %v9975_v29 = vrot.slane %v1836_v51, 4  ;;  %v3354_v6 = vshll.u32 %v7520_v11, 16  ;;  %vm2839_vm1 = vmpackc.low %vm9955_vm13, %vm9955_vm13 }
  0xc7   : > { %v1060_v7 = vand.u32 15, %v922_v40  ;;  %v2913_v59 = vrot.slane %v9825_v21, 4  ;;  %v9982_v49 = vor.u32 %v2927_v54, %v2926_v46  ;;  %vm9987_vm2 = vcmp.le.s32.totalorder %v1018_v58, 14 }
  0xc8   : > { %13143 = vst [vmem:[#allocation30_spill] sm:$0xff] %v9975_v29  ;;  %v1856_v51 = vor.u32 %v1855_v28, %v9953_v48  ;;  %v2869_v40 = vsel %vm2837_vm0, 65537, %v12841_v0  ;;  %vm9993_vm5 = vcmp.le.s32.totalorder %v1032_v37, 14  ;;  %v1074_v56 = vand.u32 15, %v924_v9  ;;  %vm2841_vm9 = vmpackc.low %vm9987_vm2, %vm9987_vm2 }
  0xc9   : > { %13144 = vst [vmem:[#allocation31_spill] sm:$0xff] %v9982_v49  ;;  %v2931_v21 = vrot.slane %v2926_v46, 4  ;;  %v2944_v54 = vrot.slane %v2942_v26, 7  ;;  %v2945_v12 = vshll.u32 %v2867_v45, 16  ;;  %vm9997_vm6 = vcmp.le.s32.totalorder %v1046_v63, 14  ;;  %vm2843_vm11 = vmpackc.low %vm9993_vm5, %vm9993_vm5 }
  0xca   : > { %v3352_v58 = vshrl.u32 %v7520_v11, 16  ;;  %v3356_v61 = vrot.slane %v3354_v6, 1  ;;  %v2871_v8 = vsel %vm2839_vm1, 65537, %v12841_v0  ;;  %vm10005_vm10 = vcmp.le.s32.totalorder %v1060_v7, 14  ;;  %vm2845_vm13 = vmpackc.low %vm9997_vm6, %vm9997_vm6 }
  0xcb   : > { %v10020_v46 = vsel %vm9858_vm4, %v2913_v59, %v9878_v19  ;;  %v2960_v37 = vshrl.u32 %v2869_v40, 16  ;;  %v10029_v26 = vrot.slane %v1856_v51, 4  ;;  %vm10034_vm0 = vcmp.le.s32.totalorder %v1074_v56, 14  ;;  %vm2847_vm1 = vmpackc.low %vm10005_vm10, %vm10005_vm10 }
  0xcc   : > { %13153 = vst [vmem:[#allocation32_spill] sm:$0xff] %v10020_v46  ;;  %v926_v59 = vadd.s32 168, %v9547_v43  ;;  %v10043_v6 = vor.u32 %v2945_v12, %v2944_v54  ;;  %v2978_v7 = vshrl.u32 %v2871_v8, 16  ;;  %v2873_v14 = vsel %vm2841_vm9, 65537, %v12841_v0  ;;  %vm2849_vm2 = vmpackc.low %vm10034_vm0, %vm10034_vm0 }
  0xcd   : > { %13154 = vst [vmem:[#allocation33_spill] sm:$0xff] %v10029_v26  ;;  %v10049_v56 = vor.u32 %v3356_v61, %v3352_v58  ;;  %v10054_v51 = vsel %vm9858_vm4, %v2931_v21, %v9878_v19  ;;  %v2875_v5 = vsel %vm2843_vm11, 65537, %v12841_v0  ;;  %v928_v4 = vadd.s32 184, %v9547_v43  ;;  %v3740_v21 = vld [vmem:[#allocation2 + $0xc] sm:$0x8] }
  0xce   : > { %13157 = vst [vmem:[#allocation34_spill] sm:$0xff] %v10043_v6  ;;  %13159 = vst [vmem:[#allocation36_spill] sm:$0xff] %v10054_v51  ;;  %v2949_v12 = vrot.slane %v2944_v54, 4  ;;  %v2962_v9 = vrot.slane %v2960_v37, 7  ;;  %v2963_v11 = vshll.u32 %v2869_v40, 16  ;;  %v2877_v45 = vsel %vm2845_vm13, 65537, %v12841_v0 }
  0xcf   : > { %13158 = vst [vmem:[#allocation35_spill] sm:$0xff] %v10049_v56  ;;  %v2996_v58 = vshrl.u32 %v2873_v14, 16  ;;  %v2879_v28 = vsel %vm2847_vm1, 65537, %v12841_v0  ;;  %v1088_v56 = vand.u32 15, %v926_v59  ;;  %v2980_v54 = vrot.slane %v2978_v7, 7 }
  0xd0   : > { %v2981_v37 = vshll.u32 %v2871_v8, 16  ;;  %v3014_v63 = vshrl.u32 %v2875_v5, 16  ;;  %v3032_v51 = vshrl.u32 %v2877_v45, 16  ;;  %v2881_v49 = vsel %vm2849_vm2, 65537, %v12841_v0 }
  0xd1   : > { %v1102_v46 = vand.u32 15, %v928_v4  ;;  %v930_v48 = vadd.s32 200, %v9547_v43  ;;  %v10076_v61 = vsel %vm9858_vm4, %v2949_v12, %v9878_v19  ;;  %v10078_v59 = vor.u32 %v2963_v11, %v2962_v9 }
  0xd2   : > { %13160 = vst [vmem:[#allocation37_spill] sm:$0xff] %v10076_v61  ;;  %v10082_v26 = vsel %vm12877_vm14, %v3740_v21, 0  ;;  %v3050_v7 = vshrl.u32 %v2879_v28, 16  ;;  %v2967_v8 = vrot.slane %v2962_v9, 4  ;;  %v2998_v40 = vrot.slane %v2996_v58, 7 }
  0xd3   : > { %13161 = vst [vmem:[#allocation38_spill] sm:$0xff] %v10078_v59  ;;  %13162 = vst [vmem:[#allocation39_spill] sm:$0xff] %v10082_v26  ;;  %v2999_v6 = vshll.u32 %v2873_v14, 16  ;;  %vm10084_vm5 = vcmp.le.s32.totalorder %v1088_v56, 14  ;;  %v10088_v4 = vor.u32 %v2981_v37, %v2980_v54  ;;  %v3016_v29 = vrot.slane %v3014_v63, 7 }
  0xd4   : > { %v3017_v47 = vshll.u32 %v2875_v5, 16  ;;  %v3068_v12 = vshrl.u32 %v2881_v49, 16  ;;  %v3034_v61 = vrot.slane %v3032_v51, 7  ;;  %v3035_v11 = vshll.u32 %v2877_v45, 16  ;;  %vm2851_vm9 = vmpackc.low %vm10084_vm5, %vm10084_vm5 }
  0xd5   : > { %13165 = vst [vmem:[#allocation40_spill] sm:$0xff] %v10088_v4  ;;  %vm10090_vm6 = vcmp.le.s32.totalorder %v1102_v46, 14  ;;  %v1116_v21 = vand.u32 15, %v930_v48  ;;  %v2985_v60 = vrot.slane %v2980_v54, 4  ;;  %v3052_v9 = vrot.slane %v3050_v7, 7 }
  0xd6   : > { %v3053_v58 = vshll.u32 %v2879_v28, 16  ;;  %v932_v14 = vadd.s32 216, %v9547_v43  ;;  %v10105_v45 = vsel %vm9858_vm4, %v2967_v8, %v9878_v19  ;;  %v10107_v48 = vor.u32 %v2999_v6, %v2998_v40  ;;  %vm2853_vm10 = vmpackc.low %vm10090_vm6, %vm10090_vm6 }
  0xd7   : > { %13168 = vst [vmem:[#allocation41_spill] sm:$0xff] %v10105_v45  ;;  %v3003_v46 = vrot.slane %v2998_v40, 4  ;;  %v10109_v51 = vor.u32 %v3017_v47, %v3016_v29  ;;  %v3021_v0 = vrot.slane %v3016_v29, 4  ;;  %v10111_v5 = vrot.slane %v3068_v12, 7 }
  0xd8   : > { %13169 = vst [vmem:[#allocation42_spill] sm:$0xff] %v10107_v48  ;;  %v3071_v28 = vshll.u32 %v2881_v49, 16  ;;  %v10116_v54 = vor.u32 %v3035_v11, %v3034_v61  ;;  %v3039_v37 = vrot.slane %v3034_v61, 4  ;;  %v13172_v63 = vmov 0   ;;  %v10139_v61 = vld [vmem:[%s12818_s2] ss:$0 sm:$0xff] }
  0xd9   : > { %13170 = vst [vmem:[#allocation43_spill] sm:$0xff] %v10109_v51  ;;  %v10119_v7 = vsel %vm2851_vm9, 65537, %v13172_v63  ;;  %vm10121_vm11 = vcmp.le.s32.totalorder %v1116_v21, 14  ;;  %v10132_v10 = vsel %vm9858_vm4, %v2985_v60, %v9878_v19  ;;  %v10134_v29 = vor.u32 %v3053_v58, %v3052_v9 }
  0xda   : > { %13171 = vst [vmem:[#allocation44_spill] sm:$0xff] %v10116_v54  ;;  %13175 = vst [vmem:[#allocation45_spill] sm:$0xff] %v10132_v10  ;;  %v1130_v49 = vand.u32 15, %v932_v14  ;;  %v10148_v8 = vsel %vm9858_vm4, %v3003_v46, %v9878_v19  ;;  %v3057_v60 = vrot.slane %v3052_v9, 4  ;;  %v10151_v12 = vsel %vm2853_vm10, 65537, %v13172_v63 }
  0xdb   : > { %13176 = vst [vmem:[#allocation46_spill] sm:$0xff] %v10134_v29  ;;  %13177 = vst [vmem:[#allocation47_spill] sm:$0xff] %v10148_v8  ;;  %v10158_v14 = vor.u32 %v3071_v28, %v10111_v5  ;;  %v3086_v40 = vshrl.u32 %v10119_v7, 16  ;;  %v934_v9 = vadd.s32 232, %v9547_v43  ;;  %v10169_v47 = vsel %vm9858_vm4, %v3021_v0, %v9878_v19 }
  0xdc   : > { %vm2855_vm13 = vmpackc.low %vm10121_vm11, %vm10121_vm11  ;;  %13179 = vst [vmem:[#allocation49_spill] sm:$0xff] %v10169_v47  ;;  %v10178_v6 = vsel %vm9858_vm4, %v3039_v37, %v9878_v19  ;;  %vm10186_vm0 = vcmp.le.s32.totalorder %v1130_v49, 14  ;;  %v10193_v37 = vsel %vm9858_vm4, %v3057_v60, %v9878_v19  ;;  %v3089_v28 = vshll.u32 %v10119_v7, 16 }
  0xdd   : > { %13178 = vst [vmem:[#allocation48_spill] sm:$0xff] %v10158_v14  ;;  %13180 = vst [vmem:[#allocation50_spill] sm:$0xff] %v10178_v6  ;;  %v10198_v6 = vsel %vm2855_vm13, 65537, %v13172_v63  ;;  %v10205_v51 = vrot.slane %v3086_v40, 7  ;;  %v1144_v60 = vand.u32 15, %v934_v9  ;;  %v3107_v40 = vshll.u32 %v10151_v12, 16 }
  0xde   : > { %13183 = vst [vmem:[#allocation51_spill] sm:$0xff] %v10193_v37  ;;  %vm2857_vm1 = vmpackc.low %vm10186_vm0, %vm10186_vm0  ;;  %v3122_v9 = vshrl.u32 %v10198_v6, 16  ;;  %v3125_v62 = vshll.u32 %v10198_v6, 16  ;;  %vm13250_vm8 = vsmask.f32 4352 }
  0xdf   : > { %v10220_v45 = vsel %vm2857_vm1, 65537, %v13172_v63  ;;  %vm10222_vm2 = vcmp.le.s32.totalorder %v1144_v60, 14 }
  0xe0   : > { %vm2859_vm5 = vmpackc.low %vm10222_vm2, %vm10222_vm2  ;;  %vm12879_vm2 = vsmask.f32 4352 }
 0x14a   : > { %v8279_v11 = vpop.f32.mrf.mxu0  ;;  %v8295_v21 = vpop.f32.mrf.mxu1 }
 0x14b   : > { %v650_v46 = vadd.f32 %v8295_v21, %v10139_v61  ;;  %v586_v58 = vadd.f32 %v8279_v11, %v10139_v61  ;;  %v3104_v21 = vshrl.u32 %v10151_v12, 16  ;;  %v3075_v11 = vrot.slane %v10111_v5, 4 }
 0x14c   : > { %v577_v56 = vpop.f32.mrf.mxu0  ;;  %v641_v26 = vpop.f32.mrf.mxu1  ;;  %v936_v12 = vadd.s32 248, %v9547_v43 }
 0x14d   : > { %v642_v0 = vadd.f32 %v10139_v61, %v641_v26  ;;  %v578_v37 = vadd.f32 %v10139_v61, %v577_v56  ;;  %v722_v7 = vmax.f32 %v650_v46, 0.0  ;;  %v706_v26 = vmax.f32 %v586_v58, 0.0 }
 0x14e   : > { %v8280_v54 = vpop.f32.mrf.mxu0  ;;  %v8296_v29 = vpop.f32.mrf.mxu1  ;;  %v10213_v4 = vrot.slane %v3104_v21, 7  ;;  %v10237_v43 = vsel %vm9858_vm4, %v3075_v11, %v9878_v19 }
 0x14f   : > { %v589_v5 = vadd.f32 %v8280_v54, %v10139_v61  ;;  %v653_v8 = vadd.f32 %v8296_v29, %v10139_v61  ;;  %v720_v14 = vmax.f32 %v642_v0, 0.0  ;;  %v704_v21 = vmax.f32 %v578_v37, 0.0  ;;  %13186 = vst [vmem:[#allocation52_spill] sm:$0xff] %v10237_v43 }
 0x150   : > { %v580_v48 = vpop.f32.mrf.mxu0  ;;  %v644_v10 = vpop.f32.mrf.mxu1  ;;  %v10230_v0 = vrot.slane %v3122_v9, 7  ;;  %v10240_v37 = vor.u32 %v3089_v28, %v10205_v51  ;;  %v3140_v28 = vshrl.u32 %v10220_v45, 16 }
 0x151   : > { %v707_v49 = vmax.f32 %v589_v5, 0.0  ;;  %v581_v56 = vadd.f32 %v10139_v61, %v580_v48  ;;  %v723_v54 = vmax.f32 %v653_v8, 0.0  ;;  %v645_v46 = vadd.f32 %v10139_v61, %v644_v10 }
 0x152   : > { %v8283_v29 = vpop.f32.mrf.mxu0  ;;  %v8299_v47 = vpop.f32.mrf.mxu1  ;;  %13187 = vst [vmem:[#allocation53_spill] sm:$0xff] %v10240_v37 }
 0x153   : > { %v7814_v59 = vpack.c.bf16 %v707_v49, %v706_v26  ;;  %v705_v5 = vmax.f32 %v581_v56, 0.0  ;;  %v7854_v3 = vpack.c.bf16 %v723_v54, %v722_v7  ;;  %v721_v8 = vmax.f32 %v645_v46, 0.0 }
 0x154   : > { %v593_v48 = vpop.f32.mrf.mxu0  ;;  %v666_v10 = vadd.f32 %v8299_v47, %v10139_v61  ;;  %v10228_v22 = vpop.f32.mrf.mxu1  ;;  %v602_v2 = vadd.f32 %v8283_v29, %v10139_v61  ;;  %v3093_v7 = vrot.slane %v10205_v51, 4  ;;  %v1158_v26 = vand.u32 15, %v936_v12 }
 0x155   : > { %7967 = vst [vmem:[#allocation2 + $0x18] sm:$0xff] %v7814_v59   ;;  %v7809_v60 = vpack.c.bf16 %v705_v5, %v704_v21  ;;  %7975 = vst [vmem:[#allocation2 + $0x58] sm:$0xff] %v7854_v3   ;;  %v13188_v59 = vsel %vm9580_vm12, %v9608_v34, %v9568_v1  ;;  %v13189_v3 = vmov 0  ;;  %v7849_v6 = vpack.c.bf16 %v721_v8, %v720_v14 }
 0x156   : > { %v8284_v49 = vpop.f32.mrf.mxu0  ;;  %vm10250_vm6 = vcmp.ne.s16.totalorder %v13188_v59, 0  ;;  %v8300_v11 = vpop.f32.mrf.mxu1  ;;  %v594_v9 = vadd.f32 %v10139_v61, %v593_v48  ;;  %v13192_v34 = vsel %vm9580_vm12, %v9643_v53, %v9568_v1  ;;  %v726_v14 = vmax.f32 %v666_v10, 0.0 }
 0x157   : > { %v13190_v3 = vsel %vm10250_vm6, 4294967295, %v13189_v3  ;;  %7966 = vst [vmem:[#allocation2 + $0x10] sm:$0xff] %v7809_v60   ;;  %v605_v56 = vadd.f32 %v8284_v49, %v10139_v61  ;;  %vm10263_vm9 = vcmp.ne.s16.totalorder %v13192_v34, 0  ;;  %v669_v51 = vadd.f32 %v8300_v11, %v10139_v61  ;;  %7974 = vst [vmem:[#allocation2 + $0x50] sm:$0xff] %v7849_v6  }
 0x158   : > { %13191 = vst [vmem:[#allocation54_spill] sm:$0xff] %v13190_v3  ;;  %v596_v46 = vpop.f32.mrf.mxu0  ;;  %v13195_v29 = vsel %vm9580_vm12, %v9589_v23, %v9591_v24  ;;  %v10277_v12 = vpop.f32.mrf.mxu1  ;;  %v10280_v53 = vor.u32 %v3107_v40, %v10213_v4  ;;  %v3111_v21 = vrot.slane %v10213_v4, 4  ;;  %v10284_v5 = vor.u32 %v3125_v62, %v10230_v0 }
 0x159   : > { %vm10273_vm10 = vcmp.ne.s16.totalorder %v13195_v29, 0  ;;  %v10292_v24 = vsel %vm2859_vm5, 65537, %v13172_v63  ;;  %v710_v48 = vmax.f32 %v602_v2, 0.0  ;;  %v711_v8 = vmax.f32 %v605_v56, 0.0 }
 0x15a   : > { %13198 = vst [vmem:[#allocation55_spill] sm:$0xff] %v10280_v53  ;;  %13199 = vst [vmem:[#allocation56_spill] sm:$0xff] %v10284_v5  ;;  %v597_v10 = vadd.f32 %v10139_v61, %v596_v46  ;;  %v727_v60 = vmax.f32 %v669_v51, 0.0  ;;  %v8287_v40 = vpop.f32.mrf.mxu0  ;;  %v3129_v49 = vrot.slane %v10230_v0, 4  ;;  %v3142_v4 = vrot.slane %v3140_v28, 7  ;;  %v10301_v29 = vpop.f32.mrf.mxu1  ;;  %v9056_v5 = vld [vmem:[#allocation8 + $0xb8] sm:$0xff]  }
 0x15b   : > { %v3143_v62 = vshll.u32 %v10220_v45, 16  ;;  %vm10297_vm11 = vcmp.le.s32.totalorder %v1158_v26, 14  ;;  %v708_v6 = vmax.f32 %v594_v9, 0.0  ;;  %v7824_v58 = vpack.c.bf16 %v711_v8, %v710_v48 }
 0x15c   : > { %v709_v11 = vmax.f32 %v597_v10, 0.0  ;;  %v7864_v34 = vpack.c.bf16 %v727_v60, %v726_v14  ;;  %v609_v2 = vpop.f32.mrf.mxu0  ;;  %v10310_v45 = vsel %vm9858_vm4, %v3093_v7, %v9878_v19  ;;  %v3158_v28 = vshrl.u32 %v10292_v24, 16  ;;  %v1390_v14 = vld [vmem:[#allocation2 + $0x18] sm:$0xf]  ;;  %v10318_v51 = vld [vmem:[#allocation2 + $0x1c] sm:$0xf]  ;;  %vm2861_vm13 = vmpackc.low %vm10297_vm11, %vm10297_vm11 }
 0x15d   : > { %13202 = vst [vmem:[#allocation57_spill] sm:$0xff] %v10310_v45  ;;  %7969 = vst [vmem:[#allocation2 + $0x28] sm:$0xff] %v7824_v58   ;;  %v618_v9 = vadd.f32 %v8287_v40, %v10139_v61  ;;  %v10323_v7 = vsel %vm9858_vm4, %v3111_v21, %v9878_v19  ;;  %v10335_v60 = vsel %vm9858_vm4, %v3129_v49, %v9878_v19  ;;  %v3147_v21 = vrot.slane %v3142_v4, 4 }
 0x15e   : > { %v7819_v26 = vpack.c.bf16 %v709_v11, %v708_v6  ;;  %7977 = vst [vmem:[#allocation2 + $0x68] sm:$0xff] %v7864_v34   ;;  %13203 = vst [vmem:[#allocation58_spill] sm:$0xff] %v10323_v7  ;;  %v8288_v48 = vpop.f32.mrf.mxu0  ;;  %v1388_v8 = vld [vmem:[#allocation2 + $0x10] sm:$0xf]  ;;  %v1389_v10 = vld [vmem:[#allocation2 + $0x14] sm:$0xf]  ;;  %v10337_v40 = vor.u32 %v3143_v62, %v3142_v4  ;;  %v610_v58 = vadd.f32 %v10139_v61, %v609_v2 }
 0x15f   : > { %13204 = vst [vmem:[#allocation59_spill] sm:$0xff] %v10335_v60  ;;  %v3161_v6 = vshll.u32 %v10292_v24, 16  ;;  %v621_v11 = vadd.f32 %v8288_v48, %v10139_v61  ;;  %v1904_v34 = vsel %vm10250_vm6, %v1388_v8, 0  ;;  %v7472_v46 = vcombine.low %v1388_v8, %v1389_v10  ;;  %v8932_v4 = vld [vmem:[#allocation8 + $0xb0] sm:$0xff]   ;;  %v10353_v24 = vpop.f32.mrf.mxu1 }
 0x160   : > { %13205 = vst [vmem:[#allocation60_spill] sm:$0xff] %v10337_v40  ;;  %7968 = vst [vmem:[#allocation2 + $0x20] sm:$0xff] %v7819_v26   ;;  %v13206_v49 = vsel %vm9580_vm12, %v9589_v23, %v9602_v32  ;;  %v13207_v62 = vmov 0  ;;  %v612_v26 = vpop.f32.mrf.mxu0  ;;  %v7473_v2 = vcombine.low %v1390_v14, %v10318_v51  ;;  %v10358_v48 = vadd.f32 %v10139_v61, %v10228_v22 }
 0x161   : > { %vm10349_vm0 = vcmp.ne.s16.totalorder %v13206_v49, 0  ;;  %v10360_v8 = vrot.slane %v3158_v28, 7  ;;  %v10368_v32 = vsel %vm2861_vm13, 65537, %v13172_v63  ;;  %v714_v49 = vmax.f32 %v618_v9, 0.0  ;;  %8326 = vmatmul.mubr.bf16.vlgmr.msra.gmra.mxu1 %v7472_v46 }
 0x162   : > { %v13208_v62 = vsel %vm10349_vm0, 4294967295, %v13207_v62  ;;  %13210 = vst [vmem:[#allocation62_spill] sm:$0xff] %v10368_v32  ;;  %v715_v0 = vmax.f32 %v621_v11, 0.0  ;;  %v613_v56 = vadd.f32 %v10139_v61, %v612_v26  ;;  %v1905_v60 = vsel %vm10273_vm10, %v1389_v10, 0  ;;  %8406 = vmatpush3.bf16.msra.mxu1 %v9056_v5  ;;  %v8291_v59 = vpop.f32.mrf.mxu0  ;;  %8329 = vmatprep.mubr.bf16.mxu1 %v7473_v2  ;;  %v3744_v5 = vld [vmem:[#allocation2 + $0x1c] sm:$0xf]  ;;  %v10392_v26 = vpop.f32.mrf.mxu1 }
 0x163   : > { %13209 = vst [vmem:[#allocation61_spill] sm:$0xff] %v13208_v62  ;;  %v13211_v22 = vsel %vm9635_vm3, %v9543_v41, 0  ;;  %v1906_v63 = vsel %vm10263_vm9, %v1390_v14, 0  ;;  %v10388_v46 = vsel %vm9858_vm4, %v3147_v21, %v9878_v19  ;;  %v712_v41 = vmax.f32 %v610_v58, 0.0  ;;  %8407 = vmatprep.subr.bf16.mxu1 %v8932_v4  ;;  %v8935_v14 = vld [vmem:[#allocation8 + $0xa8] sm:$0xff]  }
 0x164   : > { %v10377_v28 = vcombine.low %v13211_v22, %v1904_v34  ;;  %13212 = vst [vmem:[#allocation63_spill] sm:$0xff] %v10388_v46  ;;  %v7834_v10 = vpack.c.bf16 %v715_v0, %v714_v49  ;;  %v713_v11 = vmax.f32 %v613_v56, 0.0  ;;  %v10390_v34 = vcombine.low %v1905_v60, %v1906_v63  ;;  %v625_v2 = vpop.f32.mrf.mxu0  ;;  %v10407_v49 = vld [vmem:[#allocation2 + $0x10] sm:$0xf]  ;;  %v10409_v63 = vld [vmem:[#allocation2 + $0x14] sm:$0xf]  ;;  %v676_v40 = vpop.f32.mrf.mxu1 }
 0x165   : > { %v13213_v9 = vsel %vm9580_vm12, %v9645_v55, %v9568_v1  ;;  %v13214_v21 = vmov 0  ;;  %v634_v22 = vadd.f32 %v8291_v59, %v10139_v61  ;;  %v5229_v46 = vld [vmem:[#allocation2 + $0x28] sm:$0xf]  ;;  %v10414_v55 = vadd.f32 %v10139_v61, %v10277_v12 }
 0x166   : > { %vm10400_vm1 = vcmp.ne.s16.totalorder %v13213_v9, 0  ;;  %7971 = vst [vmem:[#allocation2 + $0x38] sm:$0xff] %v7834_v10   ;;  %v7829_v58 = vpack.c.bf16 %v713_v11, %v712_v41  ;;  %v10417_v9 = vor.u32 %v3161_v6, %v10360_v8  ;;  %v3777_v10 = vsel %vm10273_vm10, %v3744_v5, 0  ;;  %v8292_v41 = vpop.f32.mrf.mxu0  ;;  %8408 = vmatpush3.bf16.msra.mxu1 %v8932_v4 }
 0x167   : > { %v13215_v21 = vsel %vm10400_vm1, 4294967295, %v13214_v21  ;;  %v3745_v0 = vld [vmem:[#allocation2 + $0x20] sm:$0xf]  ;;  %v13216_v11 = vsel %vm9580_vm12, %v9589_v23, %v9680_v13  ;;  %v13217_v59 = vmov 0  ;;  %v2365_v12 = vshrl.u32 %v10377_v28, 16  ;;  %8409 = vmatprep.subr.bf16.mxu1 %v8935_v14 }
 0x168   : > { %vm10426_vm5 = vcmp.ne.s16.totalorder %v13216_v11, 0  ;;  %v2368_v60 = vshll.u32 %v10377_v28, 16  ;;  %v13219_v6 = vsel %vm9580_vm12, %v9728_v57, %v9568_v1  ;;  %v13220_v5 = vmov 0  ;;  %v8938_v11 = vld [vmem:[#allocation8 + $0xa0] sm:$0xff]   ;;  %7970 = vst [vmem:[#allocation2 + $0x30] sm:$0xff] %v7829_v58   ;;  %v628_v45 = vpop.f32.mrf.mxu0 }
 0x169   : > { %v13218_v59 = vsel %vm10426_vm5, 4294967295, %v13217_v59  ;;  %vm10437_vm11 = vcmp.ne.s16.totalorder %v13219_v6, 0  ;;  %v10443_v13 = vadd.f32 %v10301_v29, %v10139_v61  ;;  %v2374_v56 = vshrl.u32 %v10390_v34, 16  ;;  %v5228_v28 = vld [vmem:[#allocation2 + $0x24] sm:$0xf] }
 0x16a   : > { %v13221_v5 = vsel %vm10437_vm11, 4294967295, %v13220_v5  ;;  %v3778_v4 = vsel %vm10263_vm9, %v3745_v0, 0  ;;  %v626_v32 = vadd.f32 %v10139_v61, %v625_v2  ;;  %v637_v57 = vadd.f32 %v8292_v41, %v10139_v61  ;;  %v1392_v6 = vld [vmem:[#allocation2 + $0x20] sm:$0xf]  ;;  %v10457_v0 = vld [vmem:[#allocation2 + $0x24] sm:$0xf]  ;;  %8410 = vmatpush3.bf16.msra.mxu1 %v8935_v14 }
 0x16b   : > { %v2377_v7 = vshll.u32 %v10390_v34, 16  ;;  %v10451_v53 = vcombine.low %v3777_v10, %v3778_v4  ;;  %v5261_v29 = vsel %vm10273_vm10, %v5228_v28, 0  ;;  %v5262_v58 = vsel %vm10263_vm9, %v5229_v46, 0  ;;  %v8941_v10 = vld [vmem:[#allocation8 + $0x98] sm:$0xff]   ;;  %v8307_v46 = vpop.f32.mrf.mxu1  ;;  %8411 = vmatprep.subr.bf16.mxu1 %v8938_v11 }
 0x16c   : > { %v718_v37 = vmax.f32 %v634_v22, 0.0  ;;  %v10459_v2 = vcombine.low %v5261_v29, %v5262_v58  ;;  %v719_v41 = vmax.f32 %v637_v57, 0.0  ;;  %v629_v43 = vadd.f32 %v10139_v61, %v628_v45  ;;  %v10480_v22 = vld [vmem:[#allocation2 + $0x24] sm:$0xf]  ;;  %v10483_v29 = vld [vmem:[#allocation2 + $0x28] sm:$0xf] }
 0x16d   : > { %13222 = vst [vmem:[#allocation64_spill] sm:$0xff] %v10451_v53  ;;  %v13224_v34 = vsel %vm9580_vm12, %v9589_v23, %v9716_v44  ;;  %v13225_v47 = vmov 0  ;;  %v1907_v45 = vsel %vm10349_vm0, %v10318_v51, 0  ;;  %v7474_v44 = vcombine.low %v1392_v6, %v10457_v0  ;;  %v10485_v58 = vld [vmem:[#allocation2 + $0x2c] sm:$0xf] }
 0x16e   : > { %13223 = vst [vmem:[#allocation65_spill] sm:$0xff] %v10459_v2  ;;  %vm10467_vm13 = vcmp.ne.s16.totalorder %v13224_v34, 0  ;;  %v716_v4 = vmax.f32 %v626_v32, 0.0  ;;  %v7844_v28 = vpack.c.bf16 %v719_v41, %v718_v37  ;;  %v717_v57 = vmax.f32 %v629_v43, 0.0  ;;  %v5233_v14 = vld [vmem:[#allocation2 + $0x38] sm:$0xf]  ;;  %8412 = vmatpush3.bf16.msra.mxu1 %v8938_v11 }
 0x16f   : > { %v13226_v47 = vsel %vm10467_vm13, 4294967295, %v13225_v47  ;;  %v10489_v34 = vadd.f32 %v10139_v61, %v10353_v24  ;;  %8330 = vmatmul.mubr.bf16.gmra.mxu1 %v7474_v44  ;;  %v2367_v51 = vrot.slane %v2365_v12, 3  ;;  %v2370_v54 = vrot.slane %v2368_v60, 4  ;;  %v10516_v44 = vld [vmem:[#allocation2 + $0x2c] sm:$0xf]  ;;  %8413 = vmatprep.subr.bf16.mxu1 %v8941_v10 }
 0x170   : > { %13227 = vst [vmem:[#allocation66_spill] sm:$0xff] %v13226_v47  ;;  %v725_v53 = vmax.f32 %v10414_v55, 0.0  ;;  %v685_v37 = vadd.f32 %v10392_v26, %v10139_v61  ;;  %v13228_v43 = vsel %vm9580_vm12, %v9756_v30, %v9568_v1  ;;  %v13229_v32 = vmov 0  ;;  %7973 = vst [vmem:[#allocation2 + $0x48] sm:$0xff] %v7844_v28   ;;  %v10505_v55 = vld [vmem:[#allocation2 + $0x28] sm:$0xf] }
 0x171   : > { %vm10499_vm9 = vcmp.ne.s16.totalorder %v13228_v43, 0  ;;  %v2376_v24 = vrot.slane %v2374_v56, 3  ;;  %v2379_v41 = vrot.slane %v2377_v7, 4  ;;  %v7839_v12 = vpack.c.bf16 %v717_v57, %v716_v4  ;;  %v5232_v56 = vld [vmem:[#allocation2 + $0x34] sm:$0xf] }
 0x172   : > { %v13230_v32 = vsel %vm10499_vm9, 4294967295, %v13229_v32  ;;  %v1908_v60 = vsel %vm10400_vm1, %v1392_v6, 0  ;;  %v13232_v26 = vsel %vm9580_vm12, %v9589_v23, %v9713_v38  ;;  %v13233_v30 = vmov 0  ;;  %8414 = vmatpush3.bf16.msra.mxu1 %v8941_v10 }
 0x173   : > { %13231 = vst [vmem:[#allocation67_spill] sm:$0xff] %v13230_v32  ;;  %vm10512_vm10 = vcmp.ne.s16.totalorder %v13232_v26, 0  ;;  %v2371_v7 = vor.u32 %v2370_v54, %v2367_v51  ;;  %v13236_v4 = vmax.f32 %v10358_v48, 0.0  ;;  %v7475_v6 = vcombine.low %v10483_v29, %v10485_v58  ;;  %7972 = vst [vmem:[#allocation2 + $0x40] sm:$0xff] %v7839_v12   ;;  %v689_v54 = vpop.f32.mrf.mxu1  ;;  %v8944_v51 = vld [vmem:[#allocation8 + $0x90] sm:$0xff]  }
 0x174   : > { %v13234_v30 = vsel %vm10512_vm10, 4294967295, %v13233_v30  ;;  %v10523_v57 = vadd.f32 %v10139_v61, %v676_v40  ;;  %v1909_v43 = vsel %vm10426_vm5, %v10457_v0, 0  ;;  %v5265_v48 = vsel %vm10426_vm5, %v5232_v56, 0  ;;  %v1396_v56 = vld [vmem:[#allocation2 + $0x30] sm:$0xf]  ;;  %8415 = vmatprep.subr.bf16.mxu1 %v8944_v51  ;;  %v13421_v3 = vld [vmem:[#allocation64_spill] sm:$0xff] }
 0x175   : > { %13235 = vst [vmem:[#allocation68_spill] sm:$0xff] %v13234_v30  ;;  %v7859_v28 = vpack.c.bf16 %v725_v53, %v13236_v4  ;;  %v5266_v53 = vsel %vm10437_vm11, %v5233_v14, 0  ;;  %v13237_v40 = vsel %vm9580_vm12, %v9758_v33, %v9568_v1  ;;  %v13238_v11 = vmov 0  ;;  %8333 = vmatprep.mubr.bf16.mxu1 %v7475_v6  ;;  %v10553_v4 = vld [vmem:[#allocation2 + $0x34] sm:$0xf] }
 0x176   : > { %vm10540_vm14 = vcmp.ne.s16.totalorder %v13237_v40, 0  ;;  %v7498_v12 = vcombine.low %v1907_v45, %v1908_v60  ;;  %v13240_v14 = vor.u32 %v9699_v27, %v9689_v20  ;;  %v10551_v33 = vcombine.low %v5265_v48, %v5266_v53  ;;  %v10589_v53 = vld [vmem:[#allocation8 + $0x88] sm:$0xff]   ;;  %8416 = vmatpush3.bf16.msra.mxu1 %v8944_v51 }
 0x177   : > { %v13239_v11 = vsel %vm10540_vm14, 4294967295, %v13238_v11  ;;  %7976 = vst [vmem:[#allocation2 + $0x60] sm:$0xff] %v7859_v28   ;;  %v10558_v60 = vor.u32 %v2379_v41, %v2376_v24  ;;  %v730_v40 = vmax.f32 %v10443_v13, 0.0  ;;  %v731_v38 = vmax.f32 %v685_v37, 0.0  ;;  %v10570_v28 = vld [vmem:[#allocation8 + $0xf0] sm:$0xff]   ;;  %8417 = vmatprep.subr.bf16.mxu1 %v10589_v53 }
 0x178   : > { %v2372_v26 = vsel %vm12879_vm2, %v13240_v14, %v2371_v7  ;;  %13241 = vst [vmem:[#allocation69_spill] sm:$0xff] %v10551_v33  ;;  %v13242_v20 = vsel %vm9580_vm12, %v9589_v23, %v9760_v35  ;;  %v13243_v27 = vmov 0  ;;  %v1910_v24 = vsel %vm10437_vm11, %v10483_v29, 0  ;;  %v10576_v41 = vld [vmem:[#allocation2 + $0x30] sm:$0xf] }
 0x179   : > { %8373 = vmatprep.mubr.bf16.mxu0 %v2372_v26  ;;  %vm10566_vm7 = vcmp.ne.s16.totalorder %v13242_v20, 0  ;;  %v728_v13 = vmax.f32 %v10489_v34, 0.0  ;;  %v7476_v37 = vcombine.low %v1396_v56, %v10553_v4  ;;  %v13246_v35 = vsel %vm9580_vm12, %v9827_v25, %v9568_v1  ;;  %v10591_v14 = vld [vmem:[#allocation2 + $0x34] sm:$0xf]  ;;  %v10595_v26 = vld [vmem:[#allocation2 + $0x38] sm:$0xf] }
 0x17a   : > { %v13244_v27 = vsel %vm10566_vm7, 4294967295, %v13243_v27  ;;  %vm10585_vm2 = vcmp.ne.s16.totalorder %v13246_v35, 0  ;;  %v13247_v48 = vmov 0  ;;  %13249 = vst [vmem:[#allocation71_spill] sm:$0xff] %v10591_v14  ;;  %v2381_v29 = vsel %vm13250_vm8, %v2371_v7, %v10558_v60  ;;  %v10597_v20 = vld [vmem:[#allocation2 + $0x3c] sm:$0xf]  ;;  %v8308_v35 = vpop.f32.mrf.mxu1  ;;  %8418 = vmatpush3.bf16.msra.mxu1 %v10589_v53 }
 0x17b   : > { %13245 = vst [vmem:[#allocation70_spill] sm:$0xff] %v13244_v27  ;;  %v13248_v48 = vsel %vm10585_vm2, 4294967295, %v13247_v48  ;;  %v7874_v34 = vpack.c.bf16 %v731_v38, %v730_v40  ;;  %v10600_v6 = vadd.f32 %v8307_v46, %v10139_v61  ;;  %v10603_v25 = vadd.f32 %v10139_v61, %v689_v54  ;;  %8374 = vmatmul.mubr.bf16.vlgmr.msra.gmra.mxu0 %v2381_v29  ;;  %v10608_v7 = vld [vmem:[#allocation2 + $0x38] sm:$0xf]  ;;  %v5237_v29 = vld [vmem:[#allocation2 + $0x48] sm:$0xf] }
 0x17c   : > { %v1911_v10 = vsel %vm10467_vm13, %v10485_v58, 0  ;;  %8334 = vmatmul.mubr.bf16.gmra.mxu1 %v7476_v37  ;;  %v2383_v38 = vshrl.u32 %v7498_v12, 16  ;;  %v2386_v40 = vshll.u32 %v7498_v12, 16  ;;  %v729_v45 = vmax.f32 %v10523_v57, 0.0  ;;  %v10625_v37 = vld [vmem:[#allocation2 + $0x3c] sm:$0xf]  ;;  %8454 = vmatpush3.bf16.msra.mxu0 %v9765_v36  ;;  %v692_v51 = vpop.f32.mrf.mxu1 }
 0x17d   : > { %v13251_v46 = vsel %vm9580_vm12, %v9589_v23, %v9741_v17  ;;  %v13252_v54 = vmov 0  ;;  %v7499_v0 = vcombine.low %v1909_v43, %v1910_v24  ;;  %7979 = vst [vmem:[#allocation2 + $0x78] sm:$0xff] %v7874_v34   ;;  %v1912_v12 = vsel %vm10499_vm9, %v1396_v56, 0  ;;  %13255 = vst [vmem:[#allocation73_spill] sm:$0xff] %v10625_v37  ;;  %v5236_v17 = vld [vmem:[#allocation2 + $0x44] sm:$0xf]  ;;  %8455 = vmatprep.subr.bf16.mxu0 %v10570_v28 }
 0x17e   : > { %vm10616_vm8 = vcmp.ne.s16.totalorder %v13251_v46, 0  ;;  %v7477_v57 = vcombine.low %v10595_v26, %v10597_v20  ;;  %v2385_v46 = vrot.slane %v2383_v38, 3  ;;  %v2388_v33 = vrot.slane %v2386_v40, 4  ;;  %v8952_v58 = vld [vmem:[#allocation8 + $0xe8] sm:$0xff]   ;;  %v1400_v36 = vld [vmem:[#allocation2 + $0x40] sm:$0xf] }
 0x17f   : > { %v13253_v54 = vsel %vm10616_vm8, 4294967295, %v13252_v54  ;;  %v7869_v43 = vpack.c.bf16 %v729_v45, %v728_v13  ;;  %v701_v24 = vadd.f32 %v8308_v35, %v10139_v61  ;;  %v13256_v34 = vsel %vm9580_vm12, %v9829_v42, %v9568_v1  ;;  %v10681_v14 = vld [vmem:[#allocation2 + $0x44] sm:$0xf]  ;;  %v10754_v27 = vld [vmem:[#allocation2 + $0x50] sm:$0xf] }
 0x180   : > { %13254 = vst [vmem:[#allocation72_spill] sm:$0xff] %v13253_v54  ;;  %vm10636_vm5 = vcmp.ne.s16.totalorder %v13256_v34, 0  ;;  %v13257_v56 = vmov 0  ;;  %v1913_v45 = vsel %vm10512_vm10, %v10553_v4, 0  ;;  %v5269_v13 = vsel %vm10512_vm10, %v5236_v17, 0  ;;  %8337 = vmatprep.mubr.bf16.mxu1 %v7477_v57  ;;  %v8954_v57 = vld [vmem:[#allocation8 + $0x80] sm:$0xff]   ;;  %8456 = vmatpush3.bf16.msra.mxu0 %v10570_v28 }
 0x181   : > { %v13258_v56 = vsel %vm10636_vm5, 4294967295, %v13257_v56  ;;  %v13260_v35 = vsel %vm9580_vm12, %v9589_v23, %v9771_v39  ;;  %v13261_v38 = vmov 0  ;;  %v13264_v4 = vsel %vm9580_vm12, %v9855_v16, %v9568_v1  ;;  %7978 = vst [vmem:[#allocation2 + $0x70] sm:$0xff] %v7869_v43   ;;  %v10700_v43 = vld [vmem:[#allocation2 + $0x44] sm:$0xf]  ;;  %8457 = vmatprep.subr.bf16.mxu0 %v8952_v58  ;;  %8419 = vmatprep.subr.bf16.mxu1 %v8954_v57  ;;  %13289 = vst [vmem:[#allocation81_spill] sm:$0xff] %v10754_v27 }
 0x182   : > { %13259 = vst [vmem:[#allocation74_spill] sm:$0xff] %v13258_v56  ;;  %vm10657_vm11 = vcmp.ne.s16.totalorder %v13260_v35, 0  ;;  %vm10666_vm13 = vcmp.ne.s16.totalorder %v13264_v4, 0  ;;  %v13265_v40 = vmov 0  ;;  %v10671_v17 = vcombine.low %v1911_v10, %v1912_v12  ;;  %v13269_v10 = vld [vmem:[#allocation18_spill] sm:$0xff]  ;;  %13276 = vst [vmem:[#allocation79_spill] sm:$0xff] %v10700_v43  ;;  %8420 = vmatpush3.bf16.msra.mxu1 %v8954_v57 }
 0x183   : > { %v13262_v38 = vsel %vm10657_vm11, 4294967295, %v13261_v38  ;;  %v13266_v40 = vsel %vm10666_vm13, 4294967295, %v13265_v40  ;;  %v2389_v34 = vor.u32 %v2388_v33, %v2385_v46  ;;  %v5270_v35 = vsel %vm10540_vm14, %v5237_v29, 0  ;;  %v8953_v29 = vld [vmem:[#allocation8 + $0xe0] sm:$0xff]   ;;  %v8956_v43 = vld [vmem:[#allocation8 + $0xd8] sm:$0xff]   ;;  %v10780_v57 = vld [vmem:[#allocation8 + $0xd0] sm:$0xff]  }
 0x184   : > { %13263 = vst [vmem:[#allocation75_spill] sm:$0xff] %v13262_v38  ;;  %13267 = vst [vmem:[#allocation76_spill] sm:$0xff] %v13266_v40  ;;  %v10678_v16 = vcombine.low %v5269_v13, %v5270_v35  ;;  %v2392_v4 = vshrl.u32 %v7499_v0, 16  ;;  %v2395_v42 = vshll.u32 %v7499_v0, 16  ;;  %v734_v2 = vmax.f32 %v10600_v6, 0.0  ;;  %8458 = vmatpush3.bf16.msra.mxu0 %v8952_v58 }
 0x185   : > { %v13270_v12 = vsel %vm9580_vm12, %v9589_v23, %v13269_v10  ;;  %v13271_v33 = vmov 0  ;;  %vm13274_vm9 = vsmask.f32 4352  ;;  %v1914_v0 = vsel %vm10540_vm14, %v10595_v26, 0  ;;  %v10698_v6 = vld [vmem:[#allocation2 + $0x40] sm:$0xf]  ;;  %8459 = vmatprep.subr.bf16.mxu0 %v8953_v29 }
 0x186   : > { %13268 = vst [vmem:[#allocation77_spill] sm:$0xff] %v10678_v16  ;;  %vm10688_vm10 = vcmp.ne.s16.totalorder %v13270_v12, 0  ;;  %v2390_v46 = vsel %vm13274_vm9, %v10558_v60, %v2389_v34  ;;  %13275 = vst [vmem:[#allocation78_spill] sm:$0xff] %v10698_v6  ;;  %v735_v13 = vmax.f32 %v701_v24, 0.0  ;;  %v5240_v35 = vld [vmem:[#allocation2 + $0x54] sm:$0xf]  ;;  %v693_v10 = vadd.f32 %v10139_v61, %v692_v51 }
 0x187   : > { %v13272_v33 = vsel %vm10688_vm10, 4294967295, %v13271_v33  ;;  %8377 = vmatprep.mubr.bf16.mxu0 %v2390_v46  ;;  %v2394_v28 = vrot.slane %v2392_v4, 3  ;;  %v2397_v12 = vrot.slane %v2395_v42, 4  ;;  %v1916_v60 = vsel %vm10585_vm2, %v1400_v36, 0  ;;  %v10707_v26 = vld [vmem:[#allocation2 + $0x48] sm:$0xf] }
 0x188   : > { %13273 = vst [vmem:[#allocation18_spill] sm:$0xff] %v13272_v33  ;;  %v7478_v39 = vcombine.low %v1400_v36, %v10681_v14  ;;  %v10709_v16 = vld [vmem:[#allocation8 + $0x138] sm:$0xff]   ;;  %v1915_v61 = vsel %vm10566_vm7, %v10597_v20, 0  ;;  %v7501_v24 = vcombine.low %v1913_v45, %v1914_v0  ;;  %v732_v53 = vmax.f32 %v10603_v25, 0.0  ;;  %v1402_v4 = vld [vmem:[#allocation2 + $0x48] sm:$0xf]  ;;  %8460 = vmatpush3.bf16.msra.mxu0 %v8953_v29 }
 0x189   : > { %v7884_v51 = vpack.c.bf16 %v735_v13, %v734_v2  ;;  %v10715_v42 = vld [vmem:[#allocation2 + $0x4c] sm:$0xf]  ;;  %v13277_v46 = vld [vmem:[#allocation19_spill] sm:$0xff]  ;;  %v13279_v37 = vmov 0  ;;  %v2398_v25 = vor.u32 %v2397_v12, %v2394_v28  ;;  %v2401_v0 = vshrl.u32 %v10671_v17, 16  ;;  %v13283_v13 = vld [vmem:[#allocation20_spill] sm:$0xff]  ;;  %8501 = vmatprep.subr.bf16.mxu1 %v10709_v16  ;;  %8461 = vmatprep.subr.bf16.mxu0 %v8956_v43 }
 0x18a   : > { %v13278_v36 = vsel %vm9580_vm12, %v13277_v46, %v9568_v1  ;;  %8338 = vmatmul.mubr.bf16.gmra.mxu1 %v7478_v39  ;;  %v10732_v45 = vld [vmem:[#allocation2 + $0x4c] sm:$0xf]  ;;  %v13284_v46 = vsel %vm9580_vm12, %v9589_v23, %v13283_v13  ;;  %v1917_v28 = vsel %vm10616_vm8, %v10681_v14, 0  ;;  %v10747_v39 = vcombine.low %v1915_v61, %v1916_v60  ;;  %v5241_v20 = vld [vmem:[#allocation2 + $0x58] sm:$0xf]  ;;  %v13290_v60 = vld [vmem:[#allocation26_spill] sm:$0xff] }
 0x18b   : > { %vm10722_vm9 = vcmp.ne.s16.totalorder %v13278_v36, 0  ;;  %13282 = vst [vmem:[#allocation80_spill] sm:$0xff] %v10732_v45  ;;  %vm10740_vm0 = vcmp.ne.s16.totalorder %v13284_v46, 0  ;;  %v13285_v36 = vmov 0  ;;  %7981 = vst [vmem:[#allocation2 + $0x88] sm:$0xff] %v7884_v51   ;;  %v2404_v12 = vshll.u32 %v10671_v17, 16 }
 0x18c   : > { %v13280_v37 = vsel %vm10722_vm9, 4294967295, %v13279_v37  ;;  %v13286_v36 = vsel %vm10740_vm0, 4294967295, %v13285_v36  ;;  %v733_v2 = vmax.f32 %v693_v10, 0.0  ;;  %vm13288_vm7 = vsmask.f32 4352  ;;  %v13298_v29 = vld [vmem:[#allocation21_spill] sm:$0xff]  ;;  %8462 = vmatpush3.bf16.msra.mxu0 %v8956_v43 }
 0x18d   : > { %13281 = vst [vmem:[#allocation19_spill] sm:$0xff] %v13280_v37  ;;  %13287 = vst [vmem:[#allocation20_spill] sm:$0xff] %v13286_v36  ;;  %v2399_v13 = vsel %vm13288_vm7, %v2389_v34, %v2398_v25  ;;  %v5273_v46 = vsel %vm10616_vm8, %v5240_v35, 0  ;;  %v2403_v58 = vrot.slane %v2401_v0, 3  ;;  %v7479_v51 = vcombine.low %v1402_v4, %v10715_v42  ;;  %v1404_v14 = vld [vmem:[#allocation2 + $0x50] sm:$0xf]  ;;  %8463 = vmatprep.subr.bf16.mxu0 %v10780_v57 }
 0x18e   : > { %v13291_v17 = vsel %vm9580_vm12, %v13290_v60, %v9568_v1  ;;  %8378 = vmatmul.mubr.bf16.gmra.mxu0 %v2399_v13  ;;  %v2406_v35 = vrot.slane %v2404_v12, 4  ;;  %v7879_v61 = vpack.c.bf16 %v733_v2, %v732_v53  ;;  %v10772_v0 = vld [vmem:[#allocation2 + $0x54] sm:$0xf]  ;;  %v1918_v60 = vsel %vm10636_vm5, %v1402_v4, 0  ;;  %v10789_v12 = vld [vmem:[#allocation2 + $0x58] sm:$0xf] }
 0x18f   : > { %vm10761_vm14 = vcmp.ne.s16.totalorder %v13291_v17, 0  ;;  %13294 = vst [vmem:[#allocation26_spill] sm:$0xff] %v10772_v0  ;;  %8341 = vmatprep.mubr.bf16.mxu1 %v7479_v51  ;;  %v5274_v17 = vsel %vm10636_vm5, %v5241_v20, 0  ;;  %v2410_v13 = vshrl.u32 %v7501_v24, 16  ;;  %v2413_v30 = vshll.u32 %v7501_v24, 16  ;;  %13296 = vst [vmem:[#allocation83_spill] sm:$0xff] %v10789_v12 }
 0x190   : > { %v10778_v6 = vld [vmem:[#allocation2 + $0x54] sm:$0xf]  ;;  %v2407_v54 = vor.u32 %v2406_v35, %v2403_v58  ;;  %7980 = vst [vmem:[#allocation2 + $0x80] sm:$0xff] %v7879_v61   ;;  %v1919_v53 = vsel %vm10657_vm11, %v10715_v42, 0  ;;  %v10785_v2 = vcombine.low %v5273_v46, %v5274_v17  ;;  %v1920_v4 = vsel %vm10666_vm13, %v1404_v14, 0  ;;  %v13303_v34 = vld [vmem:[#allocation27_spill] sm:$0xff]  ;;  %8464 = vmatpush3.bf16.msra.mxu0 %v10780_v57 }
 0x191   : > { %v10791_v20 = vld [vmem:[#allocation2 + $0x5c] sm:$0xf]  ;;  %v13299_v24 = vsel %vm9580_vm12, %v9589_v23, %v13298_v29  ;;  %v13300_v58 = vmov 0  ;;  %v7503_v42 = vcombine.low %v1917_v28, %v1918_v60  ;;  %v2412_v46 = vrot.slane %v2410_v13, 3  ;;  %v5244_v61 = vld [vmem:[#allocation2 + $0x64] sm:$0xf] }
 0x192   : > { %13295 = vst [vmem:[#allocation82_spill] sm:$0xff] %v10785_v2  ;;  %13297 = vst [vmem:[#allocation84_spill] sm:$0xff] %v10791_v20  ;;  %vm10798_vm7 = vcmp.ne.s16.totalorder %v13299_v24, 0  ;;  %v2415_v51 = vrot.slane %v2413_v30, 4  ;;  %v7480_v35 = vcombine.low %v1404_v14, %v10778_v6  ;;  %v10803_v17 = vld [vmem:[#allocation2 + $0x5c] sm:$0xf]  ;;  %v13304_v2 = vsel %vm9580_vm12, %v13303_v34, %v9568_v1 }
 0x193   : > { %v13301_v58 = vsel %vm10798_vm7, 4294967295, %v13300_v58  ;;  %vm10810_vm8 = vcmp.ne.s16.totalorder %v13304_v2, 0  ;;  %v13305_v29 = vmov 0  ;;  %vm13308_vm2 = vsmask.f32 4352  ;;  %v13309_v34 = vld [vmem:[#allocation22_spill] sm:$0xff] }
 0x194   : > { %13302 = vst [vmem:[#allocation21_spill] sm:$0xff] %v13301_v58  ;;  %v13306_v29 = vsel %vm10810_vm8, 4294967295, %v13305_v29  ;;  %v2408_v24 = vsel %vm13308_vm2, %v2398_v25, %v2407_v54  ;;  %v1921_v14 = vsel %vm10688_vm10, %v10778_v6, 0  ;;  %v1406_v60 = vld [vmem:[#allocation2 + $0x58] sm:$0xf]  ;;  %v13310_v13 = vsel %vm9580_vm12, %v9589_v23, %v13309_v34  ;;  %8342 = vmatmul.mubr.bf16.gmra.mxu1 %v7480_v35  ;;  %v8959_v20 = vld [vmem:[#allocation8 + $0xc8] sm:$0xff]  }
 0x195   : > { %13307 = vst [vmem:[#allocation27_spill] sm:$0xff] %v13306_v29  ;;  %vm10829_vm1 = vcmp.ne.s16.totalorder %v13310_v13, 0  ;;  %v13311_v25 = vmov 0  ;;  %8381 = vmatprep.mubr.bf16.mxu0 %v2408_v24  ;;  %v2416_v2 = vor.u32 %v2415_v51, %v2412_v46  ;;  %v7504_v30 = vcombine.low %v1919_v53, %v1920_v4  ;;  %v5245_v38 = vld [vmem:[#allocation2 + $0x68] sm:$0xf]  ;;  %v13315_v53 = vld [vmem:[#allocation28_spill] sm:$0xff]  ;;  %8465 = vmatprep.subr.bf16.mxu0 %v8959_v20 }
 0x196   : > { %v13312_v25 = vsel %vm10829_vm1, 4294967295, %v13311_v25  ;;  %v2419_v28 = vshrl.u32 %v10747_v39, 16  ;;  %v2422_v0 = vshll.u32 %v10747_v39, 16  ;;  %v5277_v13 = vsel %vm10688_vm10, %v5244_v61, 0  ;;  %v10844_v51 = vld [vmem:[#allocation2 + $0x60] sm:$0xf]  ;;  %8466 = vmatpush3.bf16.msra.mxu0 %v8959_v20 }
 0x197   : > { %13313 = vst [vmem:[#allocation22_spill] sm:$0xff] %v13312_v25  ;;  %v7481_v46 = vcombine.low %v1406_v60, %v10803_v17  ;;  %13314 = vst [vmem:[#allocation85_spill] sm:$0xff] %v10844_v51  ;;  %v13316_v39 = vsel %vm9580_vm12, %v13315_v53, %v9568_v1  ;;  %v13317_v4 = vmov 0  ;;  %vm13320_vm11 = vsmask.f32 4352  ;;  %v13333_v37 = vld [vmem:[#allocation29_spill] sm:$0xff] }
 0x198   : > { %vm10851_vm2 = vcmp.ne.s16.totalorder %v13316_v39, 0  ;;  %v2417_v35 = vsel %vm13320_vm11, %v2407_v54, %v2416_v2  ;;  %v2421_v24 = vrot.slane %v2419_v28, 3  ;;  %v2424_v34 = vrot.slane %v2422_v0, 4  ;;  %v1408_v6 = vld [vmem:[#allocation2 + $0x60] sm:$0xf]  ;;  %v13321_v0 = vld [vmem:[#allocation25_spill] sm:$0xff] }
 0x199   : > { %v13318_v4 = vsel %vm10851_vm2, 4294967295, %v13317_v4  ;;  %v1922_v61 = vsel %vm10722_vm9, %v1406_v60, 0  ;;  %8382 = vmatmul.mubr.bf16.gmra.mxu0 %v2417_v35  ;;  %v1923_v53 = vsel %vm10740_vm0, %v10803_v17, 0  ;;  %8345 = vmatprep.mubr.bf16.mxu1 %v7481_v46  ;;  %v5278_v43 = vsel %vm10722_vm9, %v5245_v38, 0  ;;  %v10873_v33 = vld [vmem:[#allocation2 + $0x64] sm:$0xf] }
 0x19a   : > { %13319 = vst [vmem:[#allocation28_spill] sm:$0xff] %v13318_v4  ;;  %v2428_v39 = vshrl.u32 %v7503_v42, 16  ;;  %v2431_v54 = vshll.u32 %v7503_v42, 16  ;;  %v13322_v28 = vsel %vm9580_vm12, %v9589_v23, %v13321_v0  ;;  %v13323_v60 = vmov 0  ;;  %v1409_v40 = vld [vmem:[#allocation2 + $0x64] sm:$0xf] }
 0x19b   : > { %vm10869_vm11 = vcmp.ne.s16.totalorder %v13322_v28, 0  ;;  %v2425_v35 = vor.u32 %v2424_v34, %v2421_v24  ;;  %v10875_v12 = vcombine.low %v5277_v13, %v5278_v43  ;;  %v2437_v17 = vshrl.u32 %v7504_v30, 16  ;;  %v13327_v38 = vld [vmem:[#allocation30_spill] sm:$0xff]  ;;  %v10886_v0 = vld [vmem:[#allocation8 + $0xc0] sm:$0xff]   ;;  %v1410_v27 = vld [vmem:[#allocation2 + $0x68] sm:$0xf] }
 0x19c   : > { %v13324_v60 = vsel %vm10869_vm11, 4294967295, %v13323_v60  ;;  %v2440_v46 = vshll.u32 %v7504_v30, 16  ;;  %v13328_v42 = vsel %vm9580_vm12, %v13327_v38, %v9568_v1  ;;  %v13329_v45 = vmov 0  ;;  %v5248_v43 = vld [vmem:[#allocation2 + $0x74] sm:$0xf]  ;;  %8467 = vmatprep.subr.bf16.mxu0 %v10886_v0 }
 0x19d   : > { %13325 = vst [vmem:[#allocation25_spill] sm:$0xff] %v13324_v60  ;;  %13326 = vst [vmem:[#allocation86_spill] sm:$0xff] %v10875_v12  ;;  %vm10882_vm10 = vcmp.ne.s16.totalorder %v13328_v42, 0  ;;  %v2430_v13 = vrot.slane %v2428_v39, 3  ;;  %v2433_v24 = vrot.slane %v2431_v54, 4  ;;  %v1924_v30 = vsel %vm10761_vm14, %v1408_v6, 0  ;;  %8468 = vmatpush3.bf16.msra.mxu0 %v10886_v0 }
 0x19e   : > { %v13330_v45 = vsel %vm10882_vm10, 4294967295, %v13329_v45  ;;  %vm13332_vm13 = vsmask.f32 4352  ;;  %v2439_v38 = vrot.slane %v2437_v17, 3  ;;  %v2442_v42 = vrot.slane %v2440_v46, 4  ;;  %8549 = vmatprep.subr.bf16.mxu0 %v10943_v15  ;;  %v13354_v0 = vld [vmem:[#allocation32_spill] sm:$0xff] }
 0x19f   : > { %13331 = vst [vmem:[#allocation30_spill] sm:$0xff] %v13330_v45  ;;  %v2426_v28 = vsel %vm13332_vm13, %v2416_v2, %v2425_v35  ;;  %v7482_v12 = vcombine.low %v1408_v6, %v1409_v40  ;;  %v1411_v56 = vld [vmem:[#allocation2 + $0x6c] sm:$0xf]  ;;  %v13334_v34 = vsel %vm9580_vm12, %v9589_v23, %v13333_v37  ;;  %v13335_v39 = vmov 0  ;;  %v10904_v51 = vld [vmem:[#allocation2 + $0x68] sm:$0xf] }
 0x1a0   : > { %vm10900_vm9 = vcmp.ne.s16.totalorder %v13334_v34, 0  ;;  %8385 = vmatprep.mubr.bf16.mxu0 %v2426_v28  ;;  %v7505_v54 = vcombine.low %v1921_v14, %v1922_v61  ;;  %v2434_v57 = vor.u32 %v2433_v24, %v2430_v13  ;;  %v10906_v2 = vld [vmem:[#allocation2 + $0x6c] sm:$0xf]  ;;  %v5249_v6 = vld [vmem:[#allocation2 + $0x78] sm:$0xf]  ;;  %v13339_v37 = vrot.slane %v10360_v8, 4 }
 0x1a1   : > { %v13336_v39 = vsel %vm10900_vm9, 4294967295, %v13335_v39  ;;  %13338 = vst [vmem:[#allocation87_spill] sm:$0xff] %v10906_v2  ;;  %v1925_v61 = vsel %vm10798_vm7, %v1409_v40, 0  ;;  %8346 = vmatmul.mubr.bf16.gmra.mxu1 %v7482_v12  ;;  %v7506_v34 = vcombine.low %v1923_v53, %v1924_v30  ;;  %v5281_v13 = vsel %vm10798_vm7, %v5248_v43, 0  ;;  %v10926_v24 = vld [vmem:[#allocation2 + $0x70] sm:$0xf] }
 0x1a2   : > { %13337 = vst [vmem:[#allocation29_spill] sm:$0xff] %v13336_v39  ;;  %v10917_v46 = vsel %vm9858_vm4, %v13339_v37, %v9878_v19  ;;  %13341 = vst [vmem:[#allocation89_spill] sm:$0xff] %v10926_v24  ;;  %v13342_v8 = vld [vmem:[#allocation33_spill] sm:$0xff]  ;;  %v13344_v37 = vmov 0  ;;  %vm13347_vm0 = vsmask.f32 4352  ;;  %v2443_v17 = vor.u32 %v2442_v42, %v2439_v38 }
 0x1a3   : > { %13340 = vst [vmem:[#allocation88_spill] sm:$0xff] %v10917_v46  ;;  %v13343_v28 = vsel %vm9580_vm12, %v13342_v8, %v9568_v1  ;;  %v2435_v14 = vsel %vm13347_vm0, %v2425_v35, %v2434_v57  ;;  %v1926_v40 = vsel %vm10810_vm8, %v1410_v27, 0  ;;  %v7483_v12 = vcombine.low %v1410_v27, %v1411_v56  ;;  %v10940_v53 = vld [vmem:[#allocation2 + $0x74] sm:$0xf]  ;;  %v1412_v30 = vld [vmem:[#allocation2 + $0x70] sm:$0xf]  ;;  %vm13349_vm12 = vmmov %vm13347_vm0 }
 0x1a4   : > { %vm10933_vm13 = vcmp.ne.s16.totalorder %v13343_v28, 0  ;;  %13348 = vst [vmem:[#allocation90_spill] sm:$0xff] %v10940_v53  ;;  %v1927_v43 = vsel %vm10829_vm1, %v1411_v56, 0  ;;  %v5282_v27 = vsel %vm10810_vm8, %v5249_v6, 0  ;;  %v1413_v38 = vld [vmem:[#allocation2 + $0x74] sm:$0xf]  ;;  %8386 = vmatmul.mubr.bf16.gmra.mxu0 %v2435_v14  ;;  %v2444_v20 = vsel %vm13349_vm12, %v2434_v57, %v2443_v17  ;;  %vm13366_vm5 = vmmov %vm13347_vm0 }
 0x1a5   : > { %v13345_v37 = vsel %vm10933_vm13, 4294967295, %v13344_v37  ;;  %8349 = vmatprep.mubr.bf16.mxu1 %v7483_v12  ;;  %v10957_v42 = vcombine.low %v5281_v13, %v5282_v27  ;;  %v2446_v8 = vshrl.u32 %v7505_v54, 16  ;;  %v2449_v28 = vshll.u32 %v7505_v54, 16  ;;  %v10959_v1 = vld [vmem:[#allocation2 + $0x78] sm:$0xf]  ;;  %8389 = vmatprep.mubr.bf16.mxu0 %v2444_v20  ;;  %v13376_v60 = vld [vmem:[#allocation41_spill] sm:$0xff] }
 0x1a6   : > { %13346 = vst [vmem:[#allocation33_spill] sm:$0xff] %v13345_v37  ;;  %13351 = vst [vmem:[#allocation92_spill] sm:$0xff] %v10959_v1  ;;  %v10961_v35 = vld [vmem:[#allocation2 + $0x7c] sm:$0xf]  ;;  %v5252_v19 = vld [vmem:[#allocation2 + $0x84] sm:$0xf]  ;;  %v7507_v56 = vcombine.low %v1925_v61, %v1926_v40  ;;  %v7484_v20 = vcombine.low %v1412_v30, %v1413_v38 }
 0x1a7   : > { %13350 = vst [vmem:[#allocation91_spill] sm:$0xff] %v10957_v42  ;;  %13352 = vst [vmem:[#allocation93_spill] sm:$0xff] %v10961_v35  ;;  %v2455_v2 = vshrl.u32 %v7506_v34, 16  ;;  %v2458_v6 = vshll.u32 %v7506_v34, 16  ;;  %v1928_v58 = vsel %vm10851_vm2, %v1412_v30, 0  ;;  %v2448_v13 = vrot.slane %v2446_v8, 3 }
 0x1a8   : > { %v1414_v14 = vld [vmem:[#allocation2 + $0x78] sm:$0xf]  ;;  %v2451_v12 = vrot.slane %v2449_v28, 4  ;;  %v1415_v27 = vld [vmem:[#allocation2 + $0x7c] sm:$0xf]  ;;  %v1929_v34 = vsel %vm10869_vm11, %v1413_v38, 0  ;;  %v7508_v29 = vcombine.low %v1927_v43, %v1928_v58 }
 0x1a9   : > { %v2457_v61 = vrot.slane %v2455_v2, 3  ;;  %v2460_v40 = vrot.slane %v2458_v6, 4  ;;  %v5285_v57 = vsel %vm10869_vm11, %v5252_v19, 0  ;;  %v1930_v8 = vsel %vm10882_vm10, %v1414_v14, 0  ;;  %v10979_v28 = vld [vmem:[#allocation2 + $0x80] sm:$0xf]  ;;  %8350 = vmatmul.mubr.bf16.gmra.mxu1 %v7484_v20 }
 0x1aa   : > { %v2452_v42 = vor.u32 %v2451_v12, %v2448_v13  ;;  %13353 = vst [vmem:[#allocation94_spill] sm:$0xff] %v10979_v28  ;;  %v5253_v54 = vld [vmem:[#allocation2 + $0x88] sm:$0xf]  ;;  %v13355_v2 = vld [vmem:[#allocation31_spill] sm:$0xff]  ;;  %v13357_v38 = vmov 0  ;;  %v13360_v58 = vld [vmem:[#allocation36_spill] sm:$0xff] }
 0x1ab   : > { %v13356_v30 = vsel %vm9858_vm4, %v9844_v52, %v13355_v2  ;;  %v13361_v19 = vld [vmem:[#allocation34_spill] sm:$0xff]  ;;  %v13363_v6 = vmov 0  ;;  %v2461_v13 = vor.u32 %v2460_v40, %v2457_v61  ;;  %v1416_v53 = vld [vmem:[#allocation2 + $0x80] sm:$0xf]  ;;  %v11010_v24 = vld [vmem:[#allocation2 + $0x84] sm:$0xf] }
 0x1ac   : > { %vm10987_vm12 = vcmp.ne.s16.totalorder %v13356_v30, 0  ;;  %v13362_v43 = vsel %vm9858_vm4, %v9844_v52, %v13361_v19  ;;  %v7485_v30 = vcombine.low %v1414_v14, %v1415_v27  ;;  %v2453_v25 = vsel %vm13366_vm5, %v2443_v17, %v2452_v42  ;;  %13367 = vst [vmem:[#allocation95_spill] sm:$0xff] %v11010_v24  ;;  %v1417_v40 = vld [vmem:[#allocation2 + $0x84] sm:$0xf]  ;;  %v11022_v35 = vld [vmem:[#allocation2 + $0x88] sm:$0xf] }
 0x1ad   : > { %v13358_v38 = vsel %vm10987_vm12, 4294967295, %v13357_v38  ;;  %vm10997_vm1 = vcmp.ne.s16.totalorder %v13362_v43, 0  ;;  %v1931_v19 = vsel %vm10900_vm9, %v1415_v27, 0  ;;  %v7509_v43 = vcombine.low %v1929_v34, %v1930_v8  ;;  %8390 = vmatmul.mubr.bf16.gmra.mxu0 %v2453_v25  ;;  %v13370_v25 = vld [vmem:[#allocation37_spill] sm:$0xff]  ;;  %v2736_v24 = vld [vmem:[#allocation2 + $0x14] sm:$0xf] }
 0x1ae   : > { %13359 = vst [vmem:[#allocation31_spill] sm:$0xff] %v13358_v38  ;;  %v13364_v6 = vsel %vm10997_vm1, 4294967295, %v13363_v6  ;;  %v5286_v61 = vsel %vm10882_vm10, %v5253_v54, 0  ;;  %v2462_v20 = vsel %vm13347_vm0, %v2452_v42, %v2461_v13  ;;  %8353 = vmatprep.mubr.bf16.mxu1 %v7485_v30  ;;  %v2464_v17 = vshrl.u32 %v7507_v56, 16  ;;  %v2737_v1 = vld [vmem:[#allocation2 + $0x18] sm:$0xf] }
 0x1af   : > { %13365 = vst [vmem:[#allocation34_spill] sm:$0xff] %v13364_v6  ;;  %v11018_v2 = vcombine.low %v5285_v57, %v5286_v61  ;;  %v2467_v12 = vshll.u32 %v7507_v56, 16  ;;  %v2473_v27 = vshrl.u32 %v7508_v29, 16  ;;  %v2476_v34 = vshll.u32 %v7508_v29, 16  ;;  %8393 = vmatprep.mubr.bf16.mxu0 %v2462_v20  ;;  %v2735_v61 = vld [vmem:[#allocation2 + $0x10] sm:$0xf] }
 0x1b0   : > { %v1932_v8 = vsel %vm10933_vm13, %v1416_v53, 0  ;;  %v2466_v54 = vrot.slane %v2464_v17, 3  ;;  %vm13369_vm5 = vcmp.ne.s16.totalorder %v9589_v23, 0  ;;  %v13371_v29 = vld [vmem:[#allocation38_spill] sm:$0xff]  ;;  %v13373_v20 = vmov 0 }
 0x1b1   : > { %13368 = vst [vmem:[#allocation96_spill] sm:$0xff] %v11018_v2  ;;  %v1933_v57 = vsel %vm13369_vm5, %v1417_v40, 0  ;;  %v7510_v30 = vcombine.low %v1931_v19, %v1932_v8  ;;  %v13372_v56 = vsel %vm9858_vm4, %v9844_v52, %v13371_v29  ;;  %v2469_v14 = vrot.slane %v2467_v12, 4  ;;  %v2738_v4 = vld [vmem:[#allocation2 + $0x1c] sm:$0xf]  ;;  %v13377_v12 = vld [vmem:[#allocation40_spill] sm:$0xff] }
 0x1b2   : > { %vm11035_vm10 = vcmp.ne.s16.totalorder %v13372_v56, 0  ;;  %v2475_v42 = vrot.slane %v2473_v27, 3  ;;  %v2478_v17 = vrot.slane %v2476_v34, 4  ;;  %v7511_v2 = vcombine.low %v1933_v57, %v1933_v57 }
 0x1b3   : > { %v13374_v20 = vsel %vm11035_vm10, 4294967295, %v13373_v20  ;;  %v7486_v39 = vcombine.low %v1416_v53, %v1417_v40  ;;  %v2482_v8 = vshrl.u32 %v7509_v43, 16  ;;  %v2485_v23 = vshll.u32 %v7509_v43, 16 }
 0x1b4   : > { %13375 = vst [vmem:[#allocation38_spill] sm:$0xff] %v13374_v20  ;;  %v2470_v28 = vor.u32 %v2469_v14, %v2466_v54  ;;  %v2479_v29 = vor.u32 %v2478_v17, %v2475_v42  ;;  %v2500_v56 = vshrl.u32 %v7511_v2, 16  ;;  %v2503_v45 = vshll.u32 %v7511_v2, 16  ;;  %v2739_v17 = vld [vmem:[#allocation2 + $0x20] sm:$0xf] }
 0x1b5   : > { %v13378_v27 = vsel %vm9858_vm4, %v9844_v52, %v13377_v12  ;;  %v13379_v53 = vmov 0  ;;  %8354 = vmatmul.mubr.bf16.gmra.mxu1 %v7486_v39  ;;  %v2484_v40 = vrot.slane %v2482_v8, 3  ;;  %v2487_v43 = vrot.slane %v2485_v23, 4  ;;  %v2740_v8 = vld [vmem:[#allocation2 + $0x24] sm:$0xf] }
 0x1b6   : > { %vm11048_vm0 = vcmp.ne.s16.totalorder %v13378_v27, 0  ;;  %vm13382_vm5 = vcmp.ne.s16.totalorder %v13354_v0, 0  ;;  %v3220_v2 = vsel %vm10987_vm12, %v2736_v24, 0  ;;  %vm13383_vm11 = vsmask.f32 4352 }
 0x1b7   : > { %v13380_v53 = vsel %vm11048_vm0, 4294967295, %v13379_v53  ;;  %v3219_v14 = vsel %vm13382_vm5, %v2735_v61, 0  ;;  %v2471_v34 = vsel %vm13383_vm11, %v2461_v13, %v2470_v28  ;;  %vm13384_vm9 = vmmov %vm13383_vm11  ;;  %v2491_v57 = vshrl.u32 %v7510_v30, 16  ;;  %v13386_v13 = vld [vmem:[#allocation45_spill] sm:$0xff] }
 0x1b8   : > { %13381 = vst [vmem:[#allocation40_spill] sm:$0xff] %v13380_v53  ;;  %v2480_v42 = vsel %vm13384_vm9, %v2470_v28, %v2479_v29  ;;  %v7521_v54 = vcombine.low %v3219_v14, %v3220_v2  ;;  %v2488_v12 = vor.u32 %v2487_v43, %v2484_v40  ;;  %v2494_v27 = vshll.u32 %v7510_v30, 16  ;;  %8394 = vmatmul.mubr.bf16.gmra.mxu0 %v2471_v34  ;;  %v11064_v43 = vld [vmem:[#allocation2 + $0x18] sm:$0xf] }
 0x1b9   : > { %vm13385_vm13 = vcmp.ne.s16.totalorder %v13360_v58, 0  ;;  %v3222_v23 = vsel %vm10997_vm1, %v2738_v4, 0  ;;  %v2493_v24 = vrot.slane %v2491_v57, 3  ;;  %8397 = vmatprep.mubr.bf16.mxu0 %v2480_v42  ;;  %v2502_v40 = vrot.slane %v2500_v56, 3  ;;  %13387 = vst [vmem:[#allocation97_spill] sm:$0xff] %v11064_v43  ;;  %v13395_v56 = vld [vmem:[#allocation43_spill] sm:$0xff] }
 0x1ba   : > { %v3221_v39 = vsel %vm13385_vm13, %v2737_v1, 0  ;;  %v3359_v61 = vshll.u32 %v7521_v54, 16  ;;  %v3363_v19 = vshrl.u32 %v7521_v54, 16  ;;  %v2489_v28 = vsel %vm13384_vm9, %v2479_v29, %v2488_v12  ;;  %v13389_v54 = vld [vmem:[#allocation42_spill] sm:$0xff]  ;;  %v2742_v58 = vld [vmem:[#allocation2 + $0x2c] sm:$0xf] }
 0x1bb   : > { %v7522_v38 = vcombine.low %v3221_v39, %v3222_v23  ;;  %v2496_v14 = vrot.slane %v2494_v27, 4  ;;  %v2505_v30 = vrot.slane %v2503_v45, 4  ;;  %vm13388_vm13 = vcmp.ne.s16.totalorder %v13370_v25, 0  ;;  %v13394_v45 = vld [vmem:[#allocation47_spill] sm:$0xff] }
 0x1bc   : > { %v3361_v1 = vrot.slane %v3359_v61, 1  ;;  %v3223_v4 = vsel %vm13388_vm13, %v2739_v17, 0  ;;  %v3224_v34 = vsel %vm11035_vm10, %v2740_v8, 0  ;;  %v13390_v42 = vsel %vm9858_vm4, %v9844_v52, %v13389_v54  ;;  %v2741_v61 = vld [vmem:[#allocation2 + $0x28] sm:$0xf]  ;;  %v13400_v54 = vld [vmem:[#allocation35_spill] sm:$0xff]  ;;  %vm13402_vm10 = vmmov %vm13384_vm9 }
 0x1bd   : > { %v3367_v2 = vshll.u32 %v7522_v38, 16  ;;  %vm11075_vm5 = vcmp.ne.s16.totalorder %v13390_v42, 0  ;;  %v13391_v29 = vmov 0  ;;  %v13396_v57 = vsel %vm9858_vm4, %v9844_v52, %v13395_v56 }
 0x1be   : > { %v13392_v29 = vsel %vm11075_vm5, 4294967295, %v13391_v29  ;;  %vm11085_vm13 = vcmp.ne.s16.totalorder %v13396_v57, 0  ;;  %v13397_v17 = vmov 0  ;;  %v2497_v27 = vor.u32 %v2496_v14, %v2493_v24  ;;  %v13404_v14 = vld [vmem:[#allocation39_spill] sm:$0xff] }
 0x1bf   : > { %13393 = vst [vmem:[#allocation42_spill] sm:$0xff] %v13392_v29  ;;  %v13398_v17 = vsel %vm11085_vm13, 4294967295, %v13397_v17  ;;  %v2506_v39 = vor.u32 %v2505_v30, %v2502_v40  ;;  %v7523_v23 = vcombine.low %v3223_v4, %v3224_v34  ;;  %v3371_v8 = vshrl.u32 %v7522_v38, 16  ;;  %v2743_v34 = vld [vmem:[#allocation2 + $0x30] sm:$0xf] }
 0x1c0   : > { %13399 = vst [vmem:[#allocation43_spill] sm:$0xff] %v13398_v17  ;;  %vm13401_vm11 = vsmask.f32 7424  ;;  %v3365_v20 = vor.u32 %v3363_v19, %v3361_v1  ;;  %v3369_v25 = vrot.slane %v3367_v2, 1  ;;  %v3776_v6 = vsel %vm10250_vm6, %v11064_v43, 0  ;;  %v8961_v19 = vld [vmem:[#allocation8 + $0x130] sm:$0xff]   ;;  %8398 = vmatmul.mubr.bf16.gmra.mxu0 %v2489_v28 }
 0x1c1   : > { %v3362_v42 = vsel %vm13401_vm11, %v13400_v54, %v3361_v1  ;;  %v2498_v56 = vsel %vm13384_vm9, %v2488_v12, %v2497_v27  ;;  %v11096_v57 = vsel %vm13402_vm10, %v2497_v27, %v2506_v39  ;;  %v3375_v24 = vshll.u32 %v7523_v23, 16  ;;  %v2747_v43 = vld [vmem:[#allocation2 + $0x40] sm:$0xf] }
 0x1c2   : > { %8421 = vmatprep.mubr.bf16.mxu1 %v3362_v42  ;;  %v13403_v38 = vsel %vm9598_vm15, %v10407_v49, 0  ;;  %v3370_v30 = vsel %vm13401_vm11, %v3365_v20, %v3369_v25  ;;  %v3373_v1 = vor.u32 %v3371_v8, %v3369_v25  ;;  %v13405_v2 = vsel %vm9635_vm3, %v10409_v63, 0  ;;  %v13407_v42 = vld [vmem:[#allocation49_spill] sm:$0xff]  ;;  %v13408_v25 = vld [vmem:[#allocation44_spill] sm:$0xff]  ;;  %8401 = vmatprep.mubr.bf16.mxu0 %v2498_v56 }
 0x1c3   : > { %v7545_v40 = vcombine.low %v13404_v14, %v13403_v38  ;;  %v7546_v4 = vcombine.low %v13405_v2, %v3776_v6  ;;  %vm13406_vm9 = vcmp.ne.s16.totalorder %v13376_v60, 0  ;;  %8422 = vmatmul.mubr.bf16.vlgmr.msra.gmra.mxu1 %v3370_v30  ;;  %v3377_v27 = vrot.slane %v3375_v24, 1  ;;  %v2744_v38 = vld [vmem:[#allocation2 + $0x34] sm:$0xf]  ;;  %v8962_v2 = vld [vmem:[#allocation8 + $0x128] sm:$0xff]  }
 0x1c4   : > { %v3225_v12 = vsel %vm13406_vm9, %v2741_v61, 0  ;;  %v3226_v49 = vsel %vm11048_vm0, %v2742_v58, 0  ;;  %v13409_v20 = vsel %vm9858_vm4, %v9844_v52, %v13408_v25  ;;  %v13410_v63 = vmov 0  ;;  %8502 = vmatpush3.bf16.msra.mxu1 %v10709_v16  ;;  %v2745_v25 = vld [vmem:[#allocation2 + $0x38] sm:$0xf]  ;;  %v13416_v16 = vld [vmem:[#allocation46_spill] sm:$0xff] }
 0x1c5   : > { %v3907_v39 = vshrl.u32 %v7545_v40, 16  ;;  %v3910_v54 = vshll.u32 %v7545_v40, 16  ;;  %vm11118_vm11 = vcmp.ne.s16.totalorder %v13409_v20, 0  ;;  %v3915_v6 = vshrl.u32 %v7546_v4, 16  ;;  %8503 = vmatprep.subr.bf16.mxu1 %v8961_v19  ;;  %v13415_v20 = vld [vmem:[#allocation50_spill] sm:$0xff] }
 0x1c6   : > { %v13411_v63 = vsel %vm11118_vm11, 4294967295, %v13410_v63  ;;  %v3918_v8 = vshll.u32 %v7546_v4, 16  ;;  %v7524_v61 = vcombine.low %v3225_v12, %v3226_v49  ;;  %v3379_v24 = vshrl.u32 %v7523_v23, 16 }
 0x1c7   : > { %13412 = vst [vmem:[#allocation35_spill] sm:$0xff] %v13411_v63  ;;  %vm13413_vm9 = vsmask.f32 7424  ;;  %v3909_v14 = vrot.slane %v3907_v39, 3  ;;  %v3912_v40 = vrot.slane %v3910_v54, 4  ;;  %vm13414_vm10 = vcmp.ne.s16.totalorder %v13386_v13, 0 }
 0x1c8   : > { %v3378_v58 = vsel %vm13413_vm9, %v3373_v1, %v3377_v27  ;;  %v3227_v30 = vsel %vm13414_vm10, %v2743_v34, 0  ;;  %v13417_v28 = vsel %vm9858_vm4, %v9844_v52, %v13416_v16  ;;  %v13418_v23 = vmov 0  ;;  %v2746_v39 = vld [vmem:[#allocation2 + $0x3c] sm:$0xf]  ;;  %8504 = vmatpush3.bf16.msra.mxu1 %v8961_v19  ;;  %8402 = vmatmul.mubr.bf16.gmra.mxu0 %v11096_v57 }
 0x1c9   : > { %vm11132_vm0 = vcmp.ne.s16.totalorder %v13417_v28, 0  ;;  %8425 = vmatprep.mubr.bf16.mxu1 %v3378_v58  ;;  %v3917_v56 = vrot.slane %v3915_v6, 3  ;;  %v3920_v1 = vrot.slane %v3918_v8, 4  ;;  %v3381_v4 = vor.u32 %v3379_v24, %v3377_v27  ;;  %v13422_v58 = vld [vmem:[#allocation51_spill] sm:$0xff]  ;;  %8505 = vmatprep.subr.bf16.mxu1 %v8962_v2  ;;  %v2748_v24 = vld [vmem:[#allocation2 + $0x44] sm:$0xf] }
 0x1ca   : > { %v13419_v23 = vsel %vm11132_vm0, 4294967295, %v13418_v23  ;;  %v3383_v12 = vshll.u32 %v7524_v61, 16  ;;  %v3913_v34 = vor.u32 %v3912_v40, %v3909_v14  ;;  %v3228_v54 = vsel %vm11075_vm5, %v2744_v38, 0  ;;  %v8963_v38 = vld [vmem:[#allocation8 + $0x120] sm:$0xff]  }
 0x1cb   : > { %13420 = vst [vmem:[#allocation39_spill] sm:$0xff] %v13419_v23  ;;  %v3387_v49 = vshrl.u32 %v7524_v61, 16  ;;  %v3924_v13 = vshrl.u32 %v13421_v3, 16  ;;  %v3921_v53 = vor.u32 %v3920_v1, %v3917_v56  ;;  %v7525_v16 = vcombine.low %v3227_v30, %v3228_v54 }
 0x1cc   : > { %v3385_v60 = vrot.slane %v3383_v12, 1  ;;  %v3927_v28 = vshll.u32 %v13421_v3, 16  ;;  %vm13423_vm9 = vnez %v13215_v21  ;;  %vm13425_vm6 = vnez %v13208_v62  ;;  %8506 = vmatpush3.bf16.msra.mxu1 %v8962_v2  ;;  %v13612_v62 = vld [vmem:[#allocation38_spill] sm:$0xff] }
 0x1cd   : > { %v3926_v6 = vrot.slane %v3924_v13, 3  ;;  %v13424_v27 = vsel %vm13423_vm9, %v10505_v55, 0  ;;  %v13426_v8 = vsel %vm13425_vm6, %v10480_v22, 0  ;;  %vm13427_vm5 = vcmp.ne.s16.totalorder %v13394_v45, 0  ;;  %v13430_v22 = vld [vmem:[#allocation48_spill] sm:$0xff]  ;;  %8507 = vmatprep.subr.bf16.mxu1 %v8963_v38 }
 0x1ce   : > { %v7548_v61 = vcombine.low %v13426_v8, %v13424_v27  ;;  %v3229_v19 = vsel %vm13427_vm5, %v2745_v25, 0  ;;  %v3230_v3 = vsel %vm11085_vm13, %v2746_v39, 0  ;;  %vm13428_vm10 = vsmask.f32 4352  ;;  %v13436_v27 = vld [vmem:[#allocation52_spill] sm:$0xff] }
 0x1cf   : > { %v3922_v13 = vsel %vm13428_vm10, %v3913_v34, %v3921_v53  ;;  %vm13429_vm1 = vsmask.f32 7424  ;;  %v3389_v40 = vor.u32 %v3387_v49, %v3385_v60  ;;  %v3391_v55 = vshll.u32 %v7525_v16, 16  ;;  %v2749_v49 = vld [vmem:[#allocation2 + $0x48] sm:$0xf] }
 0x1d0   : > { %v3386_v14 = vsel %vm13429_vm1, %v3381_v4, %v3385_v60  ;;  %v13431_v30 = vsel %vm9858_vm4, %v9844_v52, %v13430_v22  ;;  %v13432_v56 = vmov 0  ;;  %v3929_v25 = vrot.slane %v3927_v28, 4  ;;  %v13437_v28 = vld [vmem:[#allocation53_spill] sm:$0xff]  ;;  %8469 = vmatprep.mubr.bf16.mxu0 %v3922_v13  ;;  %8508 = vmatpush3.bf16.msra.mxu1 %v8963_v38  ;;  %v8965_v38 = vld [vmem:[#allocation8 + $0x110] sm:$0xff]  }
 0x1d1   : > { %vm11160_vm9 = vcmp.ne.s16.totalorder %v13431_v30, 0  ;;  %8426 = vmatmul.mubr.bf16.gmra.mxu1 %v3386_v14  ;;  %v3933_v1 = vshrl.u32 %v7548_v61, 16  ;;  %v3936_v12 = vshll.u32 %v7548_v61, 16  ;;  %v7526_v39 = vcombine.low %v3229_v19, %v3230_v3  ;;  %v2750_v19 = vld [vmem:[#allocation2 + $0x4c] sm:$0xf]  ;;  %v8964_v3 = vld [vmem:[#allocation8 + $0x118] sm:$0xff]  }
 0x1d2   : > { %v13433_v56 = vsel %vm11160_vm9, 4294967295, %v13432_v56  ;;  %v3393_v34 = vrot.slane %v3391_v55, 1  ;;  %v3395_v4 = vshrl.u32 %v7525_v16, 16  ;;  %vm13435_vm1 = vcmp.ne.s16.totalorder %v13407_v42, 0  ;;  %8509 = vmatprep.subr.bf16.mxu1 %v8964_v3 }
 0x1d3   : > { %13434 = vst [vmem:[#allocation44_spill] sm:$0xff] %v13433_v56  ;;  %v3231_v60 = vsel %vm13435_vm1, %v2747_v43, 0  ;;  %v3232_v54 = vsel %vm11118_vm11, %v2748_v24, 0  ;;  %v13438_v8 = vsel %vm9858_vm4, %v9844_v52, %v13437_v28  ;;  %v13439_v61 = vmov 0  ;;  %v13508_v56 = vld [vmem:[#allocation76_spill] sm:$0xff] }
 0x1d4   : > { %vm11175_vm10 = vcmp.ne.s16.totalorder %v13438_v8, 0  ;;  %v3930_v57 = vor.u32 %v3929_v25, %v3926_v6  ;;  %v3935_v2 = vrot.slane %v3933_v1, 3  ;;  %v3938_v16 = vrot.slane %v3936_v12, 4  ;;  %v13451_v12 = vld [vmem:[#allocation71_spill] sm:$0xff]  ;;  %8510 = vmatpush3.bf16.msra.mxu1 %v8964_v3 }
 0x1d5   : > { %v13440_v61 = vsel %vm11175_vm10, 4294967295, %v13439_v61  ;;  %v3399_v43 = vshll.u32 %v7526_v39, 16  ;;  %vm13442_vm1 = vsmask.f32 7424  ;;  %v3397_v14 = vor.u32 %v3395_v4, %v3393_v34  ;;  %8511 = vmatprep.subr.bf16.mxu1 %v8965_v38 }
 0x1d6   : > { %13441 = vst [vmem:[#allocation46_spill] sm:$0xff] %v13440_v61  ;;  %v3394_v24 = vsel %vm13442_vm1, %v3389_v40, %v3393_v34  ;;  %v7527_v55 = vcombine.low %v3231_v60, %v3232_v54  ;;  %v3403_v22 = vshrl.u32 %v7526_v39, 16  ;;  %vm13443_vm5 = vsmask.f32 4352  ;;  %v13457_v54 = vld [vmem:[#allocation55_spill] sm:$0xff] }
 0x1d7   : > { %8429 = vmatprep.mubr.bf16.mxu1 %v3394_v24  ;;  %v3931_v30 = vsel %vm13443_vm5, %v3921_v53, %v3930_v57  ;;  %v3939_v28 = vor.u32 %v3938_v16, %v3935_v2  ;;  %v3401_v8 = vrot.slane %v3399_v43, 1  ;;  %vm13444_vm11 = vnez %v13221_v5  ;;  %v2757_v61 = vld [vmem:[#allocation2 + $0x68] sm:$0xf] }
 0x1d8   : > { %v13445_v6 = vsel %vm13444_vm11, %v10576_v41, 0  ;;  %vm13446_vm13 = vnez %v13218_v59  ;;  %v3407_v1 = vshll.u32 %v7527_v55, 16  ;;  %vm13448_vm1 = vnez %v13230_v32  ;;  %v2751_v59 = vld [vmem:[#allocation2 + $0x50] sm:$0xf]  ;;  %8470 = vmatmul.mubr.bf16.vlgmr.msra.gmra.mxu0 %v3931_v30  ;;  %8512 = vmatpush3.bf16.msra.mxu1 %v8965_v38  ;;  %v13610_v32 = vld [vmem:[#allocation37_spill] sm:$0xff] }
 0x1d9   : > { %v13447_v13 = vsel %vm13446_vm13, %v10516_v44, 0  ;;  %v13449_v40 = vsel %vm13448_vm1, %v10608_v7, 0  ;;  %vm13450_vm6 = vnez %v13226_v47  ;;  %vm13453_vm5 = vcmp.ne.s16.totalorder %v13415_v20, 0  ;;  %v13454_v44 = vld [vmem:[#allocation57_spill] sm:$0xff]  ;;  %8550 = vmatpush3.bf16.msra.mxu0 %v10943_v15 }
 0x1da   : > { %v7549_v25 = vcombine.low %v13447_v13, %v13445_v6  ;;  %v13452_v53 = vsel %vm13450_vm6, %v13451_v12, 0  ;;  %v3233_v5 = vsel %vm13453_vm5, %v2749_v49, 0  ;;  %v3234_v41 = vsel %vm11132_vm0, %v2750_v19, 0  ;;  %v2753_v13 = vld [vmem:[#allocation2 + $0x58] sm:$0xf] }
 0x1db   : > { %v7550_v39 = vcombine.low %v13452_v53, %v13449_v40  ;;  %vm13455_vm11 = vsmask.f32 4352  ;;  %vm13456_vm3 = vsmask.f32 7424  ;;  %v3405_v7 = vor.u32 %v3403_v22, %v3401_v8 }
 0x1dc   : > { %v3940_v34 = vsel %vm13455_vm11, %v3930_v57, %v3939_v28  ;;  %v3402_v4 = vsel %vm13456_vm3, %v3397_v14, %v3401_v8  ;;  %v3942_v60 = vshrl.u32 %v7549_v25, 16  ;;  %v13458_v2 = vsel %vm9858_vm4, %v9844_v52, %v13457_v54  ;;  %v2752_v57 = vld [vmem:[#allocation2 + $0x54] sm:$0xf] }
 0x1dd   : > { %vm11209_vm5 = vcmp.ne.s16.totalorder %v13458_v2, 0  ;;  %v13459_v49 = vmov 0  ;;  %v3409_v16 = vrot.slane %v3407_v1, 1  ;;  %v3945_v43 = vshll.u32 %v7549_v25, 16  ;;  %8430 = vmatmul.mubr.bf16.gmra.mxu1 %v3402_v4  ;;  %v2754_v2 = vld [vmem:[#allocation2 + $0x5c] sm:$0xf]  ;;  %8473 = vmatprep.mubr.bf16.mxu0 %v3940_v34 }
 0x1de   : > { %v13460_v49 = vsel %vm11209_vm5, 4294967295, %v13459_v49  ;;  %v3951_v19 = vshrl.u32 %v7550_v39, 16  ;;  %v3954_v24 = vshll.u32 %v7550_v39, 16  ;;  %v3944_v14 = vrot.slane %v3942_v60, 3  ;;  %v13464_v25 = vld [vmem:[#allocation58_spill] sm:$0xff]  ;;  %v13465_v1 = vld [vmem:[#allocation56_spill] sm:$0xff] }
 0x1df   : > { %13461 = vst [vmem:[#allocation64_spill] sm:$0xff] %v13460_v49  ;;  %v7528_v22 = vcombine.low %v3233_v5, %v3234_v41  ;;  %v3411_v8 = vshrl.u32 %v7527_v55, 16  ;;  %vm13462_vm3 = vcmp.ne.s16.totalorder %v13422_v58, 0  ;;  %vm13463_vm11 = vsmask.f32 7424  ;;  %v8967_v5 = vld [vmem:[#allocation8 + $0x170] sm:$0xff]  }
 0x1e0   : > { %v3235_v6 = vsel %vm13462_vm3, %v2751_v59, 0  ;;  %v3410_v40 = vsel %vm13463_vm11, %v3405_v7, %v3409_v16  ;;  %v3947_v12 = vrot.slane %v3945_v43, 4  ;;  %v3953_v53 = vrot.slane %v3951_v19, 3  ;;  %v8968_v4 = vld [vmem:[#allocation8 + $0x108] sm:$0xff]   ;;  %v13471_v19 = vld [vmem:[#allocation78_spill] sm:$0xff]  ;;  %8551 = vmatprep.subr.bf16.mxu0 %v8967_v5 }
 0x1e1   : > { %v3956_v54 = vrot.slane %v3954_v24, 4  ;;  %v13466_v39 = vsel %vm9858_vm4, %v9844_v52, %v13465_v1  ;;  %v13467_v55 = vmov 0  ;;  %8433 = vmatprep.mubr.bf16.mxu1 %v3410_v40  ;;  %v3413_v30 = vor.u32 %v3411_v8, %v3409_v16  ;;  %v13473_v1 = vld [vmem:[#allocation68_spill] sm:$0xff]  ;;  %8513 = vmatprep.subr.bf16.mxu1 %v8968_v4 }
 0x1e2   : > { %vm11222_vm0 = vcmp.ne.s16.totalorder %v13466_v39, 0  ;;  %v3415_v41 = vshll.u32 %v7528_v22, 16  ;;  %v3236_v59 = vsel %vm11160_vm9, %v2752_v57, 0  ;;  %v3419_v3 = vshrl.u32 %v7528_v22, 16  ;;  %v13475_v39 = vld [vmem:[#allocation73_spill] sm:$0xff]  ;;  %v13479_v22 = vld [vmem:[#allocation70_spill] sm:$0xff]  ;;  %8552 = vmatpush3.bf16.msra.mxu0 %v8967_v5  ;;  %8514 = vmatpush3.bf16.msra.mxu1 %v8968_v4 }
 0x1e3   : > { %v13468_v55 = vsel %vm11222_vm0, 4294967295, %v13467_v55  ;;  %v3948_v7 = vor.u32 %v3947_v12, %v3944_v14  ;;  %v3957_v60 = vor.u32 %v3956_v54, %v3953_v53  ;;  %v7529_v43 = vcombine.low %v3235_v6, %v3236_v59  ;;  %v13481_v14 = vld [vmem:[#allocation79_spill] sm:$0xff]  ;;  %v2758_v5 = vld [vmem:[#allocation2 + $0x6c] sm:$0xf] }
 0x1e4   : > { %13469 = vst [vmem:[#allocation48_spill] sm:$0xff] %v13468_v55  ;;  %vm13470_vm3 = vnez %v13239_v11  ;;  %vm13474_vm11 = vnez %v13473_v1  ;;  %v3417_v16 = vrot.slane %v3415_v41, 1  ;;  %vm13477_vm13 = vnez %v13248_v48  ;;  %v13484_v12 = vld [vmem:[#allocation59_spill] sm:$0xff]  ;;  %v2755_v41 = vld [vmem:[#allocation2 + $0x60] sm:$0xf] }
 0x1e5   : > { %v13472_v24 = vsel %vm13470_vm3, %v13471_v19, 0  ;;  %v13476_v58 = vsel %vm13474_vm11, %v13475_v39, 0  ;;  %v13478_v57 = vsel %vm13477_vm13, %v10707_v26, 0  ;;  %vm13480_vm9 = vnez %v13479_v22  ;;  %v2756_v1 = vld [vmem:[#allocation2 + $0x64] sm:$0xf] }
 0x1e6   : > { %v7551_v34 = vcombine.low %v13476_v58, %v13472_v24  ;;  %v13482_v8 = vsel %vm13480_vm9, %v13481_v14, 0  ;;  %vm13483_vm1 = vcmp.ne.s16.totalorder %v13436_v27, 0  ;;  %v3238_v40 = vsel %vm11175_vm10, %v2754_v2, 0  ;;  %v13488_v2 = vld [vmem:[#allocation60_spill] sm:$0xff]  ;;  %v8969_v14 = vld [vmem:[#allocation8 + $0x168] sm:$0xff]  }
 0x1e7   : > { %v7552_v6 = vcombine.low %v13482_v8, %v13478_v57  ;;  %v3237_v11 = vsel %vm13483_vm1, %v2753_v13, 0  ;;  %vm13485_vm11 = vsmask.f32 4352  ;;  %v3423_v26 = vshll.u32 %v7529_v43, 16  ;;  %v13504_v27 = vld [vmem:[#allocation72_spill] sm:$0xff]  ;;  %8553 = vmatprep.subr.bf16.mxu0 %v8969_v14 }
 0x1e8   : > { %v3949_v58 = vsel %vm13485_vm11, %v3939_v28, %v3948_v7  ;;  %vm13486_vm6 = vmmov %vm13485_vm11  ;;  %v3960_v54 = vshrl.u32 %v7551_v34, 16  ;;  %vm13487_vm13 = vsmask.f32 7424  ;;  %v3421_v19 = vor.u32 %v3419_v3, %v3417_v16  ;;  %8554 = vmatpush3.bf16.msra.mxu0 %v8969_v14 }
 0x1e9   : > { %v3958_v53 = vsel %vm13486_vm6, %v3948_v7, %v3957_v60  ;;  %v3418_v59 = vsel %vm13487_vm13, %v3413_v30, %v3417_v16  ;;  %v3963_v13 = vshll.u32 %v7551_v34, 16  ;;  %v3969_v24 = vshrl.u32 %v7552_v6, 16  ;;  %v8971_v30 = vld [vmem:[#allocation8 + $0x100] sm:$0xff]   ;;  %8474 = vmatmul.mubr.bf16.gmra.mxu0 %v3949_v58  ;;  %vm13499_vm3 = vmmov %vm13487_vm13 }
 0x1ea   : > { %v13489_v15 = vsel %vm9858_vm4, %v9844_v52, %v13488_v2  ;;  %v13490_v28 = vmov 0  ;;  %v3425_v7 = vrot.slane %v3423_v26, 1  ;;  %v3962_v39 = vrot.slane %v3960_v54, 3  ;;  %8434 = vmatmul.mubr.bf16.gmra.mxu1 %v3418_v59  ;;  %v13494_v2 = vld [vmem:[#allocation63_spill] sm:$0xff]  ;;  %8477 = vmatprep.mubr.bf16.mxu0 %v3958_v53 }
 0x1eb   : > { %vm11258_vm1 = vcmp.ne.s16.totalorder %v13489_v15, 0  ;;  %v3972_v38 = vshll.u32 %v7552_v6, 16  ;;  %v7530_v57 = vcombine.low %v3237_v11, %v3238_v40  ;;  %v3965_v3 = vrot.slane %v3963_v13, 4  ;;  %v11277_v15 = vld [vmem:[#allocation8 + $0x1b8] sm:$0xff]   ;;  %8515 = vmatprep.subr.bf16.mxu1 %v8971_v30 }
 0x1ec   : > { %v13491_v28 = vsel %vm11258_vm1, 4294967295, %v13490_v28  ;;  %v3971_v34 = vrot.slane %v3969_v24, 3  ;;  %v3427_v16 = vshrl.u32 %v7529_v43, 16  ;;  %vm13493_vm6 = vcmp.ne.s16.totalorder %v13454_v44, 0  ;;  %v13500_v44 = vld [vmem:[#allocation74_spill] sm:$0xff]  ;;  %v13510_v53 = vld [vmem:[#allocation83_spill] sm:$0xff]  ;;  %8516 = vmatpush3.bf16.msra.mxu1 %v8971_v30 }
 0x1ed   : > { %13492 = vst [vmem:[#allocation53_spill] sm:$0xff] %v13491_v28  ;;  %v3239_v8 = vsel %vm13493_vm6, %v2755_v41, 0  ;;  %v13495_v26 = vsel %vm9858_vm4, %v9844_v52, %v10417_v9  ;;  %v13496_v6 = vmov 0  ;;  %v3426_v11 = vsel %vm13499_vm3, %v3421_v19, %v3425_v7  ;;  %v8970_v41 = vld [vmem:[#allocation8 + $0x160] sm:$0xff]   ;;  %v13502_v19 = vld [vmem:[#allocation81_spill] sm:$0xff]  ;;  %8597 = vmatprep.subr.bf16.mxu1 %v11277_v15 }
 0x1ee   : > { %vm11270_vm11 = vcmp.ne.s16.totalorder %v13495_v26, 0  ;;  %v3974_v43 = vrot.slane %v3972_v38, 4  ;;  %v3431_v40 = vshll.u32 %v7530_v57, 16  ;;  %v3240_v54 = vsel %vm11209_vm5, %v2756_v1, 0  ;;  %8437 = vmatprep.mubr.bf16.mxu1 %v3426_v11  ;;  %v13506_v1 = vld [vmem:[#allocation80_spill] sm:$0xff]  ;;  %8555 = vmatprep.subr.bf16.mxu0 %v8970_v41 }
 0x1ef   : > { %v13497_v6 = vsel %vm11270_vm11, 4294967295, %v13496_v6  ;;  %v3966_v59 = vor.u32 %v3965_v3, %v3962_v39  ;;  %v3429_v13 = vor.u32 %v3427_v16, %v3425_v7  ;;  %v7531_v9 = vcombine.low %v3239_v8, %v3240_v54  ;;  %v13512_v7 = vld [vmem:[#allocation75_spill] sm:$0xff]  ;;  %v2759_v8 = vld [vmem:[#allocation2 + $0x70] sm:$0xf]  ;;  %8556 = vmatpush3.bf16.msra.mxu0 %v8970_v41  ;;  %v13527_v41 = vld [vmem:[#allocation84_spill] sm:$0xff] }
 0x1f0   : > { %13498 = vst [vmem:[#allocation71_spill] sm:$0xff] %v13497_v6  ;;  %v3435_v24 = vshrl.u32 %v7530_v57, 16  ;;  %v3975_v26 = vor.u32 %v3974_v43, %v3971_v34  ;;  %v3433_v58 = vrot.slane %v3431_v40, 1  ;;  %vm13501_vm3 = vnez %v13500_v44  ;;  %v13514_v57 = vld [vmem:[#allocation26_spill] sm:$0xff] }
 0x1f1   : > { %v13503_v38 = vsel %vm13501_vm3, %v13502_v19, 0  ;;  %vm13505_vm6 = vnez %v13504_v27  ;;  %vm13509_vm13 = vnez %v13508_v56  ;;  %vm13513_vm5 = vnez %v13512_v7  ;;  %v13658_v6 = vld [vmem:[#allocation54_spill] sm:$0xff] }
 0x1f2   : > { %v13507_v49 = vsel %vm13505_vm6, %v13506_v1, 0  ;;  %v13511_v39 = vsel %vm13509_vm13, %v13510_v53, 0  ;;  %v13515_v3 = vsel %vm13513_vm5, %v13514_v57, 0  ;;  %vm13516_vm10 = vsmask.f32 4352  ;;  %v8973_v57 = vld [vmem:[#allocation8 + $0x158] sm:$0xff]  }
 0x1f3   : > { %v7553_v4 = vcombine.low %v13507_v49, %v13503_v38  ;;  %v7554_v16 = vcombine.low %v13515_v3, %v13511_v39  ;;  %v3967_v44 = vsel %vm13516_vm10, %v3957_v60, %v3966_v59  ;;  %v3439_v34 = vshll.u32 %v7531_v9, 16  ;;  %vm13518_vm6 = vmmov %vm13516_vm10  ;;  %v2760_v53 = vld [vmem:[#allocation2 + $0x74] sm:$0xf]  ;;  %8557 = vmatprep.subr.bf16.mxu0 %v8973_v57 }
 0x1f4   : > { %vm13517_vm3 = vcmp.ne.s16.totalorder %v13464_v25, 0  ;;  %v3242_v49 = vsel %vm11222_vm0, %v2758_v5, 0  ;;  %v3976_v11 = vsel %vm13518_vm6, %v3966_v59, %v3975_v26  ;;  %vm13519_vm13 = vsmask.f32 7424  ;;  %v2761_v59 = vld [vmem:[#allocation2 + $0x78] sm:$0xf]  ;;  %8478 = vmatmul.mubr.bf16.gmra.mxu0 %v3967_v44 }
 0x1f5   : > { %v3241_v27 = vsel %vm13517_vm3, %v2757_v61, 0  ;;  %v3434_v43 = vsel %vm13519_vm13, %v3429_v13, %v3433_v58  ;;  %v3437_v40 = vor.u32 %v3435_v24, %v3433_v58  ;;  %v3978_v54 = vshrl.u32 %v7553_v4, 16  ;;  %8481 = vmatprep.mubr.bf16.mxu0 %v3976_v11  ;;  %8558 = vmatpush3.bf16.msra.mxu0 %v8973_v57 }
 0x1f6   : > { %v3441_v19 = vrot.slane %v3439_v34, 1  ;;  %v3981_v38 = vshll.u32 %v7553_v4, 16  ;;  %v3987_v60 = vshrl.u32 %v7554_v16, 16  ;;  %v3990_v1 = vshll.u32 %v7554_v16, 16  ;;  %8438 = vmatmul.mubr.bf16.gmra.mxu1 %v3434_v43  ;;  %v2762_v4 = vld [vmem:[#allocation2 + $0x7c] sm:$0xf] }
 0x1f7   : > { %v3980_v61 = vrot.slane %v3978_v54, 3  ;;  %v7532_v39 = vcombine.low %v3241_v27, %v3242_v49  ;;  %v3443_v5 = vshrl.u32 %v7531_v9, 16  ;;  %vm13520_vm10 = vcmp.ne.s16.totalorder %v13484_v12, 0  ;;  %v8974_v27 = vld [vmem:[#allocation8 + $0x150] sm:$0xff]   ;;  %v13521_v54 = vld [vmem:[#allocation19_spill] sm:$0xff] }
 0x1f8   : > { %v3243_v14 = vsel %vm13520_vm10, %v2759_v8, 0  ;;  %v3442_v13 = vsel %vm13519_vm13, %v3437_v40, %v3441_v19  ;;  %v3983_v24 = vrot.slane %v3981_v38, 4  ;;  %v3989_v30 = vrot.slane %v3987_v60, 3  ;;  %v13523_v40 = vld [vmem:[#allocation85_spill] sm:$0xff]  ;;  %v13525_v60 = vld [vmem:[#allocation18_spill] sm:$0xff]  ;;  %8559 = vmatprep.subr.bf16.mxu0 %v8974_v27 }
 0x1f9   : > { %v3992_v58 = vrot.slane %v3990_v1, 4  ;;  %8441 = vmatprep.mubr.bf16.mxu1 %v3442_v13  ;;  %v3445_v3 = vor.u32 %v3443_v5, %v3441_v19  ;;  %v3447_v16 = vshll.u32 %v7532_v39, 16  ;;  %v3244_v9 = vsel %vm11258_vm1, %v2760_v53, 0  ;;  %8560 = vmatpush3.bf16.msra.mxu0 %v8974_v27 }
 0x1fa   : > { %v3451_v34 = vshrl.u32 %v7532_v39, 16  ;;  %v3984_v49 = vor.u32 %v3983_v24, %v3980_v61  ;;  %v7533_v43 = vcombine.low %v3243_v14, %v3244_v9  ;;  %vm13522_vm3 = vnez %v13521_v54 }
 0x1fb   : > { %v3993_v8 = vor.u32 %v3992_v58, %v3989_v30  ;;  %v13524_v38 = vsel %vm13522_vm3, %v13523_v40, 0  ;;  %vm13526_vm6 = vnez %v13525_v60  ;;  %v3449_v19 = vrot.slane %v3447_v16, 1 }
 0x1fc   : > { %v13528_v44 = vsel %vm13526_vm6, %v13527_v41, 0  ;;  %v13529_v53 = vsel %vm10761_vm14, %v10904_v51, 0  ;;  %vm13530_vm10 = vnez %v13286_v36  ;;  %vm13532_vm13 = vcmp.ne.s16.totalorder %v13494_v2, 0 }
 0x1fd   : > { %v7555_v1 = vcombine.low %v13528_v44, %v13524_v38  ;;  %v13531_v11 = vsel %vm13530_vm10, %v10873_v33, 0  ;;  %v3245_v39 = vsel %vm13532_vm13, %v2761_v59, 0  ;;  %v3246_v5 = vsel %vm11270_vm11, %v2762_v4, 0  ;;  %v2763_v38 = vld [vmem:[#allocation2 + $0x80] sm:$0xf]  ;;  %v8978_v4 = vld [vmem:[#allocation8 + $0x148] sm:$0xff]  }
 0x1fe   : > { %v7556_v61 = vcombine.low %v13531_v11, %v13529_v53  ;;  %vm13533_vm3 = vsmask.f32 4352  ;;  %v3455_v24 = vshll.u32 %v7533_v43, 16  ;;  %vm13535_vm1 = vsmask.f32 7424  ;;  %v13536_v44 = vld [vmem:[#allocation62_spill] sm:$0xff]  ;;  %8561 = vmatprep.subr.bf16.mxu0 %v8978_v4 }
 0x1ff   : > { %v3985_v14 = vsel %vm13533_vm3, %v3975_v26, %v3984_v49  ;;  %vm13534_vm6 = vmmov %vm13533_vm3  ;;  %v3996_v30 = vshrl.u32 %v7555_v1, 16  ;;  %v3450_v51 = vsel %vm13535_vm1, %v3445_v3, %v3449_v19  ;;  %v3453_v58 = vor.u32 %v3451_v34, %v3449_v19  ;;  %8562 = vmatpush3.bf16.msra.mxu0 %v8978_v4  ;;  %v13563_v4 = vld [vmem:[#allocation94_spill] sm:$0xff] }
 0x200   : > { %v3994_v13 = vsel %vm13534_vm6, %v3984_v49, %v3993_v8  ;;  %v3999_v16 = vshll.u32 %v7555_v1, 16  ;;  %v4005_v33 = vshrl.u32 %v7556_v61, 16  ;;  %v3457_v9 = vrot.slane %v3455_v24, 1  ;;  %8442 = vmatmul.mubr.bf16.gmra.mxu1 %v3450_v51  ;;  %vm13538_vm13 = vmmov %vm13535_vm1  ;;  %8482 = vmatmul.mubr.bf16.gmra.mxu0 %v3985_v14 }
 0x201   : > { %v3998_v54 = vrot.slane %v3996_v30, 3  ;;  %v4008_v59 = vshll.u32 %v7556_v61, 16  ;;  %v7534_v40 = vcombine.low %v3245_v39, %v3246_v5  ;;  %v3459_v26 = vshrl.u32 %v7533_v43, 16  ;;  %v8979_v39 = vld [vmem:[#allocation8 + $0x140] sm:$0xff]   ;;  %8485 = vmatprep.mubr.bf16.mxu0 %v3994_v13 }
 0x202   : > { %v4001_v60 = vrot.slane %v3999_v16, 4  ;;  %v4007_v41 = vrot.slane %v4005_v33, 3  ;;  %v13537_v49 = vshrl.u32 %v13536_v44, 16  ;;  %v3458_v57 = vsel %vm13538_vm13, %v3453_v58, %v3457_v9  ;;  %v2764_v30 = vld [vmem:[#allocation2 + $0x84] sm:$0xf]  ;;  %v13541_v16 = vld [vmem:[#allocation89_spill] sm:$0xff]  ;;  %8563 = vmatprep.subr.bf16.mxu0 %v8979_v39 }
 0x203   : > { %v4010_v3 = vrot.slane %v4008_v59, 4  ;;  %v3463_v34 = vshll.u32 %v7534_v40, 16  ;;  %vm13014_vm1 = vcmp.ne.s16.totalorder %v10917_v46, 0  ;;  %8445 = vmatprep.mubr.bf16.mxu1 %v3458_v57  ;;  %v3461_v19 = vor.u32 %v3459_v26, %v3457_v9  ;;  %v13544_v33 = vld [vmem:[#allocation87_spill] sm:$0xff]  ;;  %v13551_v26 = vld [vmem:[#allocation90_spill] sm:$0xff]  ;;  %8564 = vmatpush3.bf16.msra.mxu0 %v8979_v39 }
 0x204   : > { %v3178_v53 = vrot.slane %v13537_v49, 7  ;;  %v4002_v1 = vor.u32 %v4001_v60, %v3998_v54  ;;  %v13539_v11 = vshll.u32 %v13536_v44, 16  ;;  %v3247_v43 = vsel %vm13014_vm1, %v2763_v38, 0  ;;  %v13547_v60 = vld [vmem:[#allocation92_spill] sm:$0xff]  ;;  %v13575_v39 = vld [vmem:[#allocation95_spill] sm:$0xff] }
 0x205   : > { %v4011_v5 = vor.u32 %v4010_v3, %v4007_v41  ;;  %v3465_v24 = vrot.slane %v3463_v34, 1  ;;  %v3467_v51 = vshrl.u32 %v7534_v40, 16  ;;  %v13542_v27 = vsel %vm10810_vm8, %v13541_v16, 0  ;;  %v13549_v41 = vld [vmem:[#allocation22_spill] sm:$0xff]  ;;  %vm13553_vm8 = vmmov %vm13533_vm3  ;;  %v13582_v46 = vld [vmem:[#allocation23_spill] sm:$0xff] }
 0x206   : > { %v3181_v61 = vor.u32 %v13539_v11, %v3178_v53  ;;  %v13545_v9 = vsel %vm10798_vm7, %v13544_v33, 0  ;;  %v4003_v59 = vsel %vm13533_vm3, %v3993_v8, %v4002_v1  ;;  %v13548_v40 = vsel %vm10851_vm2, %v13547_v60, 0  ;;  %vm13554_vm7 = vmmov %vm13538_vm13  ;;  %v13565_v33 = vld [vmem:[#allocation25_spill] sm:$0xff]  ;;  %v4688_v38 = vld [vmem:[#allocation2 + $0x5c] sm:$0xf] }
 0x207   : > { %v7557_v54 = vcombine.low %v13545_v9, %v13542_v27  ;;  %vm13550_vm6 = vnez %v13549_v41  ;;  %v3183_v57 = vrot.slane %v3178_v53, 4  ;;  %v4012_v3 = vsel %vm13553_vm8, %v4002_v1, %v4011_v5  ;;  %v11367_v27 = vld [vmem:[#allocation8 + $0x1f8] sm:$0xff]   ;;  %v11369_v53 = vld [vmem:[#allocation2 + $0x8c] sm:$0xf] }
 0x208   : > { %v3182_v13 = vsel %vm9858_vm4, %v9844_v52, %v3181_v61  ;;  %v13552_v44 = vsel %vm13550_vm6, %v13551_v26, 0  ;;  %v3466_v34 = vsel %vm13554_vm7, %v3461_v19, %v3465_v24  ;;  %v13555_v8 = vmov 0  ;;  %v2765_v52 = vld [vmem:[#allocation2 + $0x88] sm:$0x1]  ;;  %8486 = vmatmul.mubr.bf16.gmra.mxu0 %v4003_v59  ;;  %8645 = vmatprep.subr.bf16.mxu0 %v11367_v27 }
 0x209   : > { %v7558_v49 = vcombine.low %v13552_v44, %v13548_v40  ;;  %vm11361_vm13 = vcmp.ne.s16.totalorder %v3182_v13, 0  ;;  %v3469_v18 = vor.u32 %v3467_v51, %v3465_v24  ;;  %v4014_v61 = vshrl.u32 %v7557_v54, 16  ;;  %v13561_v24 = vld [vmem:[#allocation30_spill] sm:$0xff]  ;;  %8446 = vmatmul.mubr.bf16.gmra.mxu1 %v3466_v34  ;;  %8489 = vmatprep.mubr.bf16.mxu0 %v4012_v3 }
 0x20a   : > { %v13556_v8 = vsel %vm11361_vm13, 4294967295, %v13555_v8  ;;  %v3248_v11 = vsel %vm11361_vm13, %v2764_v30, 0  ;;  %v4017_v58 = vshll.u32 %v7557_v54, 16  ;;  %vm11371_vm4 = vcmp.ne.s16.totalorder %v3183_v57, 0  ;;  %v13567_v30 = vld [vmem:[#allocation93_spill] sm:$0xff] }
 0x20b   : > { %13557 = vst [vmem:[#allocation55_spill] sm:$0xff] %v13556_v8  ;;  %v4023_v16 = vshrl.u32 %v7558_v49, 16  ;;  %v7535_v1 = vcombine.low %v3247_v43, %v3248_v11  ;;  %v4026_v19 = vshll.u32 %v7558_v49, 16  ;;  %v13558_v14 = vmov 0  ;;  %v13569_v11 = vld [vmem:[#allocation17_spill] sm:$0xff] }
 0x20c   : > { %v13559_v14 = vsel %vm11371_vm4, 4294967295, %v13558_v14  ;;  %vm13562_vm3 = vnez %v13561_v24  ;;  %vm13566_vm8 = vnez %v13565_v33  ;;  %v4016_v13 = vrot.slane %v4014_v61, 3  ;;  %v4672_v8 = vld [vmem:[#allocation2 + $0x1c] sm:$0xf] }
 0x20d   : > { %13560 = vst [vmem:[#allocation56_spill] sm:$0xff] %v13559_v14  ;;  %v13564_v51 = vsel %vm13562_vm3, %v13563_v4, 0  ;;  %v13568_v9 = vsel %vm13566_vm8, %v13567_v30, 0  ;;  %v4019_v60 = vrot.slane %v4017_v58, 4  ;;  %v4025_v40 = vrot.slane %v4023_v16, 3  ;;  %v13573_v16 = vld [vmem:[#allocation29_spill] sm:$0xff] }
 0x20e   : > { %v7559_v54 = vcombine.low %v13568_v9, %v13564_v51  ;;  %v3249_v43 = vsel %vm11371_vm4, %v2765_v52, 0  ;;  %v3471_v26 = vshll.u32 %v7535_v1, 16  ;;  %v4028_v44 = vrot.slane %v4026_v19, 4  ;;  %v4671_v14 = vld [vmem:[#allocation2 + $0x18] sm:$0xf] }
 0x20f   : > { %v7536_v49 = vcombine.low %v3249_v43, %v3249_v43  ;;  %v3475_v57 = vshrl.u32 %v7535_v1, 16  ;;  %vm13570_vm7 = vcmp.ne.s16.totalorder %v13569_v11, 0  ;;  %v4020_v4 = vor.u32 %v4019_v60, %v4016_v13  ;;  %v4670_v13 = vld [vmem:[#allocation2 + $0x14] sm:$0xf]  ;;  %v11398_v60 = vld [vmem:[#allocation2 + $0x90] sm:$0xf] }
 0x210   : > { %v3805_v24 = vsel %vm13570_vm7, %v11369_v53, 0  ;;  %v4032_v33 = vshrl.u32 %v7559_v54, 16  ;;  %v4035_v51 = vshll.u32 %v7559_v54, 16  ;;  %v3473_v61 = vrot.slane %v3471_v26, 1  ;;  %v4669_v54 = vld [vmem:[#allocation2 + $0x10] sm:$0xf] }
 0x211   : > { %v4029_v58 = vor.u32 %v4028_v44, %v4025_v40  ;;  %v3479_v52 = vshll.u32 %v7536_v49, 16  ;;  %vm13571_vm3 = vnez %v13345_v37  ;;  %vm13574_vm8 = vnez %v13573_v16  ;;  %13578 = vst [vmem:[#allocation78_spill] sm:$0xff] %v11398_v60  ;;  %v13581_v44 = vld [vmem:[#allocation65_spill] sm:$0xff] }
 0x212   : > { %v13572_v34 = vsel %vm13571_vm3, %v11022_v35, 0  ;;  %v13576_v1 = vsel %vm13574_vm8, %v13575_v39, 0  ;;  %vm13577_vm7 = vsmask.f32 4352  ;;  %v4034_v30 = vrot.slane %v4032_v33, 3 }
 0x213   : > { %v7560_v19 = vcombine.low %v13576_v1, %v13572_v34  ;;  %v4021_v59 = vsel %vm13577_vm7, %v4011_v5, %v4020_v4  ;;  %v4037_v9 = vrot.slane %v4035_v51, 4  ;;  %vm13579_vm1 = vsmask.f32 7424  ;;  %vm13580_vm4 = vmmov %vm13577_vm7  ;;  %v11402_v35 = vld [vmem:[#allocation2 + $0x18] sm:$0xf] }
 0x214   : > { %v3474_v3 = vsel %vm13579_vm1, %v3469_v18, %v3473_v61  ;;  %v4030_v40 = vsel %vm13580_vm4, %v4020_v4, %v4029_v58  ;;  %v3477_v43 = vor.u32 %v3475_v57, %v3473_v61  ;;  %v3481_v26 = vrot.slane %v3479_v52, 1  ;;  %v9057_v33 = vld [vmem:[#allocation2 + $0x10] sm:$0xf]  ;;  %v9058_v51 = vld [vmem:[#allocation2 + $0x14] sm:$0xf]  ;;  %v13584_v4 = vld [vmem:[#allocation24_spill] sm:$0xff]  ;;  %8490 = vmatmul.mubr.bf16.gmra.mxu0 %v4021_v59 }
 0x215   : > { %v5411_v49 = vshll.u32 %v13581_v44, 16  ;;  %8449 = vmatprep.mubr.bf16.mxu1 %v3474_v3  ;;  %v4038_v34 = vor.u32 %v4037_v9, %v4034_v30  ;;  %v4041_v39 = vshrl.u32 %v7560_v19, 16  ;;  %v4044_v5 = vshll.u32 %v7560_v19, 16  ;;  %v11409_v61 = vld [vmem:[#allocation2 + $0x1c] sm:$0xf]  ;;  %8493 = vmatprep.mubr.bf16.mxu0 %v4030_v40  ;;  %v13608_v40 = vld [vmem:[#allocation34_spill] sm:$0xff] }
 0x216   : > { %v7570_v1 = vcombine.low %v9057_v33, %v9058_v51  ;;  %v7561_v11 = vcombine.low %v3805_v24, %v3805_v24  ;;  %vm13583_vm1 = vcmp.ne.s16.totalorder %v13582_v46, 0  ;;  %vm13585_vm4 = vnez %v13584_v4  ;;  %v11411_v52 = vld [vmem:[#allocation2 + $0x2c] sm:$0xf]  ;;  %v11423_v33 = vld [vmem:[#allocation2 + $0x3c] sm:$0xf]  ;;  %v13606_v46 = vld [vmem:[#allocation36_spill] sm:$0xff] }
 0x217   : > { %v4702_v18 = vsel %vm13583_vm1, %v4669_v54, 0  ;;  %v4703_v57 = vsel %vm13585_vm4, %v4670_v13, 0  ;;  %13586 = vst [vmem:[#allocation68_spill] sm:$0xff] %v11411_v52  ;;  %vm13587_vm7 = vsmask.f32 7424  ;;  %v4043_v9 = vrot.slane %v4041_v39, 3 }
 0x218   : > { %v3482_v30 = vsel %vm13587_vm7, %v3477_v43, %v3481_v26  ;;  %vm13588_vm13 = vsmask.f32 4352  ;;  %v4046_v3 = vrot.slane %v4044_v5, 4  ;;  %v11421_v13 = vld [vmem:[#allocation2 + $0x30] sm:$0xf]  ;;  %13590 = vst [vmem:[#allocation70_spill] sm:$0xff] %v11423_v33  ;;  %v11431_v5 = vcombine.low %v4702_v18, %v4703_v57 }
 0x219   : > { %v4039_v19 = vsel %vm13588_vm13, %v4029_v58, %v4038_v34  ;;  %8450 = vmatmul.mubr.bf16.gmra.mxu1 %v3482_v30  ;;  %13589 = vst [vmem:[#allocation73_spill] sm:$0xff] %v11421_v13  ;;  %vm13591_vm13 = vcmp.ne.s16.totalorder %v13354_v0, 0  ;;  %v4705_v39 = vsel %vm10987_vm12, %v4672_v8, 0  ;;  %vm13593_vm1 = vnez %v13098_v50  ;;  %v4674_v54 = vld [vmem:[#allocation2 + $0x24] sm:$0xf]  ;;  %v8980_v0 = vld [vmem:[#allocation8 + $0x1b0] sm:$0xff]  }
 0x21a   : > { %8517 = vmatprep.mubr.bf16.mxu1 %v7570_v1  ;;  %v11425_v43 = vor.u32 %v4046_v3, %v4043_v9  ;;  %v4704_v58 = vsel %vm13591_vm13, %v4671_v14, 0  ;;  %v13595_v59 = vshrl.u32 %v13581_v44, 16  ;;  %v11443_v9 = vrot.slane %v5411_v49, 4  ;;  %v11445_v14 = vld [vmem:[#allocation2 + $0x40] sm:$0xf] }
 0x21b   : > { %13598 = vst [vmem:[#allocation74_spill] sm:$0xff] %v11445_v14  ;;  %vm13599_vm13 = vsmask.f32 4352  ;;  %v4050_v18 = vshrl.u32 %v7561_v11, 16  ;;  %v4053_v57 = vshll.u32 %v7561_v11, 16  ;;  %vm13600_vm12 = vnez %v13215_v21 }
 0x21c   : > { %v11441_v1 = vrot.slane %v13595_v59, 3  ;;  %13597 = vst [vmem:[#allocation60_spill] sm:$0xff] %v11443_v9  ;;  %v4048_v8 = vsel %vm13599_vm13, %v4038_v34, %v11425_v43  ;;  %v4673_v3 = vld [vmem:[#allocation2 + $0x20] sm:$0xf]  ;;  %v11455_v49 = vcombine.low %v4704_v58, %v4705_v39  ;;  %v4675_v59 = vld [vmem:[#allocation2 + $0x28] sm:$0xf]  ;;  %vm13609_vm4 = vnez %v13608_v40  ;;  %8494 = vmatmul.mubr.bf16.gmra.mxu0 %v4039_v19 }
 0x21d   : > { %v4676_v51 = vld [vmem:[#allocation2 + $0x2c] sm:$0xf]  ;;  %v11462_v11 = vld [vmem:[#allocation2 + $0x50] sm:$0xf]  ;;  %v11464_v24 = vld [vmem:[#allocation2 + $0x5c] sm:$0xf]  ;;  %vm13613_vm7 = vnez %v13612_v62  ;;  %8497 = vmatprep.mubr.bf16.mxu0 %v4048_v8  ;;  %vm13632_vm2 = vnez %v13419_v23 }
 0x21e   : > { %13596 = vst [vmem:[#allocation79_spill] sm:$0xff] %v11441_v1  ;;  %v11460_v34 = vld [vmem:[#allocation2 + $0x4c] sm:$0xf]  ;;  %v11466_v26 = vld [vmem:[#allocation2 + $0x60] sm:$0xf]  ;;  %v4838_v30 = vshll.u32 %v11431_v5, 16 }
 0x21f   : > { %13603 = vst [vmem:[#allocation81_spill] sm:$0xff] %v11460_v34  ;;  %v11469_v44 = vld [vmem:[#allocation2 + $0x6c] sm:$0xf]  ;;  %v9059_v58 = vld [vmem:[#allocation2 + $0x1c] sm:$0xf]  ;;  %vm13607_vm13 = vcmp.ne.s16.totalorder %v13606_v46, 0 }
 0x220   : > { %13604 = vst [vmem:[#allocation72_spill] sm:$0xff] %v11469_v44  ;;  %v13605_v39 = vld [vmem:[#allocation97_spill] sm:$0xff]  ;;  %v4706_v60 = vsel %vm13607_vm13, %v4673_v3, 0  ;;  %v4707_v37 = vsel %vm13609_vm4, %v4674_v54, 0  ;;  %v4677_v9 = vld [vmem:[#allocation2 + $0x30] sm:$0xf]  ;;  %vm13620_vm4 = vnez %v13508_v56 }
 0x221   : > { %v7571_v4 = vcombine.low %v13605_v39, %v9059_v58  ;;  %v4678_v1 = vld [vmem:[#allocation2 + $0x34] sm:$0xf]  ;;  %v11476_v33 = vld [vmem:[#allocation2 + $0x70] sm:$0xf]  ;;  %v4052_v47 = vrot.slane %v4050_v18, 3  ;;  %v4055_v14 = vrot.slane %v4053_v57, 4 }
 0x222   : > { %vm13611_vm3 = vcmp.ne.s16.totalorder %v13610_v32, 0  ;;  %v4709_v13 = vsel %vm13613_vm7, %v4676_v51, 0  ;;  %v11485_v3 = vld [vmem:[#allocation2 + $0x7c] sm:$0xf]  ;;  %v9060_v54 = vld [vmem:[#allocation2 + $0x20] sm:$0xf]  ;;  %vm13619_vm7 = vnez %v13248_v48 }
 0x223   : > { %v4708_v52 = vsel %vm13611_vm3, %v4675_v59, 0  ;;  %13614 = vst [vmem:[#allocation80_spill] sm:$0xff] %v11485_v3  ;;  %8518 = vmatmul.mubr.bf16.vlgmr.msra.gmra.mxu1 %v7571_v4  ;;  %v9061_v39 = vld [vmem:[#allocation2 + $0x24] sm:$0xf]  ;;  %v4843_v46 = vshll.u32 %v11455_v49, 16  ;;  %v4840_v57 = vrot.slane %v4838_v30, 1  ;;  %v11489_v59 = vcombine.low %v4706_v60, %v4707_v37 }
 0x224   : > { %v7572_v40 = vcombine.low %v9060_v54, %v9061_v39  ;;  %v4679_v18 = vld [vmem:[#allocation2 + $0x38] sm:$0xf]  ;;  %8598 = vmatpush3.bf16.msra.mxu1 %v11277_v15  ;;  %v13615_v51 = vld [vmem:[#allocation41_spill] sm:$0xff]  ;;  %v13617_v32 = vld [vmem:[#allocation40_spill] sm:$0xff]  ;;  %v11504_v15 = vcombine.low %v4708_v52, %v4709_v13  ;;  %v4056_v54 = vor.u32 %v4055_v14, %v4052_v47  ;;  %v4836_v39 = vshrl.u32 %v11431_v5, 16 }
 0x225   : > { %vm13616_vm3 = vcmp.ne.s16.totalorder %v13615_v51, 0  ;;  %vm13618_vm13 = vnez %v13617_v32  ;;  %v4680_v34 = vld [vmem:[#allocation2 + $0x3c] sm:$0xf]  ;;  %v8983_v60 = vld [vmem:[#allocation8 + $0x1a8] sm:$0xff]   ;;  %8599 = vmatprep.subr.bf16.mxu1 %v8980_v0  ;;  %v4851_v47 = vshll.u32 %v11489_v59, 16 }
 0x226   : > { %v4710_v62 = vsel %vm13616_vm3, %v4677_v9, 0  ;;  %v4711_v58 = vsel %vm13618_vm13, %v4678_v1, 0  ;;  %8521 = vmatprep.mubr.bf16.mxu1 %v7572_v40  ;;  %v11512_v9 = vld [vmem:[#allocation2 + $0x80] sm:$0xf]  ;;  %v13622_v8 = vld [vmem:[#allocation45_spill] sm:$0xff]  ;;  %vm13624_vm13 = vnez %v13392_v29  ;;  %v4841_v19 = vor.u32 %v4840_v57, %v4836_v39 }
 0x227   : > { %13621 = vst [vmem:[#allocation76_spill] sm:$0xff] %v11512_v9  ;;  %v11518_v13 = vcombine.low %v4710_v62, %v4711_v58  ;;  %vm13623_vm3 = vcmp.ne.s16.totalorder %v13622_v8, 0  ;;  %v4713_v30 = vsel %vm13624_vm13, %v4680_v34, 0  ;;  %v4845_v1 = vrot.slane %v4843_v46, 1  ;;  %v4681_v14 = vld [vmem:[#allocation2 + $0x40] sm:$0xf] }
 0x228   : > { %v4712_v40 = vsel %vm13623_vm3, %v4679_v18, 0  ;;  %8600 = vmatpush3.bf16.msra.mxu1 %v8980_v0  ;;  %v4682_v5 = vld [vmem:[#allocation2 + $0x44] sm:$0xf]  ;;  %v9062_v52 = vld [vmem:[#allocation2 + $0x28] sm:$0xf]  ;;  %v4859_v29 = vshll.u32 %v11504_v15, 16  ;;  %vm13627_vm13 = vnez %v13398_v17 }
 0x229   : > { %v9063_v62 = vld [vmem:[#allocation2 + $0x2c] sm:$0xf]  ;;  %v9064_v4 = vld [vmem:[#allocation2 + $0x30] sm:$0xf]  ;;  %v9065_v8 = vld [vmem:[#allocation2 + $0x34] sm:$0xf]  ;;  %8601 = vmatprep.subr.bf16.mxu1 %v8983_v60 }
 0x22a   : > { %v7573_v58 = vcombine.low %v9062_v52, %v9063_v62  ;;  %v7574_v18 = vcombine.low %v9064_v4, %v9065_v8  ;;  %v4683_v34 = vld [vmem:[#allocation2 + $0x48] sm:$0xf]  ;;  %v4684_v46 = vld [vmem:[#allocation2 + $0x4c] sm:$0xf]  ;;  %vm13625_vm3 = vsmask.f32 4352  ;;  %v11538_v62 = vcombine.low %v4712_v40, %v4713_v30 }
 0x22b   : > { %v4057_v0 = vsel %vm13625_vm3, %v11425_v43, %v4056_v54  ;;  %v4847_v57 = vshrl.u32 %v11455_v49, 16  ;;  %v11532_v39 = vld [vmem:[#allocation2 + $0x38] sm:$0xf]  ;;  %v11534_v32 = vld [vmem:[#allocation2 + $0x3c] sm:$0xf]  ;;  %v8986_v4 = vld [vmem:[#allocation8 + $0x1a0] sm:$0xff]  }
 0x22c   : > { %v4685_v8 = vld [vmem:[#allocation2 + $0x50] sm:$0xf]  ;;  %v4686_v37 = vld [vmem:[#allocation2 + $0x54] sm:$0xf]  ;;  %8522 = vmatmul.mubr.bf16.gmra.mxu1 %v7573_v58  ;;  %v11540_v51 = vld [vmem:[#allocation2 + $0x40] sm:$0xf]  ;;  %8498 = vmatmul.mubr.bf16.gmra.mxu0 %v4057_v0 }
 0x22d   : > { %v11542_v3 = vld [vmem:[#allocation2 + $0x44] sm:$0xf]  ;;  %v4867_v49 = vshll.u32 %v11518_v13, 16  ;;  %vm13626_vm3 = vcmp.ne.s16.totalorder %v13394_v45, 0  ;;  %v4715_v30 = vsel %vm13627_vm13, %v4682_v5, 0  ;;  %v4849_v58 = vor.u32 %v4847_v57, %v4845_v1  ;;  %8525 = vmatprep.mubr.bf16.mxu1 %v7574_v18  ;;  %8602 = vmatpush3.bf16.msra.mxu1 %v8983_v60  ;;  %v13633_v57 = vld [vmem:[#allocation51_spill] sm:$0xff] }
 0x22e   : > { %v7576_v43 = vcombine.low %v11540_v51, %v11542_v3  ;;  %v4714_v54 = vsel %vm13626_vm3, %v4681_v14, 0  ;;  %v4687_v40 = vld [vmem:[#allocation2 + $0x58] sm:$0xf]  ;;  %vm13628_vm6 = vsmask.f32 7424  ;;  %v4853_v41 = vrot.slane %v4851_v47, 1  ;;  %8603 = vmatprep.subr.bf16.mxu1 %v8986_v4 }
 0x22f   : > { %v4846_v52 = vsel %vm13628_vm6, %v4841_v19, %v4845_v1  ;;  %v4855_v9 = vshrl.u32 %v11489_v59, 16  ;;  %v4689_v44 = vld [vmem:[#allocation2 + $0x60] sm:$0xf]  ;;  %v4861_v3 = vrot.slane %v4859_v29, 1  ;;  %v4863_v51 = vshrl.u32 %v11504_v15, 16  ;;  %v8989_v59 = vld [vmem:[#allocation8 + $0x198] sm:$0xff]  }
 0x230   : > { %8565 = vmatprep.mubr.bf16.mxu0 %v4846_v52  ;;  %vm13629_vm3 = vcmp.ne.s16.totalorder %v13407_v42, 0  ;;  %vm13630_vm13 = vnez %v13411_v63  ;;  %v4690_v0 = vld [vmem:[#allocation2 + $0x64] sm:$0xf]  ;;  %v4875_v19 = vshll.u32 %v11538_v62, 16  ;;  %v11559_v1 = vcombine.low %v4714_v54, %v4715_v30  ;;  %v4691_v15 = vld [vmem:[#allocation2 + $0x68] sm:$0xf] }
 0x231   : > { %v4716_v14 = vsel %vm13629_vm3, %v4683_v34, 0  ;;  %v4717_v5 = vsel %vm13630_vm13, %v4684_v46, 0  ;;  %vm13631_vm6 = vcmp.ne.s16.totalorder %v13415_v20, 0  ;;  %v4719_v29 = vsel %vm13632_vm2, %v4686_v37, 0  ;;  %v11565_v18 = vld [vmem:[#allocation2 + $0x48] sm:$0xf]  ;;  %8604 = vmatpush3.bf16.msra.mxu1 %v8986_v4 }
 0x232   : > { %v4718_v47 = vsel %vm13631_vm6, %v4685_v8, 0  ;;  %v4869_v60 = vrot.slane %v4867_v49, 1  ;;  %v11567_v34 = vld [vmem:[#allocation2 + $0x4c] sm:$0xf]  ;;  %vm13634_vm3 = vcmp.ne.s16.totalorder %v13633_v57, 0  ;;  %v13635_v54 = vld [vmem:[#allocation44_spill] sm:$0xff]  ;;  %v4857_v8 = vor.u32 %v4855_v9, %v4853_v41  ;;  %8605 = vmatprep.subr.bf16.mxu1 %v8989_v59 }
 0x233   : > { %v4720_v52 = vsel %vm13634_vm3, %v4687_v40, 0  ;;  %vm13636_vm13 = vnez %v13635_v54  ;;  %v4692_v20 = vld [vmem:[#allocation2 + $0x6c] sm:$0xf]  ;;  %v4871_v23 = vshrl.u32 %v11518_v13, 16  ;;  %v11576_v37 = vld [vmem:[#allocation2 + $0x50] sm:$0xf]  ;;  %v11582_v42 = vcombine.low %v4716_v14, %v4717_v5 }
 0x234   : > { %v4721_v30 = vsel %vm13636_vm13, %v4688_v38, 0  ;;  %v11578_v49 = vld [vmem:[#allocation2 + $0x54] sm:$0xf]  ;;  %v11584_v46 = vcombine.low %v4718_v47, %v4719_v29  ;;  %v13637_v40 = vld [vmem:[#allocation52_spill] sm:$0xff]  ;;  %v13641_v57 = vld [vmem:[#allocation57_spill] sm:$0xff]  ;;  %v4877_v45 = vrot.slane %v4875_v19, 1  ;;  %v4865_v29 = vor.u32 %v4863_v51, %v4861_v3 }
 0x235   : > { %vm13638_vm6 = vcmp.ne.s16.totalorder %v13637_v40, 0  ;;  %v13639_v38 = vld [vmem:[#allocation46_spill] sm:$0xff]  ;;  %vm13642_vm13 = vcmp.ne.s16.totalorder %v13641_v57, 0  ;;  %v4883_v36 = vshll.u32 %v11559_v1, 16  ;;  %v11593_v63 = vcombine.low %v4720_v52, %v4721_v30  ;;  %v13643_v4 = vld [vmem:[#allocation64_spill] sm:$0xff]  ;;  %8606 = vmatpush3.bf16.msra.mxu1 %v8989_v59  ;;  %v13667_v31 = vld [vmem:[#allocation73_spill] sm:$0xff] }
 0x236   : > { %v4722_v54 = vsel %vm13638_vm6, %v4689_v44, 0  ;;  %vm13640_vm3 = vnez %v13639_v38  ;;  %v4724_v13 = vsel %vm13642_vm13, %v4691_v15, 0  ;;  %v4693_v17 = vld [vmem:[#allocation2 + $0x70] sm:$0xf]  ;;  %vm13644_vm2 = vnez %v13643_v4  ;;  %v4694_v47 = vld [vmem:[#allocation2 + $0x74] sm:$0xf] }
 0x237   : > { %v4723_v9 = vsel %vm13640_vm3, %v4690_v0, 0  ;;  %v8992_v14 = vld [vmem:[#allocation8 + $0x190] sm:$0xff]   ;;  %v4725_v5 = vsel %vm13644_vm2, %v4692_v20, 0  ;;  %vm13645_vm10 = vsmask.f32 7424  ;;  %v13646_v0 = vcombine.low %v11532_v39, %v11534_v32  ;;  %v13688_v38 = vld [vmem:[#allocation60_spill] sm:$0xff] }
 0x238   : > { %v4854_v44 = vsel %vm13645_vm10, %v4849_v58, %v4853_v41  ;;  %v4873_v15 = vor.u32 %v4871_v23, %v4869_v60  ;;  %v11601_v57 = vcombine.low %v4724_v13, %v4725_v5  ;;  %v8996_v19 = vld [vmem:[#allocation8 + $0x1f0] sm:$0xff]   ;;  %vm13647_vm13 = vmmov %vm13645_vm10  ;;  %v4879_v30 = vshrl.u32 %v11538_v62, 16  ;;  %v11608_v41 = vld [vmem:[#allocation2 + $0x58] sm:$0xf]  ;;  %8607 = vmatprep.subr.bf16.mxu1 %v8992_v14 }
 0x239   : > { %8526 = vmatmul.mubr.bf16.gmra.mxu1 %v13646_v0  ;;  %8566 = vmatmul.mubr.bf16.vlgmr.msra.gmra.mxu0 %v4854_v44  ;;  %v4862_v52 = vsel %vm13647_vm13, %v4857_v8, %v4861_v3  ;;  %v4891_v20 = vshll.u32 %v11582_v42, 16  ;;  %v11606_v4 = vcombine.low %v4722_v54, %v4723_v9  ;;  %v11610_v32 = vld [vmem:[#allocation2 + $0x5c] sm:$0xf]  ;;  %v4899_v39 = vshll.u32 %v11584_v46, 16  ;;  %v8997_v58 = vld [vmem:[#allocation8 + $0x188] sm:$0xff]   ;;  %vm13649_vm6 = vmmov %vm13647_vm13 }
 0x23a   : > { %8529 = vmatprep.mubr.bf16.mxu1 %v7576_v43  ;;  %8569 = vmatprep.mubr.bf16.mxu0 %v4862_v52  ;;  %vm13648_vm10 = vcmp.ne.s16.totalorder %v13464_v25, 0  ;;  %v4727_v62 = vsel %vm11222_vm0, %v4694_v47, 0  ;;  %v4870_v3 = vsel %vm13649_vm6, %v4865_v29, %v4869_v60  ;;  %v4881_v51 = vor.u32 %v4879_v30, %v4877_v45  ;;  %v4695_v9 = vld [vmem:[#allocation2 + $0x78] sm:$0xf]  ;;  %v4696_v59 = vld [vmem:[#allocation2 + $0x7c] sm:$0xf]  ;;  %vm13650_vm13 = vmmov %vm13649_vm6 }
 0x23b   : > { %v4726_v43 = vsel %vm13648_vm10, %v4693_v17, 0  ;;  %v4885_v54 = vrot.slane %v4883_v36, 1  ;;  %v4907_v8 = vshll.u32 %v11593_v63, 16  ;;  %8646 = vmatpush3.bf16.msra.mxu0 %v11367_v27  ;;  %v4878_v13 = vsel %vm13650_vm13, %v4873_v15, %v4877_v45  ;;  %v11624_v44 = vld [vmem:[#allocation2 + $0x60] sm:$0xf]  ;;  %v9000_v47 = vld [vmem:[#allocation8 + $0x1e8] sm:$0xff]   ;;  %8608 = vmatpush3.bf16.msra.mxu1 %v8992_v14 }
 0x23c   : > { %v4887_v5 = vshrl.u32 %v11559_v1, 16  ;;  %v11626_v17 = vld [vmem:[#allocation2 + $0x64] sm:$0xf]  ;;  %v4923_v36 = vshll.u32 %v11601_v57, 16  ;;  %8647 = vmatprep.subr.bf16.mxu0 %v8996_v19  ;;  %v4893_v0 = vrot.slane %v4891_v20, 1  ;;  %v4895_v27 = vshrl.u32 %v11582_v42, 16  ;;  %8609 = vmatprep.subr.bf16.mxu1 %v8997_v58 }
 0x23d   : > { %v4915_v29 = vshll.u32 %v11606_v4, 16  ;;  %v11633_v52 = vcombine.low %v4726_v43, %v4727_v62  ;;  %v4901_v45 = vrot.slane %v4899_v39, 1  ;;  %v4903_v1 = vshrl.u32 %v11584_v46, 16  ;;  %v4697_v60 = vld [vmem:[#allocation2 + $0x80] sm:$0xf]  ;;  %v13687_v25 = vld [vmem:[#allocation79_spill] sm:$0xff] }
 0x23e   : > { %vm13651_vm10 = vcmp.ne.s16.totalorder %v13484_v12, 0  ;;  %vm13652_vm6 = vnez %v13491_v28  ;;  %v4889_v23 = vor.u32 %v4887_v5, %v4885_v54  ;;  %v4909_v55 = vrot.slane %v4907_v8, 1  ;;  %v9002_v43 = vld [vmem:[#allocation8 + $0x180] sm:$0xff]   ;;  %v11642_v62 = vld [vmem:[#allocation2 + $0x8c] sm:$0xf] }
 0x23f   : > { %v4728_v15 = vsel %vm13651_vm10, %v4695_v9, 0  ;;  %v4729_v30 = vsel %vm13652_vm6, %v4696_v59, 0  ;;  %v4911_v20 = vshrl.u32 %v11593_v63, 16  ;;  %v4919_v42 = vshrl.u32 %v11606_v4, 16  ;;  %8648 = vmatpush3.bf16.msra.mxu0 %v8996_v19  ;;  %v4698_v39 = vld [vmem:[#allocation2 + $0x84] sm:$0xf]  ;;  %8610 = vmatpush3.bf16.msra.mxu1 %v8997_v58 }
 0x240   : > { %v13653_v46 = vcombine.low %v11565_v18, %v11567_v34  ;;  %v11648_v14 = vsel %vm13650_vm13, %v4881_v51, %v4885_v54  ;;  %v11650_v9 = vld [vmem:[#allocation2 + $0x68] sm:$0xf]  ;;  %v11652_v8 = vld [vmem:[#allocation2 + $0x6c] sm:$0xf]  ;;  %v4925_v4 = vrot.slane %v4923_v36, 1  ;;  %v4927_v19 = vshrl.u32 %v11601_v57, 16  ;;  %8649 = vmatprep.subr.bf16.mxu0 %v9000_v47  ;;  %8611 = vmatprep.subr.bf16.mxu1 %v9002_v43 }
 0x241   : > { %v9001_v59 = vld [vmem:[#allocation8 + $0x1e0] sm:$0xff]   ;;  %8570 = vmatmul.mubr.bf16.gmra.mxu0 %v4870_v3  ;;  %v13654_v18 = vcombine.low %v11576_v37, %v11578_v49  ;;  %v11660_v34 = vld [vmem:[#allocation2 + $0x70] sm:$0xf]  ;;  %v11662_v51 = vld [vmem:[#allocation2 + $0x74] sm:$0xf]  ;;  %v4917_v5 = vrot.slane %v4915_v29, 1  ;;  %v11667_v36 = vcombine.low %v4728_v15, %v4729_v30  ;;  %v4897_v63 = vor.u32 %v4895_v27, %v4893_v0 }
 0x242   : > { %8530 = vmatmul.mubr.bf16.gmra.mxu1 %v13653_v46  ;;  %v4931_v46 = vshll.u32 %v11633_v52, 16  ;;  %v5224_v57 = vld [vmem:[#allocation2 + $0x14] sm:$0x8]  ;;  %8573 = vmatprep.mubr.bf16.mxu0 %v4878_v13  ;;  %v4905_v3 = vor.u32 %v4903_v1, %v4901_v45  ;;  %vm13655_vm10 = vcmp.ne.s16.totalorder %v13494_v2, 0  ;;  %v4731_v49 = vsel %vm11270_vm11, %v4698_v39, 0  ;;  %v11679_v13 = vld [vmem:[#allocation8 + $0x238] sm:$0xff]  }
 0x243   : > { %8533 = vmatprep.mubr.bf16.mxu1 %v13654_v18  ;;  %v4730_v37 = vsel %vm13655_vm10, %v4697_v60, 0  ;;  %v11673_v18 = vld [vmem:[#allocation2 + $0x20] sm:$0xf]  ;;  %v4894_v15 = vsel %vm13650_vm13, %v4889_v23, %v4893_v0  ;;  %v4913_v30 = vor.u32 %v4911_v20, %v4909_v55  ;;  %v4921_v54 = vor.u32 %v4919_v42, %v4917_v5  ;;  %8650 = vmatpush3.bf16.msra.mxu0 %v9000_v47  ;;  %v11681_v58 = vld [vmem:[#allocation2 + $0x78] sm:$0xf]  ;;  %v13686_v12 = vld [vmem:[#allocation77_spill] sm:$0xff] }
 0x244   : > { %v11683_v60 = vld [vmem:[#allocation2 + $0x7c] sm:$0xf]  ;;  %v4929_v1 = vor.u32 %v4927_v19, %v4925_v4  ;;  %v4935_v39 = vshrl.u32 %v11633_v52, 16  ;;  %8651 = vmatprep.subr.bf16.mxu0 %v9001_v59  ;;  %v13656_v29 = vld [vmem:[#allocation16_spill] sm:$0xff]  ;;  %v4933_v20 = vrot.slane %v4931_v46, 1  ;;  %v4939_v47 = vshll.u32 %v11667_v36, 16  ;;  %8612 = vmatpush3.bf16.msra.mxu1 %v9002_v43 }
 0x245   : > { %vm13657_vm10 = vcmp.ne.s16.totalorder %v13656_v29, 0  ;;  %v9005_v0 = vld [vmem:[#allocation8 + $0x1d8] sm:$0xff]   ;;  %v11691_v42 = vcombine.low %v4730_v37, %v4731_v49  ;;  %vm13659_vm13 = vnez %v13658_v6  ;;  %vm13660_vm11 = vsmask.f32 7424  ;;  %v11702_v52 = vld [vmem:[#allocation2 + $0x80] sm:$0xf]  ;;  %8693 = vmatprep.subr.bf16.mxu1 %v11679_v13 }
 0x246   : > { %v5257_v23 = vsel %vm13657_vm10, %v5224_v57, 0  ;;  %v5260_v2 = vsel %vm13659_vm13, %v11673_v18, 0  ;;  %v11697_v28 = vsel %vm13660_vm11, %v4897_v63, %v4901_v45  ;;  %vm13661_vm6 = vmmov %vm13660_vm11  ;;  %v11704_v29 = vld [vmem:[#allocation2 + $0x84] sm:$0xf]  ;;  %v11708_v57 = vld [vmem:[#allocation2 + $0x88] sm:$0xf]  ;;  %v13665_v49 = vcombine.low %v11608_v41, %v11610_v32 }
 0x247   : > { %v11700_v19 = vsel %vm13661_vm6, %v4905_v3, %v4909_v55  ;;  %vm13662_vm10 = vmmov %vm13661_vm6  ;;  %8652 = vmatpush3.bf16.msra.mxu0 %v9001_v59  ;;  %v13664_v63 = vsel %vm9598_vm15, %v11402_v35, 0  ;;  %v13666_v43 = vsel %vm13593_vm1, %v11409_v61, 0  ;;  %v4699_v59 = vld [vmem:[#allocation2 + $0x88] sm:$0xf]  ;;  %v11750_v21 = vor.u32 %v4935_v39, %v4933_v20  ;;  %v13676_v27 = vld [vmem:[#allocation88_spill] sm:$0xff] }
 0x248   : > { %v11713_v6 = vsel %vm13662_vm10, %v4913_v30, %v4917_v5  ;;  %vm13663_vm11 = vmmov %vm13661_vm6  ;;  %v7619_v3 = vcombine.low %v5257_v23, %v13664_v63  ;;  %8653 = vmatprep.subr.bf16.mxu0 %v9005_v0  ;;  %v13668_v5 = vsel %vm13600_vm12, %v13667_v31, 0  ;;  %v13669_v30 = vld [vmem:[#allocation61_spill] sm:$0xff]  ;;  %v13671_v23 = vld [vmem:[#allocation68_spill] sm:$0xff]  ;;  %vm13677_vm12 = vcmp.ne.s16.totalorder %v13676_v27, 0 }
 0x249   : > { %v11716_v45 = vsel %vm13663_vm11, %v4921_v54, %v4925_v4  ;;  %v11731_v4 = vcombine.low %v13666_v43, %v5260_v2  ;;  %v9006_v54 = vld [vmem:[#allocation8 + $0x1d0] sm:$0xff]   ;;  %vm13670_vm15 = vnez %v13669_v30  ;;  %v13673_v41 = vld [vmem:[#allocation69_spill] sm:$0xff]  ;;  %8574 = vmatmul.mubr.bf16.gmra.mxu0 %v11648_v14  ;;  %v13674_v2 = vcombine.low %v11624_v44, %v11626_v17  ;;  %vm13675_vm1 = vmmov %vm13661_vm6 }
 0x24a   : > { %8534 = vmatmul.mubr.bf16.gmra.mxu1 %v13665_v49  ;;  %v13672_v63 = vsel %vm13670_vm15, %v13671_v23, 0  ;;  %v5426_v32 = vshrl.u32 %v13673_v41, 16  ;;  %v5429_v50 = vshll.u32 %v13673_v41, 16  ;;  %v11748_v49 = vsel %vm13675_vm1, %v4929_v1, %v4933_v20  ;;  %8577 = vmatprep.mubr.bf16.mxu0 %v4894_v15  ;;  %v13678_v17 = vld [vmem:[#allocation67_spill] sm:$0xff]  ;;  %v13680_v1 = vld [vmem:[#allocation74_spill] sm:$0xff] }
 0x24b   : > { %v7622_v55 = vcombine.low %v13672_v63, %v13668_v5  ;;  %8537 = vmatprep.mubr.bf16.mxu1 %v13674_v2  ;;  %v11752_v43 = vrot.slane %v4939_v47, 1  ;;  %v5391_v46 = vshrl.u32 %v7619_v3, 16  ;;  %v5394_v14 = vshll.u32 %v7619_v3, 16  ;;  %8654 = vmatpush3.bf16.msra.mxu0 %v9005_v0  ;;  %v13682_v20 = vld [vmem:[#allocation66_spill] sm:$0xff]  ;;  %v9008_v3 = vld [vmem:[#allocation8 + $0x1c8] sm:$0xff]  }
 0x24c   : > { %v5428_v37 = vrot.slane %v5426_v32, 3  ;;  %v5431_v41 = vrot.slane %v5429_v50, 4  ;;  %v11757_v44 = vsel %vm13677_vm12, %v4699_v59, 0  ;;  %vm13679_vm6 = vnez %v13678_v17  ;;  %v13684_v47 = vld [vmem:[#allocation70_spill] sm:$0xff]  ;;  %8655 = vmatprep.subr.bf16.mxu0 %v9006_v54 }
 0x24d   : > { %v5417_v5 = vshrl.u32 %v7622_v55, 16  ;;  %v5420_v63 = vshll.u32 %v7622_v55, 16  ;;  %v13681_v39 = vsel %vm13679_vm6, %v13680_v1, 0  ;;  %vm13683_vm13 = vnez %v13682_v20 }
 0x24e   : > { %v13685_v2 = vsel %vm13683_vm13, %v13684_v47, 0  ;;  %v5399_v55 = vshrl.u32 %v11731_v4, 16  ;;  %v5432_v30 = vor.u32 %v5431_v41, %v5428_v37  ;;  %v5402_v59 = vshll.u32 %v11731_v4, 16  ;;  %v13690_v37 = vld [vmem:[#allocation81_spill] sm:$0xff] }
 0x24f   : > { %v7624_v15 = vcombine.low %v13685_v2, %v13681_v39  ;;  %v5419_v32 = vrot.slane %v5417_v5, 3  ;;  %v5422_v50 = vrot.slane %v5420_v63, 4  ;;  %v5444_v17 = vshrl.u32 %v13686_v12, 16  ;;  %8656 = vmatpush3.bf16.msra.mxu0 %v9006_v54  ;;  %v4700_v54 = vld [vmem:[#allocation2 + $0x8c] sm:$0xf] }
 0x250   : > { %v11772_v40 = vor.u32 %v13688_v38, %v13687_v25  ;;  %v5447_v39 = vshll.u32 %v13686_v12, 16  ;;  %v13689_v5 = vsel %vm13619_vm7, %v11462_v11, 0  ;;  %v13691_v63 = vsel %vm13480_vm9, %v13690_v37, 0  ;;  %8657 = vmatprep.subr.bf16.mxu0 %v9008_v3  ;;  %v9010_v12 = vld [vmem:[#allocation8 + $0x1c0] sm:$0xff]  }
 0x251   : > { %v5435_v27 = vshrl.u32 %v7624_v15, 16  ;;  %v5438_v0 = vshll.u32 %v7624_v15, 16  ;;  %v5423_v20 = vor.u32 %v5422_v50, %v5419_v32  ;;  %v7626_v4 = vcombine.low %v13691_v63, %v13689_v5  ;;  %8578 = vmatmul.mubr.bf16.gmra.mxu0 %v11697_v28  ;;  %v13696_v32 = vld [vmem:[#allocation82_spill] sm:$0xff] }
 0x252   : > { %v11783_v41 = vrot.slane %v5391_v46, 3  ;;  %v5446_v1 = vrot.slane %v5444_v17, 3  ;;  %v13692_v25 = vcombine.low %v11650_v9, %v11652_v8  ;;  %vm13693_vm10 = vsmask.f32 4352  ;;  %8581 = vmatprep.mubr.bf16.mxu0 %v11700_v19 }
 0x253   : > { %v5437_v2 = vrot.slane %v5435_v27, 3  ;;  %v5440_v15 = vrot.slane %v5438_v0, 4  ;;  %v11790_v48 = vsel %vm13693_vm10, %v11772_v40, %v5423_v20  ;;  %vm13694_vm7 = vmmov %vm13693_vm10  ;;  %v5449_v38 = vrot.slane %v5447_v39, 4  ;;  %8658 = vmatpush3.bf16.msra.mxu0 %v9008_v3 }
 0x254   : > { %8538 = vmatmul.mubr.bf16.gmra.mxu1 %v13692_v25  ;;  %v11793_v22 = vsel %vm13694_vm7, %v5423_v20, %v5432_v30  ;;  %v5453_v46 = vshrl.u32 %v7626_v4, 16  ;;  %v13695_v27 = vcombine.low %v11660_v34, %v11662_v51  ;;  %v5456_v8 = vshll.u32 %v7626_v4, 16  ;;  %vm13699_vm9 = vmmov %vm13694_vm7  ;;  %8659 = vmatprep.subr.bf16.mxu0 %v9010_v12 }
 0x255   : > { %v5441_v9 = vor.u32 %v5440_v15, %v5437_v2  ;;  %v5462_v50 = vshrl.u32 %v13696_v32, 16  ;;  %v5465_v0 = vshll.u32 %v13696_v32, 16  ;;  %v11802_v17 = vrot.slane %v5394_v14, 4  ;;  %v13700_v14 = vld [vmem:[#allocation55_spill] sm:$0xff]  ;;  %vm13702_vm15 = vmmov %vm13694_vm7 }
 0x256   : > { %8541 = vmatprep.mubr.bf16.mxu1 %v13695_v27  ;;  %v5450_v20 = vor.u32 %v5449_v38, %v5446_v1  ;;  %v5455_v39 = vrot.slane %v5453_v46, 3  ;;  %v13697_v28 = vsel %vm13620_vm4, %v11466_v26, 0  ;;  %v13698_v34 = vsel %vm13513_vm5, %v11464_v24, 0  ;;  %v13703_v38 = vld [vmem:[#allocation86_spill] sm:$0xff]  ;;  %vm13709_vm4 = vmmov %vm13694_vm7 }
 0x257   : > { %v7628_v51 = vcombine.low %v13698_v34, %v13697_v28  ;;  %v11813_v5 = vsel %vm13699_vm9, %v5432_v30, %v5441_v9  ;;  %v5458_v63 = vrot.slane %v5456_v8, 4  ;;  %v5464_v4 = vrot.slane %v5462_v50, 3  ;;  %v13707_v50 = vld [vmem:[#allocation72_spill] sm:$0xff]  ;;  %8660 = vmatpush3.bf16.msra.mxu0 %v9010_v12  ;;  %vm13710_vm1 = vmmov %vm13709_vm4 }
 0x258   : > { %v5467_v19 = vrot.slane %v5465_v0, 4  ;;  %vm13701_vm11 = vnez %v13700_v14  ;;  %v11818_v56 = vsel %vm13702_vm15, %v5441_v9, %v5450_v20  ;;  %v5480_v46 = vshrl.u32 %v13703_v38, 16  ;;  %vm13722_vm6 = vmmov %vm13710_vm1 }
 0x259   : > { %v4733_v1 = vsel %vm13701_vm11, %v4700_v54, 0  ;;  %v5471_v2 = vshrl.u32 %v7628_v51, 16  ;;  %v5474_v15 = vshll.u32 %v7628_v51, 16  ;;  %v5459_v7 = vor.u32 %v5458_v63, %v5455_v39  ;;  %v13705_v54 = vld [vmem:[#allocation20_spill] sm:$0xff]  ;;  %8582 = vmatmul.mubr.bf16.gmra.mxu0 %v11713_v6  ;;  %vm13723_vm13 = vmmov %vm13710_vm1 }
 0x25a   : > { %v5468_v25 = vor.u32 %v5467_v19, %v5464_v4  ;;  %v5483_v3 = vshll.u32 %v13703_v38, 16  ;;  %v5401_v30 = vrot.slane %v5399_v55, 3  ;;  %v13704_v32 = vsel %vm10761_vm14, %v11476_v33, 0  ;;  %v13713_v19 = vld [vmem:[#allocation91_spill] sm:$0xff]  ;;  %v13716_v38 = vld [vmem:[#allocation76_spill] sm:$0xff]  ;;  %8585 = vmatprep.mubr.bf16.mxu0 %v11716_v45  ;;  %vm13730_vm7 = vmmov %vm13710_vm1 }
 0x25b   : > { %v5473_v27 = vrot.slane %v5471_v2, 3  ;;  %v5476_v8 = vrot.slane %v5474_v15, 4  ;;  %vm13706_vm5 = vnez %v13705_v54  ;;  %v11831_v39 = vsel %vm13709_vm4, %v5450_v20, %v5459_v7  ;;  %vm13731_vm9 = vmmov %vm13710_vm1 }
 0x25c   : > { %v13708_v9 = vsel %vm13706_vm5, %v13707_v50, 0  ;;  %v11834_v28 = vsel %vm13710_vm1, %v5459_v7, %v5468_v25  ;;  %v5482_v34 = vrot.slane %v5480_v46, 3  ;;  %v5485_v55 = vrot.slane %v5483_v3, 4  ;;  %v13714_v7 = vld [vmem:[#allocation28_spill] sm:$0xff]  ;;  %vm13737_vm4 = vmmov %vm13710_vm1 }
 0x25d   : > { %v7630_v0 = vcombine.low %v13708_v9, %v13704_v32  ;;  %v13711_v51 = vcombine.low %v11681_v58, %v11683_v60  ;;  %v5404_v10 = vrot.slane %v5402_v59, 4  ;;  %v5477_v33 = vor.u32 %v5476_v8, %v5473_v27  ;;  %v13718_v60 = vld [vmem:[#allocation22_spill] sm:$0xff]  ;;  %v13720_v59 = vld [vmem:[#allocation80_spill] sm:$0xff] }
 0x25e   : > { %v13712_v12 = vcombine.low %v11702_v52, %v11704_v29  ;;  %v5486_v20 = vor.u32 %v5485_v55, %v5482_v34  ;;  %v5498_v2 = vshrl.u32 %v13713_v19, 16  ;;  %v5501_v15 = vshll.u32 %v13713_v19, 16 }
 0x25f   : > { %8542 = vmatmul.mubr.bf16.gmra.mxu1 %v13711_v51  ;;  %v5489_v63 = vshrl.u32 %v7630_v0, 16  ;;  %v5492_v4 = vshll.u32 %v7630_v0, 16  ;;  %vm13715_vm14 = vnez %v13714_v7  ;;  %vm13719_vm12 = vnez %v13718_v60  ;;  %v13724_v51 = vld [vmem:[#allocation96_spill] sm:$0xff] }
 0x260   : > { %8545 = vmatprep.mubr.bf16.mxu1 %v13712_v12  ;;  %v13717_v58 = vsel %vm13715_vm14, %v13716_v38, 0  ;;  %v13721_v46 = vsel %vm13719_vm12, %v13720_v59, 0  ;;  %v11855_v6 = vcombine.low %v11757_v44, %v4733_v1  ;;  %v11858_v52 = vsel %vm13722_vm6, %v5468_v25, %v5477_v33  ;;  %v13725_v1 = vld [vmem:[#allocation33_spill] sm:$0xff]  ;;  %v13727_v25 = vld [vmem:[#allocation78_spill] sm:$0xff]  ;;  %vm13740_vm14 = vmmov %vm13710_vm1 }
 0x261   : > { %v7632_v3 = vcombine.low %v13721_v46, %v13717_v58  ;;  %v5491_v29 = vrot.slane %v5489_v63, 3  ;;  %v5494_v27 = vrot.slane %v5492_v4, 4  ;;  %v11861_v8 = vsel %vm13723_vm13, %v5477_v33, %v5486_v20  ;;  %8586 = vmatmul.mubr.bf16.gmra.mxu0 %v11748_v49  ;;  %vm13741_vm12 = vmmov %vm13710_vm1 }
 0x262   : > { %v5500_v32 = vrot.slane %v5498_v2, 3  ;;  %v5503_v54 = vrot.slane %v5501_v15, 4  ;;  %v5405_v0 = vor.u32 %v5404_v10, %v5401_v30  ;;  %v5516_v12 = vshrl.u32 %v13724_v51, 16  ;;  %v4701_v10 = vld [vmem:[#allocation2 + $0x90] sm:$0x1] }
 0x263   : > { %v5507_v9 = vshrl.u32 %v7632_v3, 16  ;;  %v5495_v34 = vor.u32 %v5494_v27, %v5491_v29  ;;  %v5510_v55 = vshll.u32 %v7632_v3, 16  ;;  %v5519_v44 = vshll.u32 %v13724_v51, 16  ;;  %v13735_v3 = vld [vmem:[#allocation56_spill] sm:$0xff] }
 0x264   : > { %v5504_v45 = vor.u32 %v5503_v54, %v5500_v32  ;;  %vm13726_vm10 = vnez %v13725_v1  ;;  %v13729_v33 = vsel %vm13574_vm8, %v11642_v62, 0  ;;  %v5397_v30 = vor.u32 %v11802_v17, %v11783_v41  ;;  %vm13734_vm8 = vmmov %vm13710_vm1 }
 0x265   : > { %v5509_v19 = vrot.slane %v5507_v9, 3  ;;  %v13728_v63 = vsel %vm13726_vm10, %v13727_v25, 0  ;;  %v11876_v2 = vsel %vm13730_vm7, %v5486_v20, %v5495_v34  ;;  %v5512_v15 = vrot.slane %v5510_v55, 4 }
 0x266   : > { %v7634_v4 = vcombine.low %v13729_v33, %v13728_v63  ;;  %v5518_v7 = vrot.slane %v5516_v12, 3  ;;  %v11879_v38 = vsel %vm13731_vm9, %v5495_v34, %v5504_v45  ;;  %v5521_v58 = vrot.slane %v5519_v44, 4  ;;  %v9011_v33 = vld [vmem:[#allocation8 + $0x230] sm:$0xff]  }
 0x267   : > { %vm13732_vm15 = vsmask.f32 7424  ;;  %v13733_v46 = vcombine.low %v11708_v57, %v11369_v53  ;;  %v5406_v41 = vsel %vm13734_vm8, %v5397_v30, %v5405_v0  ;;  %v4951_v17 = vshrl.u32 %v11691_v42, 16 }
 0x268   : > { %v5525_v60 = vshrl.u32 %v7634_v4, 16  ;;  %v5528_v59 = vshll.u32 %v7634_v4, 16  ;;  %v4942_v16 = vsel %vm13732_vm15, %v11750_v21, %v11752_v43  ;;  %v5513_v20 = vor.u32 %v5512_v15, %v5509_v19  ;;  %v8327_v21 = vpop.f32.mrf.mxu1  ;;  %vm13742_vm6 = vmmov %vm13732_vm15  ;;  %v9013_v15 = vld [vmem:[#allocation8 + $0x228] sm:$0xff]  }
 0x269   : > { %8546 = vmatmul.mubr.bf16.gmra.mxu1 %v13733_v46  ;;  %vm13736_vm5 = vnez %v13735_v3  ;;  %v5522_v27 = vor.u32 %v5521_v58, %v5518_v7  ;;  %8589 = vmatprep.mubr.bf16.mxu0 %v4942_v16  ;;  %v13738_v53 = vshll.u32 %v11691_v42, 16  ;;  %v4955_v34 = vshll.u32 %v11855_v6, 16  ;;  %vm13743_vm13 = vmmov %vm13742_vm6  ;;  %v9019_v16 = vld [vmem:[#allocation8 + $0x218] sm:$0xff]   ;;  %v8375_v46 = vpop.f32.mrf.mxu0 }
 0x26a   : > { %8613 = vmatprep.mubr.bf16.mxu1 %v5406_v41  ;;  %v4734_v29 = vsel %vm13736_vm5, %v4701_v10, 0  ;;  %v5527_v32 = vrot.slane %v5525_v60, 3  ;;  %v5530_v54 = vrot.slane %v5528_v59, 4  ;;  %v11893_v9 = vsel %vm13737_vm4, %v5504_v45, %v5513_v20  ;;  %v2145_v44 = vpop.f32.mrf.mxu1  ;;  %v9016_v60 = vld [vmem:[#allocation8 + $0x220] sm:$0xff]   ;;  %vm13744_vm10 = vmmov %vm13742_vm6 }
 0x26b   : > { %v4949_v57 = vrot.slane %v13738_v53, 1  ;;  %v11899_v55 = vsel %vm13710_vm1, %v5513_v20, %v5522_v27  ;;  %v13739_v51 = vshrl.u32 %v11667_v36, 16  ;;  %v7610_v19 = vcombine.low %v4734_v29, %v4734_v29  ;;  %v9087_v20 = vld [vmem:[#allocation2 + $0x24] sm:$0xf] }
 0x26c   : > { %v11901_v49 = vor.u32 %v5530_v54, %v5527_v32  ;;  %v8328_v42 = vpop.f32.mrf.mxu1  ;;  %v4957_v25 = vrot.slane %v4955_v34, 1  ;;  %v5415_v63 = vsel %vm13741_vm12, %v5405_v0, %v11772_v40  ;;  %v4959_v30 = vshrl.u32 %v11855_v6, 16  ;;  %v9025_v34 = vld [vmem:[#allocation8 + $0x208] sm:$0xff]  }
 0x26d   : > { %v4945_v12 = vor.u32 %v13739_v51, %v11752_v43  ;;  %v4953_v1 = vor.u32 %v4951_v17, %v4949_v57  ;;  %v4963_v36 = vshll.u32 %v7610_v19, 16  ;;  %v7644_v59 = vcombine.low %v11402_v35, %v11409_v61  ;;  %v2606_v35 = vpop.f32.mrf.mxu0  ;;  %v9028_v19 = vld [vmem:[#allocation8 + $0x200] sm:$0xff]  }
 0x26e   : > { %v11908_v45 = vsel %vm13740_vm14, %v5522_v27, %v11901_v49  ;;  %v2148_v10 = vpop.f32.mrf.mxu1  ;;  %v4961_v7 = vor.u32 %v4959_v30, %v4957_v25  ;;  %v11922_v17 = vadd.f32 %v8375_v46, %v8327_v21  ;;  %v7645_v29 = vcombine.low %v11673_v18, %v9087_v20  ;;  %v9088_v27 = vld [vmem:[#allocation2 + $0x28] sm:$0xf]  ;;  %v6153_v46 = vld [vmem:[#allocation2 + $0x18] sm:$0xf]  ;;  %v6154_v20 = vld [vmem:[#allocation2 + $0x1c] sm:$0xf] }
 0x26f   : > { %v4950_v4 = vsel %vm13742_vm6, %v4945_v12, %v4949_v57  ;;  %v4958_v43 = vsel %vm13743_vm13, %v4953_v1, %v4957_v25  ;;  %v4965_v40 = vrot.slane %v4963_v36, 1  ;;  %v11926_v32 = vadd.f32 %v2606_v35, %v2145_v44  ;;  %v8376_v54 = vpop.f32.mrf.mxu0  ;;  %v9089_v12 = vld [vmem:[#allocation2 + $0x34] sm:$0xf] }
 0x270   : > { %8590 = vmatmul.mubr.bf16.gmra.mxu0 %v4950_v4  ;;  %v8331_v0 = vpop.f32.mrf.mxu1  ;;  %v11930_v53 = vadd.f32 %v8376_v54, %v8328_v42  ;;  %v9093_v54 = vld [vmem:[#allocation2 + $0x54] sm:$0xf]  ;;  %vm13764_vm13 = vsmask.f32 4352 }
 0x271   : > { %8614 = vmatmul.mubr.bf16.vlgmr.msra.gmra.mxu1 %v5415_v63  ;;  %8593 = vmatprep.mubr.bf16.mxu0 %v4958_v43  ;;  %v4966_v6 = vsel %vm13744_vm10, %v4961_v7, %v4965_v40  ;;  %v2609_v18 = vpop.f32.mrf.mxu0  ;;  %v13745_v43 = vld [vmem:[#allocation74_spill] sm:$0xff]  ;;  %v9092_v7 = vld [vmem:[#allocation2 + $0x48] sm:$0xf] }
 0x272   : > { %8694 = vmatpush3.bf16.msra.mxu1 %v11679_v13  ;;  %8617 = vmatprep.mubr.bf16.mxu1 %v11790_v48  ;;  %v2161_v58 = vpop.f32.mrf.mxu1  ;;  %v11932_v51 = vadd.f32 %v2609_v18, %v2148_v10  ;;  %v7650_v40 = vcombine.low %v9092_v7, %v13690_v37  ;;  %v7651_v18 = vcombine.low %v11462_v11, %v9093_v54  ;;  %v13752_v11 = vld [vmem:[#allocation32_spill] sm:$0xff] }
 0x273   : > { %8695 = vmatprep.subr.bf16.mxu1 %v9011_v33  ;;  %v8379_v42 = vpop.f32.mrf.mxu0  ;;  %vm13753_vm8 = vcmp.ne.s16.totalorder %v13752_v11, 0  ;;  %v13756_v54 = vld [vmem:[#allocation36_spill] sm:$0xff] }
 0x274   : > { %v8332_v13 = vpop.f32.mrf.mxu1  ;;  %v11942_v25 = vadd.f32 %v8379_v42, %v8331_v0  ;;  %vm13757_vm1 = vcmp.ne.s16.totalorder %v13756_v54, 0  ;;  %v9098_v54 = vld [vmem:[#allocation2 + $0x70] sm:$0xf] }
 0x276   : > { %8696 = vmatpush3.bf16.msra.mxu1 %v9011_v33  ;;  %v2164_v48 = vpop.f32.mrf.mxu1 }
 0x277   : > { %8697 = vmatprep.subr.bf16.mxu1 %v9013_v15 }
 0x278   : > { %8594 = vmatmul.mubr.bf16.gmra.mxu0 %v4966_v6  ;;  %v8335_v41 = vpop.f32.mrf.mxu1 }
 0x279   : > { %8618 = vmatmul.mubr.bf16.gmra.mxu1 %v11793_v22  ;;  %8661 = vmatprep.mubr.bf16.mxu0 %v7644_v59  ;;  %v9022_v22 = vld [vmem:[#allocation8 + $0x210] sm:$0xff]  }
 0x27a   : > { %8621 = vmatprep.mubr.bf16.mxu1 %v11813_v5  ;;  %8698 = vmatpush3.bf16.msra.mxu1 %v9013_v15  ;;  %v2177_v61 = vpop.f32.mrf.mxu1  ;;  %v7646_v5 = vcombine.low %v9088_v27, %v13671_v23 }
 0x27b   : > { %8699 = vmatprep.subr.bf16.mxu1 %v9016_v60 }
 0x27c   : > { %v8336_v21 = vpop.f32.mrf.mxu1 }
 0x27e   : > { %8700 = vmatpush3.bf16.msra.mxu1 %v9016_v60  ;;  %v2180_v57 = vpop.f32.mrf.mxu1 }
 0x27f   : > { %8701 = vmatprep.subr.bf16.mxu1 %v9019_v16 }
 0x280   : > { %8662 = vmatmul.mubr.bf16.vlgmr.msra.gmra.mxu0 %v7645_v29  ;;  %v11934_v23 = vpop.f32.mrf.mxu1 }
 0x281   : > { %8622 = vmatmul.mubr.bf16.gmra.mxu1 %v11818_v56  ;;  %8665 = vmatprep.mubr.bf16.mxu0 %v7646_v5  ;;  %v7647_v56 = vcombine.low %v13667_v31, %v9089_v12  ;;  %v2622_v31 = vpop.f32.mrf.mxu0  ;;  %v13750_v12 = vld [vmem:[#allocation24_spill] sm:$0xff] }
 0x282   : > { %8625 = vmatprep.mubr.bf16.mxu1 %v11831_v39  ;;  %8702 = vmatpush3.bf16.msra.mxu1 %v9019_v16  ;;  %v9090_v39 = vld [vmem:[#allocation2 + $0x38] sm:$0xf]  ;;  %v11939_v1 = vpop.f32.mrf.mxu1  ;;  %v11946_v33 = vadd.f32 %v2622_v31, %v2161_v58  ;;  %v11961_v58 = vld [vmem:[#allocation2 + $0x94] sm:$0xf]  ;;  %vm13751_vm15 = vnez %v13750_v12  ;;  %v9096_v12 = vld [vmem:[#allocation2 + $0x68] sm:$0xf] }
 0x283   : > { %8703 = vmatprep.subr.bf16.mxu1 %v9022_v22  ;;  %v7648_v44 = vcombine.low %v9090_v39, %v13684_v47  ;;  %v8380_v47 = vpop.f32.mrf.mxu0  ;;  %v9094_v39 = vld [vmem:[#allocation2 + $0x58] sm:$0xf] }
 0x284   : > { %v11944_v63 = vpop.f32.mrf.mxu1 }
 0x285   : > { %v2625_v36 = vpop.f32.mrf.mxu0 }
 0x286   : > { %8704 = vmatpush3.bf16.msra.mxu1 %v9022_v22  ;;  %v11948_v4 = vpop.f32.mrf.mxu1  ;;  %v11955_v15 = vadd.f32 %v2625_v36, %v2164_v48  ;;  %v13746_v48 = vld [vmem:[#allocation17_spill] sm:$0xff]  ;;  %v6156_v22 = vld [vmem:[#allocation2 + $0x24] sm:$0xf] }
 0x287   : > { %8705 = vmatprep.subr.bf16.mxu1 %v9025_v34  ;;  %v8383_v60 = vpop.f32.mrf.mxu0  ;;  %vm13747_vm7 = vcmp.ne.s16.totalorder %v13746_v48, 0 }
 0x288   : > { %8666 = vmatmul.mubr.bf16.gmra.mxu0 %v7647_v56  ;;  %v11952_v30 = vpop.f32.mrf.mxu1  ;;  %v11964_v6 = vadd.f32 %v8383_v60, %v8335_v41  ;;  %v5289_v37 = vsel %vm13747_vm7, %v11961_v58, 0  ;;  %v6155_v41 = vld [vmem:[#allocation2 + $0x20] sm:$0xf]  ;;  %v6187_v56 = vsel %vm13751_vm15, %v6154_v20, 0  ;;  %v6157_v60 = vld [vmem:[#allocation2 + $0x28] sm:$0xf] }
 0x289   : > { %8626 = vmatmul.mubr.bf16.gmra.mxu1 %v11834_v28  ;;  %8669 = vmatprep.mubr.bf16.mxu0 %v7648_v44  ;;  %v11950_v28 = vadd.f32 %v8380_v47, %v8332_v13  ;;  %v2638_v13 = vpop.f32.mrf.mxu0  ;;  %v7635_v27 = vcombine.low %v5289_v37, %v5289_v37  ;;  %v6188_v31 = vsel %vm13753_vm8, %v6155_v41, 0  ;;  %v13754_v47 = vld [vmem:[#allocation31_spill] sm:$0xff]  ;;  %v9095_v37 = vld [vmem:[#allocation2 + $0x64] sm:$0xf]  ;;  %v6159_v41 = vld [vmem:[#allocation2 + $0x30] sm:$0xf] }
 0x28a   : > { %8629 = vmatprep.mubr.bf16.mxu1 %v11858_v52  ;;  %8706 = vmatpush3.bf16.msra.mxu1 %v9025_v34  ;;  %v9091_v52 = vld [vmem:[#allocation2 + $0x44] sm:$0xf]  ;;  %v11959_v0 = vpop.f32.mrf.mxu1  ;;  %v11971_v16 = vadd.f32 %v2638_v13, %v2177_v61  ;;  %v13748_v34 = vld [vmem:[#allocation23_spill] sm:$0xff]  ;;  %vm13755_vm4 = vnez %v13754_v47  ;;  %v6158_v13 = vld [vmem:[#allocation2 + $0x2c] sm:$0xf] }
 0x28b   : > { %8707 = vmatprep.subr.bf16.mxu1 %v9028_v19  ;;  %v7649_v10 = vcombine.low %v13745_v43, %v9091_v52  ;;  %v8384_v29 = vpop.f32.mrf.mxu0  ;;  %vm13749_vm9 = vcmp.ne.s16.totalorder %v13748_v34, 0  ;;  %v6189_v36 = vsel %vm13755_vm4, %v6156_v22, 0  ;;  %v5534_v43 = vshrl.u32 %v7635_v27, 16  ;;  %v6160_v22 = vld [vmem:[#allocation2 + $0x34] sm:$0xf] }
 0x28c   : > { %v11966_v59 = vpop.f32.mrf.mxu1  ;;  %v11975_v35 = vadd.f32 %v8384_v29, %v8336_v21  ;;  %v6186_v61 = vsel %vm13749_vm9, %v6153_v46, 0  ;;  %v7652_v21 = vcombine.low %v9094_v39, %v11464_v24  ;;  %v7653_v46 = vcombine.low %v11466_v26, %v9095_v37  ;;  %v13758_v34 = vld [vmem:[#allocation34_spill] sm:$0xff]  ;;  %v6161_v37 = vld [vmem:[#allocation2 + $0x38] sm:$0xf] }
 0x28d   : > { %v2641_v5 = vpop.f32.mrf.mxu0  ;;  %v7668_v24 = vcombine.low %v6186_v61, %v6187_v56  ;;  %vm13759_vm14 = vnez %v13758_v34  ;;  %v7654_v26 = vcombine.low %v9096_v12, %v13707_v50  ;;  %vm13769_vm9 = vsmask.f32 7424 }
 0x28e   : > { %8708 = vmatpush3.bf16.msra.mxu1 %v9028_v19  ;;  %v11984_v19 = vadd.f32 %v2641_v5, %v2180_v57  ;;  %v6191_v61 = vsel %vm13759_vm14, %v6158_v13, 0  ;;  %vm13778_vm14 = vmmov %vm13769_vm9 }
 0x28f   : > { %v8387_v42 = vpop.f32.mrf.mxu0  ;;  %v6322_v29 = vshll.u32 %v7668_v24, 16 }
 0x290   : > { %8670 = vmatmul.mubr.bf16.gmra.mxu0 %v7649_v10  ;;  %v11996_v57 = vadd.f32 %v8387_v42, %v11934_v23  ;;  %v5537_v10 = vshll.u32 %v7635_v27, 16  ;;  %v5536_v27 = vrot.slane %v5534_v43, 3  ;;  %v13760_v42 = vld [vmem:[#allocation37_spill] sm:$0xff] }
 0x291   : > { %8630 = vmatmul.mubr.bf16.gmra.mxu1 %v11861_v8  ;;  %8673 = vmatprep.mubr.bf16.mxu0 %v7650_v40  ;;  %v11973_v8 = vpop.f32.mrf.mxu1  ;;  %v12005_v40 = vcombine.low %v6188_v31, %v6189_v36  ;;  %vm13761_vm12 = vcmp.ne.s16.totalorder %v13760_v42, 0  ;;  %v13762_v31 = vld [vmem:[#allocation38_spill] sm:$0xff] }
 0x292   : > { %8633 = vmatprep.mubr.bf16.mxu1 %v11876_v2  ;;  %v5539_v5 = vrot.slane %v5537_v10, 4  ;;  %v6192_v11 = vsel %vm13761_vm12, %v6159_v41, 0  ;;  %vm13763_vm6 = vnez %v13762_v31  ;;  %v6163_v41 = vld [vmem:[#allocation2 + $0x40] sm:$0xf]  ;;  %vm13779_vm12 = vmmov %vm13769_vm9 }
 0x293   : > { %v11977_v2 = vpop.f32.mrf.mxu1  ;;  %v6327_v39 = vshll.u32 %v12005_v40, 16 }
 0x294   : > { %v5540_v43 = vor.u32 %v5539_v5, %v5536_v27 }
 0x295   : > { %v11988_v44 = vpop.f32.mrf.mxu1  ;;  %v6329_v13 = vrot.slane %v6327_v39, 1  ;;  %v13765_v39 = vld [vmem:[#allocation41_spill] sm:$0xff] }
 0x296   : > { %vm13766_vm10 = vcmp.ne.s16.totalorder %v13765_v39, 0 }
 0x297   : > { %v11998_v52 = vpop.f32.mrf.mxu1 }
 0x298   : > { %8674 = vmatmul.mubr.bf16.gmra.mxu0 %v7651_v18  ;;  %v6190_v18 = vsel %vm13757_vm1, %v6157_v60, 0  ;;  %v6320_v60 = vshrl.u32 %v7668_v24, 16  ;;  %v9099_v24 = vld [vmem:[#allocation2 + $0x78] sm:$0xf] }
 0x299   : > { %8634 = vmatmul.mubr.bf16.gmra.mxu1 %v11879_v38  ;;  %8677 = vmatprep.mubr.bf16.mxu0 %v7652_v21  ;;  %v2654_v38 = vpop.f32.mrf.mxu0  ;;  %v7670_v36 = vcombine.low %v6190_v18, %v6191_v61  ;;  %v9100_v61 = vld [vmem:[#allocation2 + $0x7c] sm:$0xf] }
 0x29a   : > { %8637 = vmatprep.mubr.bf16.mxu1 %v11893_v9  ;;  %v12001_v7 = vadd.f32 %v2654_v38, %v11939_v1  ;;  %v12003_v9 = vpop.f32.mrf.mxu1  ;;  %v7656_v12 = vcombine.low %v9099_v24, %v9100_v61 }
 0x29b   : > { %v8388_v48 = vpop.f32.mrf.mxu0  ;;  %v6335_v18 = vshll.u32 %v7670_v36, 16 }
 0x29c   : > { %v12008_v23 = vadd.f32 %v8388_v48, %v11944_v63  ;;  %v12011_v20 = vpop.f32.mrf.mxu1 }
 0x29d   : > { %v2657_v1 = vpop.f32.mrf.mxu0 }
 0x29e   : > { %v12018_v63 = vadd.f32 %v2657_v1, %v11948_v4  ;;  %v12022_v56 = vpop.f32.mrf.mxu1  ;;  %v6193_v4 = vsel %vm13763_vm6, %v6160_v22, 0  ;;  %v6164_v22 = vld [vmem:[#allocation2 + $0x44] sm:$0xf] }
 0x29f   : > { %v8391_v21 = vpop.f32.mrf.mxu0  ;;  %v12040_v48 = vcombine.low %v6192_v11, %v6193_v4 }
 0x2a0   : > { %8678 = vmatmul.mubr.bf16.gmra.mxu0 %v7653_v46  ;;  %v12031_v47 = vadd.f32 %v8391_v21, %v11952_v30  ;;  %v12033_v50 = vpop.f32.mrf.mxu1  ;;  %v6162_v46 = vld [vmem:[#allocation2 + $0x3c] sm:$0xf]  ;;  %v6194_v21 = vsel %vm13766_vm10, %v6161_v37, 0  ;;  %v6165_v37 = vld [vmem:[#allocation2 + $0x48] sm:$0xf] }
 0x2a1   : > { %8638 = vmatmul.mubr.bf16.gmra.mxu1 %v11899_v55  ;;  %8681 = vmatprep.mubr.bf16.mxu0 %v7654_v26  ;;  %v6324_v55 = vrot.slane %v6322_v29, 1  ;;  %v2670_v38 = vpop.f32.mrf.mxu0  ;;  %v9097_v29 = vld [vmem:[#allocation2 + $0x74] sm:$0xf]  ;;  %v5541_v26 = vsel %vm13764_vm13, %v11901_v49, %v5540_v43  ;;  %v6343_v4 = vshll.u32 %v12040_v48, 16  ;;  %v6331_v43 = vshrl.u32 %v12005_v40, 16 }
 0x2a2   : > { %8641 = vmatprep.mubr.bf16.mxu1 %v11908_v45  ;;  %v12036_v10 = vadd.f32 %v2670_v38, %v11959_v0  ;;  %v12038_v45 = vpop.f32.mrf.mxu1  ;;  %v7655_v27 = vcombine.low %v9098_v54, %v9097_v29 }
 0x2a3   : > { %v8392_v30 = vpop.f32.mrf.mxu0  ;;  %v6325_v0 = vor.u32 %v6324_v55, %v6320_v60  ;;  %v13770_v55 = vld [vmem:[#allocation45_spill] sm:$0xff]  ;;  %v13772_v60 = vld [vmem:[#allocation42_spill] sm:$0xff] }
 0x2a4   : > { %v12043_v1 = vadd.f32 %v8392_v30, %v11966_v59  ;;  %v12045_v5 = vpop.f32.mrf.mxu1  ;;  %v13767_v59 = vld [vmem:[#allocation40_spill] sm:$0xff]  ;;  %vm13771_vm15 = vcmp.ne.s16.totalorder %v13770_v55, 0  ;;  %vm13773_vm8 = vnez %v13772_v60 }
 0x2a5   : > { %v12047_v34 = vpop.f32.mrf.mxu0  ;;  %vm13768_vm7 = vnez %v13767_v59  ;;  %v6330_v11 = vsel %vm13769_vm9, %v6325_v0, %v6329_v13  ;;  %v6196_v38 = vsel %vm13771_vm15, %v6163_v41, 0  ;;  %v6197_v30 = vsel %vm13773_vm8, %v6164_v22, 0  ;;  %v13774_v59 = vld [vmem:[#allocation47_spill] sm:$0xff]  ;;  %v9102_v60 = vld [vmem:[#allocation2 + $0x80] sm:$0xf]  ;;  %vm13788_vm15 = vmmov %vm13769_vm9 }
 0x2a6   : > { %v6195_v42 = vsel %vm13768_vm7, %v6162_v46, 0  ;;  %v12056_v31 = vpop.f32.mrf.mxu1  ;;  %v6166_v46 = vld [vmem:[#allocation2 + $0x4c] sm:$0xf]  ;;  %v6337_v0 = vrot.slane %v6335_v18, 1  ;;  %v6333_v41 = vor.u32 %v6331_v43, %v6329_v13  ;;  %v12069_v39 = vcombine.low %v6196_v38, %v6197_v30  ;;  %v9103_v43 = vld [vmem:[#allocation2 + $0x88] sm:$0xf] }
 0x2a7   : > { %v8395_v49 = vpop.f32.mrf.mxu0  ;;  %v7672_v24 = vcombine.low %v6194_v21, %v6195_v42  ;;  %vm13775_vm4 = vcmp.ne.s16.totalorder %v13774_v59, 0  ;;  %v6167_v21 = vld [vmem:[#allocation2 + $0x50] sm:$0xf]  ;;  %v6168_v42 = vld [vmem:[#allocation2 + $0x54] sm:$0xf] }
 0x2a8   : > { %8682 = vmatmul.mubr.bf16.gmra.mxu0 %v7655_v27  ;;  %v12065_v29 = vadd.f32 %v8395_v49, %v11977_v2  ;;  %v12067_v54 = vpop.f32.mrf.mxu1  ;;  %v6345_v27 = vrot.slane %v6343_v4, 1  ;;  %v6198_v2 = vsel %vm13775_vm4, %v6165_v37, 0  ;;  %v6338_v4 = vsel %vm13778_vm14, %v6333_v41, %v6337_v0  ;;  %vm13798_vm14 = vmmov %vm13769_vm9 }
 0x2a9   : > { %8642 = vmatmul.mubr.bf16.gmra.mxu1 %v5541_v26  ;;  %8685 = vmatprep.mubr.bf16.mxu0 %v7656_v12  ;;  %v2686_v61 = vpop.f32.mrf.mxu0  ;;  %v6339_v26 = vshrl.u32 %v7670_v36, 16  ;;  %v6351_v36 = vshll.u32 %v7672_v24, 16  ;;  %v7658_v37 = vcombine.low %v9103_v43, %v11642_v62 }
 0x2aa   : > { %8709 = vmatprep.mubr.bf16.mxu1 %v6330_v11  ;;  %v12072_v22 = vadd.f32 %v2686_v61, %v11988_v44  ;;  %v12074_v40 = vpop.f32.mrf.mxu1  ;;  %v13776_v11 = vld [vmem:[#allocation43_spill] sm:$0xff]  ;;  %v9101_v44 = vld [vmem:[#allocation2 + $0x84] sm:$0xf]  ;;  %v6359_v61 = vshll.u32 %v12069_v39, 16 }
 0x2ab   : > { %vm13777_vm1 = vnez %v13776_v11  ;;  %v8396_v55 = vpop.f32.mrf.mxu0  ;;  %v6341_v13 = vor.u32 %v6339_v26, %v6337_v0  ;;  %v7657_v30 = vcombine.low %v9102_v60, %v9101_v44  ;;  %v6347_v11 = vshrl.u32 %v12040_v48, 16  ;;  %v13780_v0 = vld [vmem:[#allocation49_spill] sm:$0xff]  ;;  %v6169_v44 = vld [vmem:[#allocation2 + $0x58] sm:$0xf]  ;;  %v6170_v60 = vld [vmem:[#allocation2 + $0x5c] sm:$0xf] }
 0x2ac   : > { %v6199_v12 = vsel %vm13777_vm1, %v6166_v46, 0  ;;  %v12081_v18 = vadd.f32 %v8396_v55, %v11998_v52  ;;  %v8423_v46 = vpop.f32.mrf.mxu1  ;;  %vm13781_vm6 = vcmp.ne.s16.totalorder %v13780_v0, 0 }
 0x2ad   : > { %v12083_v38 = vpop.f32.mrf.mxu0  ;;  %v12086_v49 = vcombine.low %v6198_v2, %v6199_v12  ;;  %v6346_v52 = vsel %vm13779_vm12, %v6341_v13, %v6345_v27  ;;  %v12092_v59 = vadd.f32 %v8423_v46, %v11922_v17  ;;  %v6200_v41 = vsel %vm13781_vm6, %v6167_v21, 0  ;;  %v13782_v2 = vld [vmem:[#allocation35_spill] sm:$0xff]  ;;  %vm13799_vm12 = vmmov %vm13769_vm9 }
 0x2ae   : > { %vm13783_vm13 = vnez %v13782_v2  ;;  %v3581_v55 = vpop.f32.mrf.mxu1  ;;  %v6353_v13 = vrot.slane %v6351_v36, 1  ;;  %v6361_v46 = vrot.slane %v6359_v61, 1  ;;  %v6172_v2 = vld [vmem:[#allocation2 + $0x64] sm:$0xf]  ;;  %vm13804_vm6 = vmmov %vm13769_vm9 }
 0x2af   : > { %v8399_v26 = vpop.f32.mrf.mxu0  ;;  %v6201_v62 = vsel %vm13783_vm13, %v6168_v42, 0  ;;  %v12103_v17 = vadd.f32 %v3581_v55, %v11926_v32  ;;  %v6367_v48 = vshll.u32 %v12086_v49, 16  ;;  %v6355_v42 = vshrl.u32 %v7672_v24, 16  ;;  %v13784_v32 = vld [vmem:[#allocation50_spill] sm:$0xff] }
 0x2b0   : > { %8686 = vmatmul.mubr.bf16.gmra.mxu0 %v7657_v30  ;;  %v12100_v12 = vadd.f32 %v8399_v26, %v12011_v20  ;;  %v8424_v43 = vpop.f32.mrf.mxu1  ;;  %v12109_v20 = vcombine.low %v6200_v41, %v6201_v62  ;;  %vm13785_vm10 = vcmp.ne.s16.totalorder %v13784_v32, 0  ;;  %v6171_v41 = vld [vmem:[#allocation2 + $0x60] sm:$0xf] }
 0x2b1   : > { %8710 = vmatmul.mubr.bf16.vlgmr.msra.gmra.mxu1 %v6338_v4  ;;  %8689 = vmatprep.mubr.bf16.mxu0 %v7658_v37  ;;  %v2702_v30 = vpop.f32.mrf.mxu0  ;;  %v6349_v4 = vor.u32 %v6347_v11, %v6345_v27  ;;  %v12113_v26 = vadd.f32 %v8424_v43, %v11930_v53  ;;  %v6202_v27 = vsel %vm13785_vm10, %v6169_v44, 0  ;;  %v13786_v11 = vld [vmem:[#allocation39_spill] sm:$0xff]  ;;  %v6357_v61 = vor.u32 %v6355_v42, %v6353_v13  ;;  %v6173_v42 = vld [vmem:[#allocation2 + $0x68] sm:$0xf] }
 0x2b2   : > { %8713 = vmatprep.mubr.bf16.mxu1 %v6346_v52  ;;  %v12107_v21 = vadd.f32 %v2702_v30, %v12022_v56  ;;  %v9104_v52 = vld [vmem:[#allocation2 + $0x90] sm:$0xf]  ;;  %vm13787_vm7 = vnez %v13786_v11  ;;  %v3584_v24 = vpop.f32.mrf.mxu1  ;;  %v6369_v55 = vrot.slane %v6367_v48, 1  ;;  %v13791_v48 = vld [vmem:[#allocation44_spill] sm:$0xff] }
 0x2b3   : > { %v8400_v37 = vpop.f32.mrf.mxu0  ;;  %v7659_v36 = vcombine.low %v9104_v52, %v11961_v58  ;;  %v6203_v0 = vsel %vm13787_vm7, %v6170_v60, 0  ;;  %v12125_v58 = vadd.f32 %v3584_v24, %v11932_v51  ;;  %v6354_v53 = vsel %vm13769_vm9, %v6349_v4, %v6353_v13  ;;  %v13789_v13 = vld [vmem:[#allocation51_spill] sm:$0xff] }
 0x2b4   : > { %v12120_v56 = vadd.f32 %v8400_v37, %v12033_v50  ;;  %v8427_v30 = vpop.f32.mrf.mxu1  ;;  %v6362_v44 = vsel %vm13788_vm15, %v6357_v61, %v6361_v46  ;;  %v6363_v60 = vshrl.u32 %v12069_v39, 16  ;;  %v6375_v50 = vshll.u32 %v12109_v20, 16  ;;  %v6174_v37 = vld [vmem:[#allocation2 + $0x6c] sm:$0xf]  ;;  %v13793_v61 = vld [vmem:[#allocation52_spill] sm:$0xff] }
 0x2b5   : > { %v12122_v62 = vpop.f32.mrf.mxu0  ;;  %v7676_v43 = vcombine.low %v6202_v27, %v6203_v0  ;;  %v12132_v32 = vadd.f32 %v8427_v30, %v11942_v25  ;;  %v6371_v51 = vshrl.u32 %v12086_v49, 16  ;;  %vm13790_vm8 = vcmp.ne.s16.totalorder %v13789_v13, 0 }
 0x2b6   : > { %v6204_v4 = vsel %vm13790_vm8, %v6171_v41, 0  ;;  %vm13792_vm4 = vnez %v13791_v48  ;;  %v3597_v27 = vpop.f32.mrf.mxu1  ;;  %v6365_v0 = vor.u32 %v6363_v60, %v6361_v46  ;;  %vm13794_vm1 = vcmp.ne.s16.totalorder %v13793_v61, 0  ;;  %v6175_v41 = vld [vmem:[#allocation2 + $0x70] sm:$0xf]  ;;  %v6176_v60 = vld [vmem:[#allocation2 + $0x74] sm:$0xf] }
 0x2b7   : > { %v8403_v52 = vpop.f32.mrf.mxu0  ;;  %v6205_v11 = vsel %vm13792_vm4, %v6172_v2, 0  ;;  %v6373_v25 = vor.u32 %v6371_v51, %v6369_v55  ;;  %v6207_v30 = vsel %vm13640_vm3, %v6174_v37, 0  ;;  %v6379_v37 = vshrl.u32 %v12109_v20, 16  ;;  %v13796_v48 = vld [vmem:[#allocation57_spill] sm:$0xff] }
 0x2b8   : > { %8690 = vmatmul.mubr.bf16.gmra.mxu0 %v7659_v36  ;;  %v12140_v39 = vadd.f32 %v8403_v52, %v12045_v5  ;;  %v12143_v36 = vadd.f32 %v3597_v27, %v11946_v33  ;;  %v8428_v2 = vpop.f32.mrf.mxu1  ;;  %v6377_v5 = vrot.slane %v6375_v50, 1  ;;  %v6383_v52 = vshll.u32 %v7676_v43, 16 }
 0x2b9   : > { %8714 = vmatmul.mubr.bf16.gmra.mxu1 %v6354_v53  ;;  %v2718_v24 = vpop.f32.mrf.mxu0  ;;  %v6206_v53 = vsel %vm13794_vm1, %v6173_v42, 0  ;;  %v12152_v13 = vcombine.low %v6204_v4, %v6205_v11  ;;  %v12155_v33 = vadd.f32 %v8428_v2, %v11950_v28  ;;  %vm13797_vm3 = vcmp.ne.s16.totalorder %v13796_v48, 0 }
 0x2ba   : > { %8717 = vmatprep.mubr.bf16.mxu1 %v6362_v44  ;;  %v12150_v44 = vadd.f32 %v2718_v24, %v12056_v31  ;;  %v3600_v42 = vpop.f32.mrf.mxu1  ;;  %v6208_v31 = vsel %vm13797_vm3, %v6175_v41, 0  ;;  %v6370_v4 = vsel %vm13798_vm14, %v6365_v0, %v6369_v55  ;;  %v6387_v11 = vshrl.u32 %v7676_v43, 16  ;;  %v6177_v0 = vld [vmem:[#allocation2 + $0x78] sm:$0xf] }
 0x2bb   : > { %v8404_v46 = vpop.f32.mrf.mxu0  ;;  %v12166_v50 = vadd.f32 %v3600_v42, %v11955_v15  ;;  %v7678_v28 = vcombine.low %v6206_v53, %v6207_v30  ;;  %v6385_v61 = vrot.slane %v6383_v52, 1  ;;  %v6391_v49 = vshll.u32 %v12152_v13, 16  ;;  %v6178_v53 = vld [vmem:[#allocation2 + $0x7c] sm:$0xf] }
 0x2bc   : > { %v12158_v51 = vadd.f32 %v8404_v46, %v12067_v54  ;;  %v8431_v24 = vpop.f32.mrf.mxu1  ;;  %v6378_v54 = vsel %vm13799_vm12, %v6373_v25, %v6377_v5  ;;  %v6209_v2 = vsel %vm13644_vm2, %v6176_v60, 0  ;;  %v6381_v43 = vor.u32 %v6379_v37, %v6377_v5  ;;  %v13801_v5 = vld [vmem:[#allocation58_spill] sm:$0xff] }
 0x2bd   : > { %v12163_v27 = vpop.f32.mrf.mxu0  ;;  %v12174_v46 = vadd.f32 %v8431_v24, %v11964_v6  ;;  %v6399_v52 = vshll.u32 %v7678_v28, 16  ;;  %v12182_v42 = vcombine.low %v6208_v31, %v6209_v2  ;;  %v6389_v48 = vor.u32 %v6387_v11, %v6385_v61  ;;  %v6179_v11 = vld [vmem:[#allocation2 + $0x80] sm:$0xf] }
 0x2be   : > { %v3613_v55 = vpop.f32.mrf.mxu1  ;;  %vm13802_vm2 = vcmp.ne.s16.totalorder %v13801_v5, 0  ;;  %v6395_v2 = vshrl.u32 %v12152_v13, 16 }
 0x2bf   : > { %v8471_v41 = vpop.f32.mrf.mxu0  ;;  %v12180_v25 = vadd.f32 %v3613_v55, %v11971_v16  ;;  %v6210_v37 = vsel %vm13802_vm2, %v6177_v0, 0  ;;  %v6211_v16 = vsel %vm11222_vm0, %v6178_v53, 0  ;;  %v6401_v55 = vrot.slane %v6399_v52, 1  ;;  %vm13805_vm0 = vmmov %vm13804_vm6 }
 0x2c0   : > { %v12177_v15 = vadd.f32 %v8471_v41, %v12092_v59  ;;  %v8432_v6 = vpop.f32.mrf.mxu1  ;;  %v6403_v0 = vshrl.u32 %v7678_v28, 16  ;;  %vm13814_vm15 = vmmov %vm13805_vm0 }
 0x2c1   : > { %8718 = vmatmul.mubr.bf16.gmra.mxu1 %v6370_v4  ;;  %v4156_v30 = vpop.f32.mrf.mxu0  ;;  %v6393_v4 = vrot.slane %v6391_v49, 1  ;;  %v12188_v59 = vadd.f32 %v8432_v6, %v11975_v35  ;;  %v6180_v49 = vld [vmem:[#allocation2 + $0x84] sm:$0xf]  ;;  %v7680_v6 = vcombine.low %v6210_v37, %v6211_v16  ;;  %vm13815_vm8 = vmmov %vm13805_vm0 }
 0x2c2   : > { %8721 = vmatprep.mubr.bf16.mxu1 %v6378_v54  ;;  %v12185_v60 = vadd.f32 %v4156_v30, %v12103_v17  ;;  %v3616_v31 = vpop.f32.mrf.mxu1  ;;  %v6386_v17 = vsel %vm13804_vm6, %v6381_v43, %v6385_v61  ;;  %v6407_v30 = vshll.u32 %v12182_v42, 16  ;;  %v13806_v43 = vld [vmem:[#allocation59_spill] sm:$0xff]  ;;  %vm13819_vm1 = vmmov %vm13805_vm0 }
 0x2c3   : > { %v8472_v24 = vpop.f32.mrf.mxu0  ;;  %v12202_v35 = vadd.f32 %v3616_v31, %v11984_v19  ;;  %vm13807_vm13 = vcmp.ne.s16.totalorder %v13806_v43, 0  ;;  %v13808_v19 = vld [vmem:[#allocation53_spill] sm:$0xff]  ;;  %v6397_v31 = vor.u32 %v6395_v2, %v6393_v4  ;;  %v13810_v2 = vld [vmem:[#allocation63_spill] sm:$0xff]  ;;  %vm13821_vm3 = vmmov %vm13805_vm0 }
 0x2c4   : > { %v12195_v20 = vadd.f32 %v8472_v24, %v12113_v26  ;;  %v8435_v53 = vpop.f32.mrf.mxu1  ;;  %v6394_v26 = vsel %vm13805_vm0, %v6389_v48, %v6393_v4  ;;  %v9032_v24 = vld [vmem:[#allocation9 + $0x38] sm:$0xff]   ;;  %v6212_v5 = vsel %vm13807_vm13, %v6179_v11, 0  ;;  %vm13809_vm10 = vnez %v13808_v19  ;;  %v6182_v48 = vld [vmem:[#allocation2 + $0x8c] sm:$0xf]  ;;  %vm13822_vm14 = vmmov %vm13805_vm0 }
 0x2c5   : > { %v12199_v41 = vpop.f32.mrf.mxu0  ;;  %v12207_v13 = vadd.f32 %v8435_v53, %v11996_v57  ;;  %v6213_v52 = vsel %vm13809_vm10, %v6180_v49, 0  ;;  %8741 = vmatprep.subr.bf16.mxu0 %v9032_v24  ;;  %v6405_v57 = vor.u32 %v6403_v0, %v6401_v55  ;;  %v6409_v53 = vrot.slane %v6407_v30, 1  ;;  %v6184_v30 = vld [vmem:[#allocation2 + $0x94] sm:$0xf] }
 0x2c6   : > { %v3629_v54 = vpop.f32.mrf.mxu1  ;;  %8742 = vmatpush3.bf16.msra.mxu0 %v9032_v24  ;;  %v6415_v49 = vshll.u32 %v7680_v6, 16  ;;  %v12222_v43 = vcombine.low %v6212_v5, %v6213_v52  ;;  %vm13811_vm7 = vcmp.ne.s16.totalorder %v13810_v2, 0  ;;  %v6411_v5 = vshrl.u32 %v12182_v42, 16 }
 0x2c7   : > { %v8475_v61 = vpop.f32.mrf.mxu0  ;;  %v12217_v16 = vadd.f32 %v3629_v54, %v12001_v7  ;;  %v13812_v7 = vld [vmem:[#allocation71_spill] sm:$0xff]  ;;  %v6402_v54 = vsel %vm13814_vm15, %v6397_v31, %v6401_v55  ;;  %v6217_v42 = vsel %vm13701_vm11, %v6184_v30, 0  ;;  %v9033_v55 = vld [vmem:[#allocation9 + $0x30] sm:$0xff]   ;;  %vm13818_vm11 = vmmov %vm13805_vm0 }
 0x2c8   : > { %v12214_v28 = vadd.f32 %v8475_v61, %v12132_v32  ;;  %v6183_v32 = vld [vmem:[#allocation2 + $0x90] sm:$0xf]  ;;  %vm13813_vm9 = vnez %v13812_v7  ;;  %8743 = vmatprep.subr.bf16.mxu0 %v9033_v55 }
 0x2c9   : > { %8722 = vmatmul.mubr.bf16.gmra.mxu1 %v6386_v17  ;;  %v6181_v17 = vld [vmem:[#allocation2 + $0x88] sm:$0xf]  ;;  %v4172_v37 = vpop.f32.mrf.mxu0  ;;  %v6215_v0 = vsel %vm13813_vm9, %v6182_v48, 0 }
 0x2ca   : > { %8725 = vmatprep.mubr.bf16.mxu1 %v6394_v26  ;;  %v12220_v11 = vadd.f32 %v4172_v37, %v12143_v36  ;;  %v8436_v26 = vpop.f32.mrf.mxu1  ;;  %v6214_v19 = vsel %vm13811_vm7, %v6181_v17, 0  ;;  %v6410_v37 = vsel %vm13815_vm8, %v6405_v57, %v6409_v53  ;;  %v6419_v17 = vshrl.u32 %v7680_v6, 16  ;;  %8744 = vmatpush3.bf16.msra.mxu0 %v9033_v55 }
 0x2cb   : > { %v8476_v61 = vpop.f32.mrf.mxu0  ;;  %v12225_v4 = vadd.f32 %v8436_v26, %v12008_v23  ;;  %v13816_v26 = vld [vmem:[#allocation88_spill] sm:$0xff]  ;;  %v7682_v7 = vcombine.low %v6214_v19, %v6215_v0  ;;  %v6185_v0 = vld [vmem:[#allocation2 + $0x98] sm:$0x1] }
 0x2cc   : > { %v12232_v24 = vadd.f32 %v8476_v61, %v12155_v33  ;;  %v3632_v36 = vpop.f32.mrf.mxu1  ;;  %vm13817_vm4 = vcmp.ne.s16.totalorder %v13816_v26, 0  ;;  %v6417_v33 = vrot.slane %v6415_v49, 1  ;;  %v6423_v61 = vshll.u32 %v12222_v43, 16 }
 0x2cd   : > { %v12236_v52 = vpop.f32.mrf.mxu0  ;;  %v12239_v23 = vadd.f32 %v3632_v36, %v12018_v63  ;;  %v6216_v48 = vsel %vm13817_vm4, %v6183_v32, 0  ;;  %v6413_v36 = vor.u32 %v6411_v5, %v6409_v53  ;;  %v6218_v5 = vsel %vm13736_vm5, %v6185_v0, 0  ;;  %vm13820_vm5 = vmmov %vm13805_vm0 }
 0x2ce   : > { %v8439_v2 = vpop.f32.mrf.mxu1  ;;  %v7683_v19 = vcombine.low %v6216_v48, %v6217_v42  ;;  %v7684_v3 = vcombine.low %v6218_v5, %v6218_v5 }
 0x2cf   : > { %v8479_v31 = vpop.f32.mrf.mxu0  ;;  %v12248_v63 = vadd.f32 %v8439_v2, %v12031_v47  ;;  %v6421_v47 = vor.u32 %v6419_v17, %v6417_v33  ;;  %v6418_v17 = vsel %vm13818_vm11, %v6413_v36, %v6417_v33 }
 0x2d0   : > { %v12251_v6 = vadd.f32 %v8479_v31, %v12174_v46  ;;  %v3645_v57 = vpop.f32.mrf.mxu1  ;;  %v2674_v46 = vadd.f32 %v12047_v34, %v11973_v8  ;;  %v6439_v55 = vshll.u32 %v7683_v19, 16 }
 0x2d1   : > { %8726 = vmatmul.mubr.bf16.gmra.mxu1 %v6402_v54  ;;  %v4188_v32 = vpop.f32.mrf.mxu0  ;;  %v12254_v49 = vadd.f32 %v3645_v57, %v12036_v10  ;;  %v6425_v54 = vrot.slane %v6423_v61, 1  ;;  %v6427_v61 = vshrl.u32 %v12222_v43, 16 }
 0x2d2   : > { %8729 = vmatprep.mubr.bf16.mxu1 %v6410_v37  ;;  %v12257_v14 = vadd.f32 %v4188_v32, %v12180_v25  ;;  %v8440_v30 = vpop.f32.mrf.mxu1  ;;  %v6431_v37 = vshll.u32 %v7682_v7, 16 }
 0x2d3   : > { %v8480_v26 = vpop.f32.mrf.mxu0  ;;  %v3727_v2 = vadd.f32 %v8440_v30, %v12043_v1  ;;  %v6426_v8 = vsel %vm13819_vm1, %v6421_v47, %v6425_v54  ;;  %v6435_v1 = vshrl.u32 %v7682_v7, 16  ;;  %v6429_v36 = vor.u32 %v6427_v61, %v6425_v54 }
 0x2d4   : > { %v12263_v10 = vadd.f32 %v8480_v26, %v12188_v59  ;;  %v3648_v53 = vpop.f32.mrf.mxu1  ;;  %v6433_v34 = vrot.slane %v6431_v37, 1  ;;  %v9034_v59 = vld [vmem:[#allocation9 + $0x28] sm:$0xff]   ;;  %v6441_v37 = vrot.slane %v6439_v55, 1  ;;  %v6443_v26 = vshrl.u32 %v7683_v19, 16 }
 0x2d5   : > { %v12267_v48 = vpop.f32.mrf.mxu0  ;;  %v3725_v25 = vadd.f32 %v3648_v53, %v2674_v46  ;;  %8745 = vmatprep.subr.bf16.mxu0 %v9034_v59  ;;  %v6447_v53 = vshll.u32 %v7684_v3, 16  ;;  %v2706_v3 = vadd.f32 %v12122_v62, %v12038_v45 }
 0x2d6   : > { %v8443_v42 = vpop.f32.mrf.mxu1  ;;  %8746 = vmatpush3.bf16.msra.mxu0 %v9034_v59  ;;  %v6437_v47 = vor.u32 %v6435_v1, %v6433_v34 }
 0x2d7   : > { %v8483_v31 = vpop.f32.mrf.mxu0  ;;  %v3730_v57 = vadd.f32 %v8443_v42, %v12065_v29  ;;  %v2690_v29 = vadd.f32 %v12083_v38, %v12003_v9  ;;  %v6449_v19 = vrot.slane %v6447_v53, 1 }
 0x2d8   : > { %v12274_v32 = vadd.f32 %v8483_v31, %v12207_v13  ;;  %v3661_v0 = vpop.f32.mrf.mxu1  ;;  %v6442_v42 = vsel %vm13821_vm3, %v6437_v47, %v6441_v37 }
 0x2d9   : > { %8730 = vmatmul.mubr.bf16.gmra.mxu1 %v6418_v17  ;;  %v4204_v33 = vpop.f32.mrf.mxu0  ;;  %v3728_v43 = vadd.f32 %v3661_v0, %v12072_v22 }
 0x2da   : > { %8733 = vmatprep.mubr.bf16.mxu1 %v6426_v8  ;;  %v12278_v30 = vadd.f32 %v4204_v33, %v12217_v16  ;;  %v8444_v7 = vpop.f32.mrf.mxu1  ;;  %v6434_v16 = vsel %vm13820_vm5, %v6429_v36, %v6433_v34  ;;  %v9035_v8 = vld [vmem:[#allocation9 + $0x20] sm:$0xff]  }
 0x2db   : > { %v8484_v46 = vpop.f32.mrf.mxu0  ;;  %v3731_v13 = vadd.f32 %v8444_v7, %v12081_v18  ;;  %v6445_v18 = vor.u32 %v6443_v26, %v6441_v37  ;;  %8747 = vmatprep.subr.bf16.mxu0 %v9035_v8 }
 0x2dc   : > { %v12284_v5 = vadd.f32 %v8484_v46, %v12225_v4  ;;  %v3664_v22 = vpop.f32.mrf.mxu1  ;;  %8748 = vmatpush3.bf16.msra.mxu0 %v9035_v8 }
 0x2dd   : > { %v12286_v54 = vpop.f32.mrf.mxu0  ;;  %v3729_v17 = vadd.f32 %v3664_v22, %v2690_v29  ;;  %v6450_v33 = vsel %vm13822_vm14, %v6445_v18, %v6449_v19  ;;  %v9037_v18 = vld [vmem:[#allocation9 + $0x10] sm:$0xff]  }
 0x2de   : > { %v8447_v61 = vpop.f32.mrf.mxu1 }
 0x2df   : > { %v8487_v9 = vpop.f32.mrf.mxu0  ;;  %v3734_v38 = vadd.f32 %v8447_v61, %v12100_v12 }
 0x2e0   : > { %v12292_v4 = vadd.f32 %v8487_v9, %v12248_v63  ;;  %v3677_v1 = vpop.f32.mrf.mxu1 }
 0x2e1   : > { %8734 = vmatmul.mubr.bf16.gmra.mxu1 %v6434_v16  ;;  %v4220_v55 = vpop.f32.mrf.mxu0  ;;  %v3732_v59 = vadd.f32 %v3677_v1, %v12107_v21 }
 0x2e2   : > { %8737 = vmatprep.mubr.bf16.mxu1 %v6442_v42  ;;  %v12296_v34 = vadd.f32 %v4220_v55, %v12254_v49  ;;  %v8448_v31 = vpop.f32.mrf.mxu1  ;;  %v9036_v49 = vld [vmem:[#allocation9 + $0x18] sm:$0xff]  }
 0x2e3   : > { %v8488_v12 = vpop.f32.mrf.mxu0  ;;  %v3735_v0 = vadd.f32 %v8448_v31, %v12120_v56  ;;  %8749 = vmatprep.subr.bf16.mxu0 %v9036_v49 }
 0x2e4   : > { %v12302_v63 = vadd.f32 %v8488_v12, %v3727_v2  ;;  %v3680_v36 = vpop.f32.mrf.mxu1  ;;  %8750 = vmatpush3.bf16.msra.mxu0 %v9036_v49 }
 0x2e5   : > { %v4223_v7 = vpop.f32.mrf.mxu0  ;;  %v3733_v47 = vadd.f32 %v3680_v36, %v2706_v3  ;;  %8751 = vmatprep.subr.bf16.mxu0 %v9037_v18  ;;  %v9038_v36 = vld [vmem:[#allocation9 + $0x8] sm:$0xff]  }
 0x2e6   : > { %v12304_v37 = vadd.f32 %v4223_v7, %v3725_v25  ;;  %v8451_v21 = vpop.f32.mrf.mxu1  ;;  %v2722_v25 = vadd.f32 %v12163_v27, %v12074_v40 }
 0x2e7   : > { %v8491_v29 = vpop.f32.mrf.mxu0  ;;  %v3738_v46 = vadd.f32 %v8451_v21, %v12140_v39 }
 0x2e8   : > { %v12307_v26 = vadd.f32 %v8491_v29, %v3730_v57  ;;  %v3693_v45 = vpop.f32.mrf.mxu1  ;;  %8752 = vmatpush3.bf16.msra.mxu0 %v9037_v18 }
 0x2e9   : > { %8738 = vmatmul.mubr.bf16.gmra.mxu1 %v6450_v33  ;;  %v4236_v56 = vpop.f32.mrf.mxu0  ;;  %v3736_v62 = vadd.f32 %v3693_v45, %v12150_v44  ;;  %8753 = vmatprep.subr.bf16.mxu0 %v9038_v36 }
 0x2ea   : > { %v12310_v2 = vadd.f32 %v4236_v56, %v3728_v43  ;;  %v8452_v53 = vpop.f32.mrf.mxu1 }
 0x2eb   : > { %v8492_v22 = vpop.f32.mrf.mxu0  ;;  %v3739_v16 = vadd.f32 %v8452_v53, %v12158_v51 }
 0x2ec   : > { %v12315_v61 = vadd.f32 %v8492_v22, %v3731_v13  ;;  %v3696_v39 = vpop.f32.mrf.mxu1  ;;  %8754 = vmatpush3.bf16.msra.mxu0 %v9038_v36  ;;  %v9039_v22 = vld [vmem:[#allocation9] sm:$0xff]  }
 0x2ed   : > { %v4239_v57 = vpop.f32.mrf.mxu0  ;;  %v3737_v42 = vadd.f32 %v3696_v39, %v2722_v25  ;;  %8755 = vmatprep.subr.bf16.mxu0 %v9039_v22 }
 0x2ee   : > { %v12317_v8 = vadd.f32 %v4239_v57, %v3729_v17  ;;  %v8519_v9 = vpop.f32.mrf.mxu1  ;;  %v4284_v17 = vadd.f32 %v12199_v41, %v12125_v58 }
 0x2ef   : > { %v8495_v44 = vpop.f32.mrf.mxu0  ;;  %v4639_v43 = vadd.f32 %v8519_v9, %v12177_v15 }
 0x2f0   : > { %v12320_v19 = vadd.f32 %v8495_v44, %v3734_v38  ;;  %v4510_v1 = vpop.f32.mrf.mxu1  ;;  %8756 = vmatpush3.bf16.msra.mxu0 %v9039_v22 }
 0x2f1   : > { %v4252_v40 = vpop.f32.mrf.mxu0  ;;  %v4637_v27 = vadd.f32 %v4510_v1, %v12185_v60 }
 0x2f2   : > { %v12323_v51 = vadd.f32 %v4252_v40, %v3732_v59  ;;  %v8520_v13 = vpop.f32.mrf.mxu1 }
 0x2f3   : > { %v8496_v55 = vpop.f32.mrf.mxu0  ;;  %v12328_v31 = vadd.f32 %v8520_v13, %v12195_v20 }
 0x2f4   : > { %v12330_v3 = vadd.f32 %v8496_v55, %v3735_v0  ;;  %v4513_v15 = vpop.f32.mrf.mxu1 }
 0x2f5   : > { %v4255_v38 = vpop.f32.mrf.mxu0  ;;  %v12332_v12 = vadd.f32 %v4513_v15, %v4284_v17 }
 0x2f6   : > { %v12334_v33 = vadd.f32 %v4255_v38, %v3733_v47  ;;  %v8523_v60 = vpop.f32.mrf.mxu1  ;;  %v4288_v47 = vadd.f32 %v12236_v52, %v12166_v50 }
 0x2f7   : > { %v8499_v59 = vpop.f32.mrf.mxu0  ;;  %v4643_v7 = vadd.f32 %v8523_v60, %v12214_v28 }
 0x2f8   : > { %v12337_v21 = vadd.f32 %v8499_v59, %v3738_v46  ;;  %v4526_v58 = vpop.f32.mrf.mxu1 }
 0x2f9   : > { %v4268_v41 = vpop.f32.mrf.mxu0  ;;  %v4641_v20 = vadd.f32 %v4526_v58, %v12220_v11 }
 0x2fa   : > { %v12340_v0 = vadd.f32 %v4268_v41, %v3736_v62  ;;  %v8524_v49 = vpop.f32.mrf.mxu1 }
 0x2fb   : > { %v8500_v29 = vpop.f32.mrf.mxu0  ;;  %v12345_v45 = vadd.f32 %v8524_v49, %v12232_v24 }
 0x2fc   : > { %v12347_v56 = vadd.f32 %v8500_v29, %v3739_v16  ;;  %v4529_v28 = vpop.f32.mrf.mxu1 }
 0x2fd   : > { %v4271_v46 = vpop.f32.mrf.mxu0  ;;  %v12349_v53 = vadd.f32 %v4529_v28, %v4288_v47 }
 0x2fe   : > { %v12351_v25 = vadd.f32 %v4271_v46, %v3737_v42  ;;  %v8527_v11 = vpop.f32.mrf.mxu1  ;;  %v4292_v42 = vadd.f32 %v12267_v48, %v12202_v35 }
 0x2ff   : > { %v8567_v62 = vpop.f32.mrf.mxu0  ;;  %v4647_v39 = vadd.f32 %v8527_v11, %v12251_v6 }
 0x300   : > { %v12354_v57 = vadd.f32 %v8567_v62, %v4639_v43  ;;  %v4542_v50 = vpop.f32.mrf.mxu1 }
 0x301   : > { %v5065_v52 = vpop.f32.mrf.mxu0  ;;  %v4645_v24 = vadd.f32 %v4542_v50, %v12257_v14 }
 0x302   : > { %v12357_v16 = vadd.f32 %v5065_v52, %v4637_v27  ;;  %v8528_v9 = vpop.f32.mrf.mxu1 }
 0x303   : > { %v12361_v18 = vpop.f32.mrf.mxu0  ;;  %v12364_v44 = vadd.f32 %v8528_v9, %v12263_v10  ;;  %v4296_v10 = vadd.f32 %v12286_v54, %v12239_v23 }
 0x304   : > { %v4545_v6 = vpop.f32.mrf.mxu1 }
 0x305   : > { %v12366_v43 = vpop.f32.mrf.mxu0  ;;  %v12368_v1 = vadd.f32 %v4545_v6, %v4292_v42 }
 0x306   : > { %v8531_v40 = vpop.f32.mrf.mxu1 }
 0x307   : > { %v8571_v13 = vpop.f32.mrf.mxu0  ;;  %v4651_v14 = vadd.f32 %v8531_v40, %v12274_v32 }
 0x308   : > { %v12371_v27 = vadd.f32 %v8571_v13, %v4643_v7  ;;  %v4558_v17 = vpop.f32.mrf.mxu1 }
 0x309   : > { %v5081_v55 = vpop.f32.mrf.mxu0  ;;  %v4649_v35 = vadd.f32 %v4558_v17, %v12278_v30 }
 0x30a   : > { %v12374_v48 = vadd.f32 %v5081_v55, %v4641_v20  ;;  %v8532_v15 = vpop.f32.mrf.mxu1 }
 0x30b   : > { %v12378_v38 = vpop.f32.mrf.mxu0  ;;  %v12381_v60 = vadd.f32 %v8532_v15, %v12284_v5 }
 0x30c   : > { %v4561_v36 = vpop.f32.mrf.mxu1 }
 0x30d   : > { %v12383_v59 = vpop.f32.mrf.mxu0  ;;  %v12385_v32 = vadd.f32 %v4561_v36, %v4296_v10 }
 0x30e   : > { %v8535_v7 = vpop.f32.mrf.mxu1 }
 0x30f   : > { %v8575_v58 = vpop.f32.mrf.mxu0  ;;  %v4655_v30 = vadd.f32 %v8535_v7, %v12292_v4 }
 0x310   : > { %v12388_v41 = vadd.f32 %v8575_v58, %v4647_v39  ;;  %v4574_v20 = vpop.f32.mrf.mxu1 }
 0x311   : > { %v5097_v49 = vpop.f32.mrf.mxu0  ;;  %v4653_v23 = vadd.f32 %v4574_v20, %v12296_v34 }
 0x312   : > { %v12391_v54 = vadd.f32 %v5097_v49, %v4645_v24  ;;  %v8536_v47 = vpop.f32.mrf.mxu1 }
 0x313   : > { %v12393_v5 = vpop.f32.mrf.mxu0  ;;  %v12396_v29 = vadd.f32 %v8536_v47, %v12302_v63 }
 0x314   : > { %v4577_v28 = vpop.f32.mrf.mxu1 }
 0x315   : > { %v12398_v46 = vpop.f32.mrf.mxu0  ;;  %v12401_v11 = vadd.f32 %v4577_v28, %v12304_v37 }
 0x316   : > { %v8539_v4 = vpop.f32.mrf.mxu1 }
 0x317   : > { %13823 = vst [vmem:[#allocation83_spill] sm:$0xff] %v12401_v11  ;;  %v8579_v22 = vpop.f32.mrf.mxu0  ;;  %v4659_v62 = vadd.f32 %v8539_v4, %v12307_v26 }
 0x318   : > { %v12404_v39 = vadd.f32 %v8579_v22, %v4651_v14  ;;  %v4590_v34 = vpop.f32.mrf.mxu1 }
 0x319   : > { %v5113_v50 = vpop.f32.mrf.mxu0  ;;  %v4657_v52 = vadd.f32 %v4590_v34, %v12310_v2 }
 0x31a   : > { %v12407_v24 = vadd.f32 %v5113_v50, %v4649_v35  ;;  %v8540_v63 = vpop.f32.mrf.mxu1 }
 0x31b   : > { %v12409_v9 = vpop.f32.mrf.mxu0  ;;  %v12412_v42 = vadd.f32 %v8540_v63, %v12315_v61 }
 0x31c   : > { %v4593_v37 = vpop.f32.mrf.mxu1 }
 0x31d   : > { %13824 = vst [vmem:[#allocation75_spill] sm:$0xff] %v12412_v42  ;;  %v12414_v6 = vpop.f32.mrf.mxu0  ;;  %v12417_v40 = vadd.f32 %v4593_v37, %v12317_v8 }
 0x31f   : > { %13825 = vst [vmem:[#allocation26_spill] sm:$0xff] %v12417_v40  ;;  %v8543_v26 = vpop.f32.mrf.mxu1  ;;  %v8583_v13 = vpop.f32.mrf.mxu0 }
 0x320   : > { %v4663_v14 = vadd.f32 %v8543_v26, %v12320_v19  ;;  %v12420_v17 = vadd.f32 %v8583_v13, %v4655_v30 }
 0x321   : > { %v4606_v2 = vpop.f32.mrf.mxu1  ;;  %v5129_v55 = vpop.f32.mrf.mxu0 }
 0x322   : > { %v4661_v35 = vadd.f32 %v4606_v2, %v12323_v51  ;;  %v12423_v15 = vadd.f32 %v5129_v55, %v4653_v23 }
 0x323   : > { %v8544_v61 = vpop.f32.mrf.mxu1  ;;  %v12425_v10 = vpop.f32.mrf.mxu0 }
 0x324   : > { %v12428_v36 = vadd.f32 %v8544_v61, %v12330_v3 }
 0x325   : > { %v4609_v8 = vpop.f32.mrf.mxu1  ;;  %v12430_v7 = vpop.f32.mrf.mxu0 }
 0x326   : > { %13826 = vst [vmem:[#allocation19_spill] sm:$0xff] %v12428_v36  ;;  %13827 = vst [vmem:[#allocation85_spill] sm:$0xff] %v12430_v7  ;;  %v12433_v58 = vadd.f32 %v4609_v8, %v12334_v33 }
 0x327   : > { %v8587_v30 = vpop.f32.mrf.mxu0 }
 0x328   : > { %13828 = vst [vmem:[#allocation18_spill] sm:$0xff] %v12433_v58  ;;  %v12436_v49 = vadd.f32 %v8587_v30, %v4659_v62 }
 0x329   : > { %v8547_v19 = vpop.f32.mrf.mxu1  ;;  %v5145_v23 = vpop.f32.mrf.mxu0 }
 0x32a   : > { %v4667_v20 = vadd.f32 %v8547_v19, %v12337_v21  ;;  %v12439_v28 = vadd.f32 %v5145_v23, %v4657_v52 }
 0x32b   : > { %v4622_v51 = vpop.f32.mrf.mxu1  ;;  %v12441_v4 = vpop.f32.mrf.mxu0 }
 0x32c   : > { %v4665_v47 = vadd.f32 %v4622_v51, %v12340_v0  ;;  %13829 = vst [vmem:[#allocation84_spill] sm:$0xff] %v12441_v4 }
 0x32d   : > { %v8548_v3 = vpop.f32.mrf.mxu1  ;;  %v12446_v34 = vpop.f32.mrf.mxu0 }
 0x32e   : > { %v12444_v22 = vadd.f32 %v8548_v3, %v12347_v56  ;;  %13831 = vst [vmem:[#allocation27_spill] sm:$0xff] %v12446_v34 }
 0x32f   : > { %v4625_v33 = vpop.f32.mrf.mxu1 }
 0x330   : > { %13830 = vst [vmem:[#allocation62_spill] sm:$0xff] %v12444_v22  ;;  %v12449_v50 = vadd.f32 %v4625_v33, %v12351_v25  ;;  %v8591_v62 = vpop.f32.mrf.mxu0 }
 0x331   : > { %v8615_v21 = vpop.f32.mrf.mxu1  ;;  %v5218_v0 = vadd.f32 %v8591_v62, %v4663_v14 }
 0x332   : > { %13832 = vst [vmem:[#allocation89_spill] sm:$0xff] %v12449_v50  ;;  %v12452_v63 = vadd.f32 %v8615_v21, %v12354_v57  ;;  %v5161_v37 = vpop.f32.mrf.mxu0 }
 0x333   : > { %v5640_v52 = vpop.f32.mrf.mxu1  ;;  %v5216_v13 = vadd.f32 %v5161_v37, %v4661_v35 }
 0x334   : > { %v12455_v26 = vadd.f32 %v5640_v52, %v12357_v16  ;;  %v12459_v2 = vpop.f32.mrf.mxu0 }
 0x335   : > { %v12457_v56 = vpop.f32.mrf.mxu1  ;;  %13833 = vst [vmem:[#allocation21_spill] sm:$0xff] %v12459_v2 }
 0x336   : > { %v12463_v25 = vpop.f32.mrf.mxu0 }
 0x337   : > { %v12461_v55 = vpop.f32.mrf.mxu1  ;;  %13834 = vst [vmem:[#allocation87_spill] sm:$0xff] %v12463_v25 }
 0x338   : > { %v8595_v8 = vpop.f32.mrf.mxu0 }
 0x339   : > { %v8619_v61 = vpop.f32.mrf.mxu1  ;;  %v5222_v14 = vadd.f32 %v8595_v8, %v4667_v20 }
 0x33a   : > { %v12466_v57 = vadd.f32 %v8619_v61, %v12371_v27  ;;  %v5177_v30 = vpop.f32.mrf.mxu0 }
 0x33b   : > { %v5656_v19 = vpop.f32.mrf.mxu1  ;;  %v5220_v35 = vadd.f32 %v5177_v30, %v4665_v47 }
 0x33c   : > { %v12469_v16 = vadd.f32 %v5656_v19, %v12374_v48  ;;  %v12473_v23 = vpop.f32.mrf.mxu0 }
 0x33d   : > { %v12471_v51 = vpop.f32.mrf.mxu1  ;;  %13835 = vst [vmem:[#allocation92_spill] sm:$0xff] %v12473_v23 }
 0x33e   : > { %v12477_v33 = vpop.f32.mrf.mxu0 }
 0x33f   : > { %v12475_v3 = vpop.f32.mrf.mxu1  ;;  %13836 = vst [vmem:[#allocation90_spill] sm:$0xff] %v12477_v33 }
 0x340   : > { %v8663_v62 = vpop.f32.mrf.mxu0 }
 0x341   : > { %v8623_v21 = vpop.f32.mrf.mxu1 }
 0x342   : > { %v12480_v27 = vadd.f32 %v8623_v21, %v12388_v41  ;;  %v5994_v52 = vpop.f32.mrf.mxu0 }
 0x343   : > { %v5672_v20 = vpop.f32.mrf.mxu1 }
 0x344   : > { %v12483_v37 = vadd.f32 %v5672_v20, %v12391_v54  ;;  %v8664_v47 = vpop.f32.mrf.mxu0 }
 0x345   : > { %v12485_v48 = vpop.f32.mrf.mxu1 }
 0x346   : > { %v5997_v8 = vpop.f32.mrf.mxu0 }
 0x347   : > { %v12487_v61 = vpop.f32.mrf.mxu1 }
 0x348   : > { %v8667_v30 = vpop.f32.mrf.mxu0 }
 0x349   : > { %v8627_v19 = vpop.f32.mrf.mxu1 }
 0x34a   : > { %v12490_v33 = vadd.f32 %v8627_v19, %v12404_v39  ;;  %v12492_v23 = vpop.f32.mrf.mxu0 }
 0x34b   : > { %v5688_v50 = vpop.f32.mrf.mxu1 }
 0x34c   : > { %v12495_v41 = vadd.f32 %v5688_v50, %v12407_v24  ;;  %v12499_v54 = vpop.f32.mrf.mxu0 }
 0x34d   : > { %v12497_v21 = vpop.f32.mrf.mxu1 }
 0x34e   : > { %v12503_v22 = vpop.f32.mrf.mxu0 }
 0x34f   : > { %v12501_v20 = vpop.f32.mrf.mxu1 }
 0x350   : > { %v12505_v58 = vpop.f32.mrf.mxu0 }
 0x351   : > { %v8631_v25 = vpop.f32.mrf.mxu1 }
 0x352   : > { %v12508_v39 = vadd.f32 %v8631_v25, %v12420_v17  ;;  %v12510_v2 = vpop.f32.mrf.mxu0 }
 0x353   : > { %v5704_v19 = vpop.f32.mrf.mxu1 }
 0x354   : > { %13837 = vst [vmem:[#allocation30_spill] sm:$0xff] %v12508_v39  ;;  %v12513_v24 = vadd.f32 %v5704_v19, %v12423_v15  ;;  %v12517_v36 = vpop.f32.mrf.mxu0 }
 0x355   : > { %v12515_v50 = vpop.f32.mrf.mxu1 }
 0x356   : > { %13838 = vst [vmem:[#allocation94_spill] sm:$0xff] %v12513_v24  ;;  %13839 = vst [vmem:[#allocation25_spill] sm:$0xff] %v12515_v50  ;;  %v12524_v42 = vpop.f32.mrf.mxu0 }
 0x357   : > { %v12519_v34 = vpop.f32.mrf.mxu1 }
 0x358   : > { %13840 = vst [vmem:[#allocation93_spill] sm:$0xff] %v12519_v34  ;;  %v12531_v15 = vpop.f32.mrf.mxu0 }
 0x359   : > { %v8635_v40 = vpop.f32.mrf.mxu1 }
 0x35a   : > { %v12522_v4 = vadd.f32 %v8635_v40, %v12436_v49  ;;  %v12537_v34 = vpop.f32.mrf.mxu0 }
 0x35b   : > { %v5720_v17 = vpop.f32.mrf.mxu1 }
 0x35c   : > { %13841 = vst [vmem:[#allocation29_spill] sm:$0xff] %v12522_v4  ;;  %v12527_v25 = vadd.f32 %v5720_v17, %v12439_v28  ;;  %v12543_v4 = vpop.f32.mrf.mxu0 }
 0x35d   : > { %v12529_v7 = vpop.f32.mrf.mxu1 }
 0x35e   : > { %13842 = vst [vmem:[#allocation95_spill] sm:$0xff] %v12527_v25  ;;  %13843 = vst [vmem:[#allocation65_spill] sm:$0xff] %v12529_v7  ;;  %v12549_v7 = vpop.f32.mrf.mxu0 }
 0x35f   : > { %v12533_v19 = vpop.f32.mrf.mxu1 }
 0x360   : > { %13844 = vst [vmem:[#allocation97_spill] sm:$0xff] %v12533_v19 }
 0x361   : > { %v8639_v24 = vpop.f32.mrf.mxu1 }
 0x362   : > { %v12535_v50 = vadd.f32 %v8639_v24, %v5218_v0  ;;  %v12555_v24 = vpop.f32.mrf.mxu0 }
 0x363   : > { %v5736_v11 = vpop.f32.mrf.mxu1 }
 0x364   : > { %v12539_v40 = vadd.f32 %v5736_v11, %v5216_v13  ;;  %v5195_v13 = vadd.f32 %v12361_v18, %v12328_v31 }
 0x365   : > { %v12541_v49 = vpop.f32.mrf.mxu1 }
 0x366   : > { %13845 = vst [vmem:[#allocation16_spill] sm:$0xff] %v12539_v40  ;;  %v6123_v40 = vadd.f32 %v8663_v62, %v12452_v63 }
 0x367   : > { %v12545_v28 = vpop.f32.mrf.mxu1 }
 0x368   : > { %13846 = vst [vmem:[#allocation54_spill] sm:$0xff] %v12545_v28 }
 0x369   : > { %v8643_v17 = vpop.f32.mrf.mxu1 }
 0x36a   : > { %v12547_v25 = vadd.f32 %v8643_v17, %v5222_v14  ;;  %v5193_v14 = vadd.f32 %v12366_v43, %v12332_v12  ;;  %v5770_v17 = vadd.f32 %v12457_v56, %v5195_v13 }
 0x36b   : > { %v5752_v19 = vpop.f32.mrf.mxu1 }
 0x36c   : > { %13847 = vst [vmem:[#allocation73_spill] sm:$0xff] %v12547_v25  ;;  %v12551_v39 = vadd.f32 %v5752_v19, %v5220_v35  ;;  %v6121_v35 = vadd.f32 %v5994_v52, %v12455_v26  ;;  %v5768_v31 = vadd.f32 %v12461_v55, %v5193_v14  ;;  %v6124_v18 = vadd.f32 %v8664_v47, %v5770_v17 }
 0x36d   : > { %v12553_v0 = vpop.f32.mrf.mxu1  ;;  %v5199_v26 = vadd.f32 %v12378_v38, %v12345_v45  ;;  %v5197_v47 = vadd.f32 %v12383_v59, %v12349_v53 }
 0x36e   : > { %13848 = vst [vmem:[#allocation61_spill] sm:$0xff] %v12551_v39  ;;  %13849 = vst [vmem:[#allocation68_spill] sm:$0xff] %v12553_v0  ;;  %v12566_v39 = vpop.f32.mrf.mxu0  ;;  %v6122_v25 = vadd.f32 %v5997_v8, %v5768_v31 }
 0x36f   : > { %v12557_v11 = vpop.f32.mrf.mxu1  ;;  %v5774_v8 = vadd.f32 %v12471_v51, %v5199_v26 }
 0x370   : > { %13850 = vst [vmem:[#allocation69_spill] sm:$0xff] %v12557_v11  ;;  %v12571_v11 = vld [vmem:[%s12820_s4] ss:$0 sm:$0xff]  ;;  %v12577_v56 = vpop.f32.mrf.mxu0 }
 0x371   : > { %v8711_v28 = vpop.f32.mrf.mxu1 }
 0x372   : > { %v6678_v19 = vadd.f32 %v8711_v28, %v6123_v40  ;;  %v6127_v40 = vadd.f32 %v8667_v30, %v12466_v57  ;;  %v5772_v57 = vadd.f32 %v12475_v3, %v5197_v47  ;;  %v6128_v30 = vadd.f32 %v12499_v54, %v5774_v8 }
 0x373   : > { %v6549_v0 = vpop.f32.mrf.mxu1 }
 0x374   : > { %v6676_v63 = vadd.f32 %v6549_v0, %v6121_v35  ;;  %v6717_v12 = vadd.f32 %v12571_v11, %v6678_v19  ;;  %v6125_v0 = vadd.f32 %v12492_v23, %v12469_v16  ;;  %v12590_v19 = vpop.f32.mrf.mxu0  ;;  %v6126_v16 = vadd.f32 %v12503_v22, %v5772_v57 }
 0x375   : > { %v8712_v62 = vpop.f32.mrf.mxu1  ;;  %v5201_v22 = vadd.f32 %v12398_v46, %v12368_v1  ;;  %v5207_v57 = vadd.f32 %v12409_v9, %v12381_v60  ;;  %v6133_v60 = vadd.f32 %v12537_v34, %v12495_v41 }
 0x376   : > { %v6679_v43 = vadd.f32 %v8712_v62, %v6124_v18  ;;  %v6715_v28 = vadd.f32 %v12571_v11, %v6676_v63  ;;  %v6749_v45 = vmax.f32 %v6717_v12, 0.0  ;;  %v5203_v12 = vadd.f32 %v12393_v5, %v12364_v44  ;;  %v12596_v3 = vpop.f32.mrf.mxu0 }
 0x377   : > { %v6552_v52 = vpop.f32.mrf.mxu1  ;;  %v6129_v44 = vadd.f32 %v12510_v2, %v12483_v37  ;;  %v5776_v47 = vadd.f32 %v12487_v61, %v5201_v22 }
 0x378   : > { %v6718_v13 = vadd.f32 %v12571_v11, %v6679_v43  ;;  %v6677_v55 = vadd.f32 %v6552_v52, %v6122_v25  ;;  %v6747_v31 = vmax.f32 %v6715_v28, 0.0  ;;  %v6131_v43 = vadd.f32 %v12505_v58, %v12480_v27 }
 0x379   : > { %v8715_v14 = vpop.f32.mrf.mxu1  ;;  %v5778_v28 = vadd.f32 %v12485_v48, %v5203_v12  ;;  %v6130_v2 = vadd.f32 %v12524_v42, %v5776_v47  ;;  %v5205_v42 = vadd.f32 %v12414_v6, %v12385_v32  ;;  %v13855_v47 = vld [vmem:[#allocation94_spill] sm:$0xff] }
 0x37a   : > { %v6750_v38 = vmax.f32 %v6718_v13, 0.0  ;;  %v6716_v17 = vadd.f32 %v12571_v11, %v6677_v55  ;;  %v6682_v35 = vadd.f32 %v8715_v14, %v6127_v40 }
 0x37b   : > { %v6565_v25 = vpop.f32.mrf.mxu1  ;;  %v6132_v8 = vadd.f32 %v12517_v36, %v5778_v28 }
 0x37c   : > { %v6780_v53 = vpack.c.bf16 %v6750_v38, %v6749_v45  ;;  %v6748_v59 = vmax.f32 %v6716_v17, 0.0  ;;  %v6680_v51 = vadd.f32 %v6565_v25, %v6125_v0  ;;  %v6721_v23 = vadd.f32 %v12571_v11, %v6682_v35  ;;  %v12610_v0 = vpop.f32.mrf.mxu0 }
 0x37d   : > { %v8716_v18 = vpop.f32.mrf.mxu1 }
 0x37e   : > { %v6683_v63 = vadd.f32 %v8716_v18, %v6128_v30  ;;  %v6779_v62 = vpack.c.bf16 %v6748_v59, %v6747_v31  ;;  %v6719_v26 = vadd.f32 %v12571_v11, %v6680_v51  ;;  %v6753_v13 = vmax.f32 %v6721_v23, 0.0  ;;  %v12616_v61 = vpop.f32.mrf.mxu0 }
 0x37f   : > { %v6568_v54 = vpop.f32.mrf.mxu1  ;;  %v6135_v30 = vadd.f32 %v12531_v15, %v12490_v33  ;;  %v5782_v59 = vadd.f32 %v12497_v21, %v5207_v57 }
 0x380   : > { %v6722_v52 = vadd.f32 %v12571_v11, %v6683_v63  ;;  %v6681_v40 = vadd.f32 %v6568_v54, %v6126_v16  ;;  %8757 = vmatprep.mubr.bf16.mxu0 %v6779_v62  ;;  %v6751_v1 = vmax.f32 %v6719_v26, 0.0  ;;  %v5780_v16 = vadd.f32 %v12501_v20, %v5205_v42  ;;  %v12630_v63 = vpop.f32.mrf.mxu0  ;;  %v13858_v42 = vld [vmem:[#allocation84_spill] sm:$0xff] }
 0x381   : > { %v8719_v5 = vpop.f32.mrf.mxu1  ;;  %8758 = vmatmul.mubr.bf16.vlgmr.msra.gmra.mxu0 %v6780_v53  ;;  %v6136_v23 = vadd.f32 %v12543_v4, %v5782_v59  ;;  %v13851_v4 = vld [vmem:[#allocation30_spill] sm:$0xff] }
 0x382   : > { %v6754_v55 = vmax.f32 %v6722_v52, 0.0  ;;  %v6720_v58 = vadd.f32 %v12571_v11, %v6681_v40  ;;  %v6686_v27 = vadd.f32 %v8719_v5, %v6131_v43  ;;  %v6134_v34 = vadd.f32 %v12549_v7, %v5780_v16  ;;  %v8687_v20 = vpop.f32.mrf.mxu0  ;;  %v13853_v7 = vld [vmem:[#allocation85_spill] sm:$0xff]  ;;  %v13860_v16 = vld [vmem:[#allocation26_spill] sm:$0xff] }
 0x383   : > { %v6581_v14 = vpop.f32.mrf.mxu1  ;;  %v5211_v52 = vadd.f32 %v12425_v10, %v12396_v29  ;;  %v6139_v22 = vadd.f32 %v12555_v24, %v13851_v4 }
 0x384   : > { %v6782_v46 = vpack.c.bf16 %v6754_v55, %v6753_v13  ;;  %v6752_v48 = vmax.f32 %v6720_v58, 0.0  ;;  %v6684_v45 = vadd.f32 %v6581_v14, %v6129_v44  ;;  %v6725_v37 = vadd.f32 %v12571_v11, %v6686_v27  ;;  %v13852_v13 = vld [vmem:[#allocation83_spill] sm:$0xff]  ;;  %v13854_v58 = vld [vmem:[#allocation25_spill] sm:$0xff] }
 0x385   : > { %v8720_v38 = vpop.f32.mrf.mxu1  ;;  %v5209_v55 = vadd.f32 %v13853_v7, %v13852_v13  ;;  %v5786_v27 = vadd.f32 %v13854_v58, %v5211_v52 }
 0x386   : > { %v6687_v17 = vadd.f32 %v8720_v38, %v6132_v8  ;;  %v6781_v35 = vpack.c.bf16 %v6752_v48, %v6751_v1  ;;  %v6723_v25 = vadd.f32 %v12571_v11, %v6684_v45  ;;  %v6757_v51 = vmax.f32 %v6725_v37, 0.0  ;;  %v6090_v38 = vpop.f32.mrf.mxu0 }
 0x387   : > { %v6584_v36 = vpop.f32.mrf.mxu1  ;;  %v6137_v8 = vadd.f32 %v12566_v39, %v13855_v47  ;;  %v6140_v45 = vadd.f32 %v12577_v56, %v5786_v27  ;;  %v13865_v27 = vld [vmem:[#allocation19_spill] sm:$0xff]  ;;  %v13866_v47 = vld [vmem:[#allocation21_spill] sm:$0xff] }
 0x388   : > { %v6726_v31 = vadd.f32 %v12571_v11, %v6687_v17  ;;  %v6685_v53 = vadd.f32 %v6584_v36, %v6130_v2  ;;  %8761 = vmatprep.mubr.bf16.mxu0 %v6781_v35  ;;  %v6755_v32 = vmax.f32 %v6723_v25, 0.0 }
 0x389   : > { %v8723_v9 = vpop.f32.mrf.mxu1  ;;  %8762 = vmatmul.mubr.bf16.gmra.mxu0 %v6782_v46  ;;  %v13856_v46 = vld [vmem:[#allocation93_spill] sm:$0xff] }
 0x38a   : > { %v6758_v18 = vmax.f32 %v6726_v31, 0.0  ;;  %v6724_v33 = vadd.f32 %v12571_v11, %v6685_v53  ;;  %v6690_v15 = vadd.f32 %v8723_v9, %v6135_v30  ;;  %v5784_v48 = vadd.f32 %v13856_v46, %v5209_v55  ;;  %v13857_v53 = vld [vmem:[#allocation75_spill] sm:$0xff]  ;;  %v13867_v46 = vld [vmem:[#allocation18_spill] sm:$0xff] }
 0x38b   : > { %v6597_v62 = vpop.f32.mrf.mxu1  ;;  %v5215_v59 = vadd.f32 %v13858_v42, %v13857_v53 }
 0x38c   : > { %v6784_v6 = vpack.c.bf16 %v6758_v18, %v6757_v51  ;;  %v6756_v21 = vmax.f32 %v6724_v33, 0.0  ;;  %v6688_v12 = vadd.f32 %v6597_v62, %v6133_v60  ;;  %v6729_v41 = vadd.f32 %v12571_v11, %v6690_v15  ;;  %v8688_v60 = vpop.f32.mrf.mxu0  ;;  %v13859_v51 = vld [vmem:[#allocation29_spill] sm:$0xff] }
 0x38d   : > { %v8724_v54 = vpop.f32.mrf.mxu1  ;;  %v6138_v39 = vadd.f32 %v12590_v19, %v5784_v48  ;;  %v6143_v56 = vadd.f32 %v12596_v3, %v13859_v51  ;;  %v13861_v19 = vld [vmem:[#allocation27_spill] sm:$0xff]  ;;  %v13862_v62 = vld [vmem:[#allocation65_spill] sm:$0xff] }
 0x38e   : > { %v6691_v43 = vadd.f32 %v8724_v54, %v6136_v23  ;;  %v6783_v26 = vpack.c.bf16 %v6756_v21, %v6755_v32  ;;  %v6727_v28 = vadd.f32 %v12571_v11, %v6688_v12  ;;  %v6761_v10 = vmax.f32 %v6729_v41, 0.0  ;;  %v13868_v48 = vld [vmem:[#allocation87_spill] sm:$0xff] }
 0x38f   : > { %v6600_v40 = vpop.f32.mrf.mxu1  ;;  %v5213_v23 = vadd.f32 %v13861_v19, %v13860_v16  ;;  %v5790_v32 = vadd.f32 %v13862_v62, %v5215_v59  ;;  %v13873_v62 = vld [vmem:[#allocation73_spill] sm:$0xff] }
 0x390   : > { %v6730_v44 = vadd.f32 %v12571_v11, %v6691_v43  ;;  %v6689_v5 = vadd.f32 %v6600_v40, %v6134_v34  ;;  %8765 = vmatprep.mubr.bf16.mxu0 %v6783_v26  ;;  %v6759_v37 = vmax.f32 %v6727_v28, 0.0  ;;  %v13864_v43 = vld [vmem:[#allocation97_spill] sm:$0xff]  ;;  %v6093_v40 = vpop.f32.mrf.mxu0 }
 0x391   : > { %v8727_v29 = vpop.f32.mrf.mxu1  ;;  %8766 = vmatmul.mubr.bf16.gmra.mxu0 %v6784_v6  ;;  %v13863_v6 = vld [vmem:[#allocation95_spill] sm:$0xff]  ;;  %v5788_v26 = vadd.f32 %v13864_v43, %v5213_v23  ;;  %v6144_v52 = vadd.f32 %v12616_v61, %v5790_v32  ;;  %v6147_v61 = vadd.f32 %v8687_v20, %v12535_v50  ;;  %v13870_v20 = vld [vmem:[#allocation54_spill] sm:$0xff]  ;;  %v13877_v43 = vld [vmem:[#allocation61_spill] sm:$0xff] }
 0x392   : > { %v6762_v14 = vmax.f32 %v6730_v44, 0.0  ;;  %v6728_v24 = vadd.f32 %v12571_v11, %v6689_v5  ;;  %v6694_v1 = vadd.f32 %v8727_v29, %v6139_v22  ;;  %v6141_v21 = vadd.f32 %v12610_v0, %v13863_v6  ;;  %v8691_v29 = vpop.f32.mrf.mxu0 }
 0x393   : > { %v6613_v2 = vpop.f32.mrf.mxu1  ;;  %v6142_v0 = vadd.f32 %v12630_v63, %v5788_v26  ;;  %v5217_v63 = vadd.f32 %v13868_v48, %v13867_v46  ;;  %v6151_v32 = vadd.f32 %v8691_v29, %v13873_v62 }
 0x394   : > { %v6786_v17 = vpack.c.bf16 %v6762_v14, %v6761_v10  ;;  %v6760_v35 = vmax.f32 %v6728_v24, 0.0  ;;  %v6692_v57 = vadd.f32 %v6613_v2, %v6137_v8  ;;  %v6733_v30 = vadd.f32 %v12571_v11, %v6694_v1  ;;  %v13869_v2 = vld [vmem:[#allocation16_spill] sm:$0xff] }
 0x395   : > { %v8728_v36 = vpop.f32.mrf.mxu1  ;;  %v5219_v8 = vadd.f32 %v13866_v47, %v13865_v27 }
 0x396   : > { %v6695_v25 = vadd.f32 %v8728_v36, %v6140_v45  ;;  %v6785_v31 = vpack.c.bf16 %v6760_v35, %v6759_v37  ;;  %v6731_v18 = vadd.f32 %v12571_v11, %v6692_v57  ;;  %v6765_v54 = vmax.f32 %v6733_v30, 0.0 }
 0x397   : > { %v6616_v9 = vpop.f32.mrf.mxu1  ;;  %v5794_v45 = vadd.f32 %v12541_v49, %v5219_v8  ;;  %v6145_v37 = vadd.f32 %v6090_v38, %v13869_v2 }
 0x398   : > { %v6734_v33 = vadd.f32 %v12571_v11, %v6695_v25  ;;  %v6693_v15 = vadd.f32 %v6616_v9, %v6138_v39  ;;  %8769 = vmatprep.mubr.bf16.mxu0 %v6785_v31  ;;  %v6763_v22 = vmax.f32 %v6731_v18, 0.0  ;;  %v5792_v39 = vadd.f32 %v13870_v20, %v5217_v63  ;;  %v6106_v25 = vpop.f32.mrf.mxu0 }
 0x399   : > { %v8731_v12 = vpop.f32.mrf.mxu1  ;;  %8770 = vmatmul.mubr.bf16.gmra.mxu0 %v6786_v17  ;;  %v6148_v30 = vadd.f32 %v8688_v60, %v5794_v45  ;;  %v6149_v26 = vadd.f32 %v6106_v25, %v13877_v43 }
 0x39a   : > { %v6766_v34 = vmax.f32 %v6734_v33, 0.0  ;;  %v6732_v3 = vadd.f32 %v12571_v11, %v6693_v15  ;;  %v6698_v41 = vadd.f32 %v8731_v12, %v6143_v56  ;;  %v6146_v49 = vadd.f32 %v6093_v40, %v5792_v39  ;;  %v13871_v33 = vld [vmem:[#allocation62_spill] sm:$0xff]  ;;  %v13872_v15 = vld [vmem:[#allocation92_spill] sm:$0xff]  ;;  %v8692_v19 = vpop.f32.mrf.mxu0  ;;  %v13874_v12 = vld [vmem:[#allocation89_spill] sm:$0xff] }
 0x39b   : > { %v6629_v4 = vpop.f32.mrf.mxu1  ;;  %v5223_v16 = vadd.f32 %v13872_v15, %v13871_v33  ;;  %v9105_v39 = vld [vmem:[%s9505_s12 + $0x8] sm:$0xff]  }
 0x39c   : > { %v6788_v28 = vpack.c.bf16 %v6766_v34, %v6765_v54  ;;  %v6764_v44 = vmax.f32 %v6732_v3, 0.0  ;;  %v6696_v5 = vadd.f32 %v6629_v4, %v6141_v21  ;;  %v6737_v7 = vadd.f32 %v12571_v11, %v6698_v41  ;;  %v13875_v54 = vld [vmem:[#allocation90_spill] sm:$0xff]  ;;  %v13876_v3 = vld [vmem:[#allocation68_spill] sm:$0xff] }
 0x39d   : > { %v8732_v13 = vpop.f32.mrf.mxu1  ;;  %v5221_v34 = vadd.f32 %v13875_v54, %v13874_v12  ;;  %v5798_v41 = vadd.f32 %v13876_v3, %v5223_v16  ;;  %v9107_v16 = vld [vmem:[%s9505_s12 + $0x18] sm:$0xff]  }
 0x39e   : > { %v6699_v55 = vadd.f32 %v8732_v13, %v6144_v52  ;;  %v6787_v58 = vpack.c.bf16 %v6764_v44, %v6763_v22  ;;  %v6735_v14 = vadd.f32 %v12571_v11, %v6696_v5  ;;  %v6769_v35 = vmax.f32 %v6737_v7, 0.0  ;;  %v13878_v44 = vld [vmem:[#allocation69_spill] sm:$0xff] }
 0x39f   : > { %v6632_v10 = vpop.f32.mrf.mxu1  ;;  %v5796_v5 = vadd.f32 %v13878_v44, %v5221_v34  ;;  %v6152_v13 = vadd.f32 %v8692_v19, %v5798_v41  ;;  %v7033_v19 = vunpack.c.l.bf16 %v9107_v16  ;;  %v7034_v54 = vunpack.c.h.bf16 %v9107_v16 }
 0x3a0   : > { %v6738_v24 = vadd.f32 %v12571_v11, %v6699_v55  ;;  %v6697_v1 = vadd.f32 %v6632_v10, %v6142_v0  ;;  %8773 = vmatprep.mubr.bf16.mxu0 %v6787_v58  ;;  %v6767_v53 = vmax.f32 %v6735_v14, 0.0  ;;  %v6109_v0 = vpop.f32.mrf.mxu0 }
 0x3a1   : > { %v8735_v17 = vpop.f32.mrf.mxu1  ;;  %8774 = vmatmul.mubr.bf16.gmra.mxu0 %v6788_v28  ;;  %v6150_v29 = vadd.f32 %v6109_v0, %v5796_v5 }
 0x3a2   : > { %v6770_v57 = vmax.f32 %v6738_v24, 0.0  ;;  %v6736_v36 = vadd.f32 %v12571_v11, %v6697_v1  ;;  %v6702_v50 = vadd.f32 %v8735_v17, %v6147_v61 }
 0x3a3   : > { %v6645_v31 = vpop.f32.mrf.mxu1 }
 0x3a4   : > { %v6790_v42 = vpack.c.bf16 %v6770_v57, %v6769_v35  ;;  %v6768_v59 = vmax.f32 %v6736_v36, 0.0  ;;  %v6700_v9 = vadd.f32 %v6645_v31, %v6145_v37  ;;  %v6741_v38 = vadd.f32 %v12571_v11, %v6702_v50  ;;  %v12696_v36 = vld [vmem:[%s12822_s6] ss:$0 sm:$0xff] }
 0x3a5   : > { %v8736_v51 = vpop.f32.mrf.mxu1  ;;  %v9106_v31 = vld [vmem:[%s9505_s12] sm:$0xff]  }
 0x3a6   : > { %v6703_v56 = vadd.f32 %v8736_v51, %v6148_v30  ;;  %v6789_v18 = vpack.c.bf16 %v6768_v59, %v6767_v53  ;;  %v6739_v60 = vadd.f32 %v12571_v11, %v6700_v9  ;;  %v6773_v40 = vmax.f32 %v6741_v38, 0.0 }
 0x3a7   : > { %v6648_v23 = vpop.f32.mrf.mxu1  ;;  %v7029_v30 = vunpack.c.l.bf16 %v9105_v39  ;;  %v7028_v9 = vunpack.c.h.bf16 %v9106_v31 }
 0x3a8   : > { %v6742_v6 = vadd.f32 %v12571_v11, %v6703_v56  ;;  %v6701_v21 = vadd.f32 %v6648_v23, %v6146_v49  ;;  %8777 = vmatprep.mubr.bf16.mxu0 %v6789_v18  ;;  %v6771_v55 = vmax.f32 %v6739_v60, 0.0 }
 0x3a9   : > { %v8739_v52 = vpop.f32.mrf.mxu1  ;;  %8778 = vmatmul.mubr.bf16.gmra.mxu0 %v6790_v42  ;;  %v7030_v42 = vunpack.c.h.bf16 %v9105_v39 }
 0x3aa   : > { %v6774_v4 = vmax.f32 %v6742_v6, 0.0  ;;  %v6740_v22 = vadd.f32 %v12571_v11, %v6701_v21  ;;  %v6706_v28 = vadd.f32 %v8739_v52, %v6151_v32  ;;  %v9108_v21 = vld [vmem:[%s9505_s12 + $0x10] sm:$0xff]  }
 0x3ab   : > { %v6661_v7 = vpop.f32.mrf.mxu1  ;;  %v7031_v12 = vunpack.c.l.bf16 %v9108_v21 }
 0x3ac   : > { %v6792_v58 = vpack.c.bf16 %v6774_v4, %v6773_v40  ;;  %v6772_v27 = vmax.f32 %v6740_v22, 0.0  ;;  %v6704_v47 = vadd.f32 %v6661_v7, %v6149_v26  ;;  %v6745_v10 = vadd.f32 %v12571_v11, %v6706_v28  ;;  %v9109_v7 = vld [vmem:[%s9505_s12 + $0x28] sm:$0xff]  }
 0x3ad   : > { %v8740_v8 = vpop.f32.mrf.mxu1  ;;  %v7032_v22 = vunpack.c.h.bf16 %v9108_v21 }
 0x3ae   : > { %v6707_v61 = vadd.f32 %v8740_v8, %v6152_v13  ;;  %v6791_v14 = vpack.c.bf16 %v6772_v27, %v6771_v55  ;;  %v6743_v1 = vadd.f32 %v12571_v11, %v6704_v47  ;;  %v6777_v63 = vmax.f32 %v6745_v10, 0.0  ;;  %v9110_v10 = vld [vmem:[%s9505_s12 + $0x20] sm:$0xff]  }
 0x3af   : > { %v6664_v24 = vpop.f32.mrf.mxu1  ;;  %v7037_v55 = vunpack.c.l.bf16 %v9109_v7 }
 0x3b0   : > { %v6746_v46 = vadd.f32 %v12571_v11, %v6707_v61  ;;  %v6705_v48 = vadd.f32 %v6664_v24, %v6150_v29  ;;  %8781 = vmatprep.mubr.bf16.mxu0 %v6791_v14  ;;  %v6775_v37 = vmax.f32 %v6743_v1, 0.0  ;;  %v7035_v61 = vunpack.c.l.bf16 %v9110_v10 }
 0x3b1   : > { %8782 = vmatmul.mubr.bf16.gmra.mxu0 %v6792_v58  ;;  %v7038_v14 = vunpack.c.h.bf16 %v9109_v7 }
 0x3b2   : > { %v6778_v45 = vmax.f32 %v6746_v46, 0.0  ;;  %v6744_v2 = vadd.f32 %v12571_v11, %v6705_v48  ;;  %v7027_v11 = vunpack.c.l.bf16 %v9106_v31 }
 0x3b4   : > { %v6794_v17 = vpack.c.bf16 %v6778_v45, %v6777_v63  ;;  %v6776_v35 = vmax.f32 %v6744_v2, 0.0 }
 0x3b6   : > { %v6793_v57 = vpack.c.bf16 %v6776_v35, %v6775_v37 }
 0x3b8   : > { %8785 = vmatprep.mubr.bf16.mxu0 %v6793_v57 }
 0x3b9   : > { %8786 = vmatmul.mubr.bf16.gmra.mxu0 %v6794_v17  ;;  %v7036_v17 = vunpack.c.h.bf16 %v9110_v10 }
 0x441   : > { %v8759_v50 = vpop.f32.mrf.mxu0 }
 0x442   : > { %v6909_v20 = vadd.f32 %v8759_v50, %v12696_v36 }
 0x443   : > { %v6900_v25 = vpop.f32.mrf.mxu0 }
 0x444   : > { %v6901_v53 = vadd.f32 %v12696_v36, %v6900_v25  ;;  %v7061_v51 = vadd.f32 %v7029_v30, %v6909_v20  ;;  %v9111_v30 = vld [vmem:[%s9505_s12 + $0x38] sm:$0xff]  }
 0x445   : > { %v8760_v59 = vpop.f32.mrf.mxu0  ;;  %v7041_v25 = vunpack.c.l.bf16 %v9111_v30 }
 0x446   : > { %v6912_v49 = vadd.f32 %v8760_v59, %v12696_v36  ;;  %v7059_v56 = vadd.f32 %v7027_v11, %v6901_v53  ;;  %v7093_v23 = vmax.f32 %v7061_v51, 0.0 }
 0x447   : > { %v6903_v38 = vpop.f32.mrf.mxu0 }
 0x448   : > { %v7062_v18 = vadd.f32 %v7030_v42, %v6912_v49  ;;  %v6904_v33 = vadd.f32 %v12696_v36, %v6903_v38  ;;  %v7091_v34 = vmax.f32 %v7059_v56, 0.0  ;;  %v7042_v49 = vunpack.c.h.bf16 %v9111_v30 }
 0x449   : > { %v8763_v15 = vpop.f32.mrf.mxu0 }
 0x44a   : > { %v7094_v62 = vmax.f32 %v7062_v18, 0.0  ;;  %v7060_v32 = vadd.f32 %v7028_v9, %v6904_v33  ;;  %v6925_v60 = vadd.f32 %v8763_v15, %v12696_v36  ;;  %v9112_v9 = vld [vmem:[%s9505_s12 + $0x30] sm:$0xff]  }
 0x44b   : > { %v6916_v6 = vpop.f32.mrf.mxu0  ;;  %v7039_v51 = vunpack.c.l.bf16 %v9112_v9 }
 0x44c   : > { %v7894_v3 = vpack.c.bf16 %v7094_v62, %v7093_v23  ;;  %v7092_v41 = vmax.f32 %v7060_v32, 0.0  ;;  %v6917_v43 = vadd.f32 %v12696_v36, %v6916_v6  ;;  %v7065_v40 = vadd.f32 %v7033_v19, %v6925_v60 }
 0x44d   : > { %v8764_v26 = vpop.f32.mrf.mxu0  ;;  %v7040_v62 = vunpack.c.h.bf16 %v9112_v9 }
 0x44e   : > { %7982 = vst [vmem:[%s12710_s11 + $0x8] sm:$0xff] %v7894_v3   ;;  %v7889_v52 = vpack.c.bf16 %v7092_v41, %v7091_v34  ;;  %v6928_v4 = vadd.f32 %v8764_v26, %v12696_v36  ;;  %v7063_v44 = vadd.f32 %v7031_v12, %v6917_v43  ;;  %v7097_v58 = vmax.f32 %v7065_v40, 0.0 }
 0x44f   : > { %v6919_v28 = vpop.f32.mrf.mxu0 }
 0x450   : > { %7890 = vst [vmem:[%s12710_s11] sm:$0xff] %v7889_v52   ;;  %v7066_v5 = vadd.f32 %v7034_v54, %v6928_v4  ;;  %v6920_v13 = vadd.f32 %v12696_v36, %v6919_v28  ;;  %v7095_v24 = vmax.f32 %v7063_v44, 0.0  ;;  %v9113_v54 = vld [vmem:[%s9505_s12 + $0x48] sm:$0xff]   ;;  %v9114_v52 = vld [vmem:[%s9505_s12 + $0x40] sm:$0xff]  }
 0x451   : > { %v8767_v0 = vpop.f32.mrf.mxu0  ;;  %v7045_v34 = vunpack.c.l.bf16 %v9113_v54  ;;  %v7043_v40 = vunpack.c.l.bf16 %v9114_v52  ;;  %v7044_v7 = vunpack.c.h.bf16 %v9114_v52 }
 0x452   : > { %v7098_v27 = vmax.f32 %v7066_v5, 0.0  ;;  %v7064_v47 = vadd.f32 %v7032_v22, %v6920_v13  ;;  %v6941_v8 = vadd.f32 %v8767_v0, %v12696_v36  ;;  %v7046_v22 = vunpack.c.h.bf16 %v9113_v54 }
 0x453   : > { %v6932_v29 = vpop.f32.mrf.mxu0 }
 0x454   : > { %v7904_v1 = vpack.c.bf16 %v7098_v27, %v7097_v58  ;;  %v7096_v46 = vmax.f32 %v7064_v47, 0.0  ;;  %v6933_v48 = vadd.f32 %v12696_v36, %v6932_v29  ;;  %v7069_v2 = vadd.f32 %v7037_v55, %v6941_v8 }
 0x455   : > { %v8768_v63 = vpop.f32.mrf.mxu0 }
 0x456   : > { %7984 = vst [vmem:[%s12710_s11 + $0x18] sm:$0xff] %v7904_v1   ;;  %v7899_v45 = vpack.c.bf16 %v7096_v46, %v7095_v24  ;;  %v6944_v37 = vadd.f32 %v8768_v63, %v12696_v36  ;;  %v7067_v57 = vadd.f32 %v7035_v61, %v6933_v48  ;;  %v7101_v31 = vmax.f32 %v7069_v2, 0.0  ;;  %v9116_v2 = vld [vmem:[%s9505_s12 + $0x50] sm:$0xff]  }
 0x457   : > { %v6935_v35 = vpop.f32.mrf.mxu0 }
 0x458   : > { %7983 = vst [vmem:[%s12710_s11 + $0x10] sm:$0xff] %v7899_v45   ;;  %v7070_v50 = vadd.f32 %v7038_v14, %v6944_v37  ;;  %v6936_v20 = vadd.f32 %v12696_v36, %v6935_v35  ;;  %v7099_v38 = vmax.f32 %v7067_v57, 0.0  ;;  %v9115_v14 = vld [vmem:[%s9505_s12 + $0x58] sm:$0xff]   ;;  %v7047_v37 = vunpack.c.l.bf16 %v9116_v2 }
 0x459   : > { %v8771_v39 = vpop.f32.mrf.mxu0  ;;  %v7049_v24 = vunpack.c.l.bf16 %v9115_v14 }
 0x45a   : > { %v7102_v11 = vmax.f32 %v7070_v50, 0.0  ;;  %v7068_v53 = vadd.f32 %v7036_v17, %v6936_v20  ;;  %v6957_v42 = vadd.f32 %v8771_v39, %v12696_v36  ;;  %v7050_v17 = vunpack.c.h.bf16 %v9115_v14 }
 0x45b   : > { %v6948_v59 = vpop.f32.mrf.mxu0 }
 0x45c   : > { %v7914_v56 = vpack.c.bf16 %v7102_v11, %v7101_v31  ;;  %v7100_v18 = vmax.f32 %v7068_v53, 0.0  ;;  %v6949_v33 = vadd.f32 %v12696_v36, %v6948_v59  ;;  %v7073_v19 = vadd.f32 %v7041_v25, %v6957_v42 }
 0x45d   : > { %v8772_v15 = vpop.f32.mrf.mxu0  ;;  %v7048_v11 = vunpack.c.h.bf16 %v9116_v2 }
 0x45e   : > { %7986 = vst [vmem:[%s12710_s11 + $0x28] sm:$0xff] %v7914_v56   ;;  %v7909_v16 = vpack.c.bf16 %v7100_v18, %v7099_v38  ;;  %v6960_v23 = vadd.f32 %v8772_v15, %v12696_v36  ;;  %v7071_v60 = vadd.f32 %v7039_v51, %v6949_v33  ;;  %v7105_v3 = vmax.f32 %v7073_v19, 0.0  ;;  %v9118_v19 = vld [vmem:[%s9505_s12 + $0x60] sm:$0xff]  }
 0x45f   : > { %v6951_v32 = vpop.f32.mrf.mxu0 }
 0x460   : > { %7985 = vst [vmem:[%s12710_s11 + $0x20] sm:$0xff] %v7909_v16   ;;  %v7074_v6 = vadd.f32 %v7042_v49, %v6960_v23  ;;  %v6952_v21 = vadd.f32 %v12696_v36, %v6951_v32  ;;  %v7103_v28 = vmax.f32 %v7071_v60, 0.0  ;;  %v9117_v49 = vld [vmem:[%s9505_s12 + $0x68] sm:$0xff]   ;;  %v7051_v23 = vunpack.c.l.bf16 %v9118_v19 }
 0x461   : > { %v8775_v12 = vpop.f32.mrf.mxu0  ;;  %v7053_v38 = vunpack.c.l.bf16 %v9117_v49 }
 0x462   : > { %v7106_v41 = vmax.f32 %v7074_v6, 0.0  ;;  %v7072_v43 = vadd.f32 %v7040_v62, %v6952_v21  ;;  %v6973_v26 = vadd.f32 %v8775_v12, %v12696_v36  ;;  %v7054_v62 = vunpack.c.h.bf16 %v9117_v49 }
 0x463   : > { %v6964_v4 = vpop.f32.mrf.mxu0 }
 0x464   : > { %v7924_v44 = vpack.c.bf16 %v7106_v41, %v7105_v3  ;;  %v7104_v5 = vmax.f32 %v7072_v43, 0.0  ;;  %v6965_v13 = vadd.f32 %v12696_v36, %v6964_v4  ;;  %v7077_v58 = vadd.f32 %v7045_v34, %v6973_v26 }
 0x465   : > { %v8776_v0 = vpop.f32.mrf.mxu0  ;;  %v7052_v41 = vunpack.c.h.bf16 %v9118_v19 }
 0x466   : > { %7988 = vst [vmem:[%s12710_s11 + $0x38] sm:$0xff] %v7924_v44   ;;  %v7919_v55 = vpack.c.bf16 %v7104_v5, %v7103_v28  ;;  %v6976_v27 = vadd.f32 %v8776_v0, %v12696_v36  ;;  %v7075_v8 = vadd.f32 %v7043_v40, %v6965_v13  ;;  %v7109_v1 = vmax.f32 %v7077_v58, 0.0 }
 0x467   : > { %v6967_v47 = vpop.f32.mrf.mxu0 }
 0x468   : > { %7987 = vst [vmem:[%s12710_s11 + $0x30] sm:$0xff] %v7919_v55   ;;  %v7078_v29 = vadd.f32 %v7046_v22, %v6976_v27  ;;  %v6968_v10 = vadd.f32 %v12696_v36, %v6967_v47  ;;  %v7107_v35 = vmax.f32 %v7075_v8, 0.0  ;;  %v9119_v22 = vld [vmem:[%s9505_s12 + $0x78] sm:$0xff]   ;;  %v9120_v55 = vld [vmem:[%s9505_s12 + $0x70] sm:$0xff]   ;;  %s9227_s12 = scalar_lea.vmem %s12771_s22, 2048 }
 0x469   : > { %v8779_v61 = vpop.f32.mrf.mxu0  ;;  %v7057_v28 = vunpack.c.l.bf16 %v9119_v22  ;;  %v7055_v58 = vunpack.c.l.bf16 %v9120_v55  ;;  %v7058_v27 = vunpack.c.h.bf16 %v9119_v22  ;;  %p9228_p7 = scmp.ne.s32.totalorder %s12771_s22, %s9227_s12  ;;  %p9235_p0 = scmp.lt.s32.totalorder %s9233_s9, %s9227_s12 }
 0x46a   : > { %v7110_v46 = vmax.f32 %v7078_v29, 0.0  ;;  %v7076_v48 = vadd.f32 %v7044_v7, %v6968_v10  ;;  %v6989_v63 = vadd.f32 %v8779_v61, %v12696_v36 }
 0x46b   : > { %v6980_v45 = vpop.f32.mrf.mxu0  ;;  %p9229_p12 = pnand %p9228_p7, %p13879_p1  ;;  %p9236_p2 = por %p9235_p0, %p9234_p13 }
 0x46c   : > { %v7934_v57 = vpack.c.bf16 %v7110_v46, %v7109_v1  ;;  %v7108_v50 = vmax.f32 %v7076_v48, 0.0  ;;  %v6981_v20 = vadd.f32 %v12696_v36, %v6980_v45  ;;  %v7081_v25 = vadd.f32 %v7049_v24, %v6989_v63 }
 0x46d   : > { %v8780_v39 = vpop.f32.mrf.mxu0  ;;  %v7056_v46 = vunpack.c.h.bf16 %v9120_v55  ;;  %p9230_p9 = pneg %p9229_p12 }
 0x46e   : > { %7990 = vst [vmem:[%s12710_s11 + $0x48] sm:$0xff] %v7934_v57   ;;  %v7929_v30 = vpack.c.bf16 %v7108_v50, %v7107_v35  ;;  %v6992_v31 = vadd.f32 %v8780_v39, %v12696_v36  ;;  %v7079_v42 = vadd.f32 %v7047_v37, %v6981_v20  ;;  %v7113_v56 = vmax.f32 %v7081_v25, 0.0 }
 0x46f   : > { %v6983_v53 = vpop.f32.mrf.mxu0  ;;  %p9237_p10 = pnand %p9236_p2, %p9230_p9 }
 0x470   : > { %7989 = vst [vmem:[%s12710_s11 + $0x40] sm:$0xff] %v7929_v30   ;;  %v7082_v59 = vadd.f32 %v7050_v17, %v6992_v31  ;;  %v6984_v9 = vadd.f32 %v12696_v36, %v6983_v53  ;;  %v7111_v32 = vmax.f32 %v7079_v42, 0.0 }
 0x471   : > { %v8783_v51 = vpop.f32.mrf.mxu0 }
 0x472   : > { %v7114_v18 = vmax.f32 %v7082_v59, 0.0  ;;  %v7080_v33 = vadd.f32 %v7048_v11, %v6984_v9  ;;  %v7005_v15 = vadd.f32 %v8783_v51, %v12696_v36 }
 0x473   : > { %v6996_v16 = vpop.f32.mrf.mxu0 }
 0x474   : > { %v7944_v60 = vpack.c.bf16 %v7114_v18, %v7113_v56  ;;  %v7112_v6 = vmax.f32 %v7080_v33, 0.0  ;;  %v6997_v21 = vadd.f32 %v12696_v36, %v6996_v16  ;;  %v7085_v34 = vadd.f32 %v7053_v38, %v7005_v15 }
 0x475   : > { %v8784_v12 = vpop.f32.mrf.mxu0 }
 0x476   : > { %7992 = vst [vmem:[%s12710_s11 + $0x58] sm:$0xff] %v7944_v60   ;;  %v7939_v54 = vpack.c.bf16 %v7112_v6, %v7111_v32  ;;  %v7008_v3 = vadd.f32 %v8784_v12, %v12696_v36  ;;  %v7083_v26 = vadd.f32 %v7051_v23, %v6997_v21  ;;  %v7117_v44 = vmax.f32 %v7085_v34, 0.0 }
 0x477   : > { %v6999_v43 = vpop.f32.mrf.mxu0 }
 0x478   : > { %7991 = vst [vmem:[%s12710_s11 + $0x50] sm:$0xff] %v7939_v54   ;;  %v7086_v52 = vadd.f32 %v7054_v62, %v7008_v3  ;;  %v7000_v40 = vadd.f32 %v12696_v36, %v6999_v43  ;;  %v7115_v47 = vmax.f32 %v7083_v26, 0.0 }
 0x479   : > { %v8787_v4 = vpop.f32.mrf.mxu0 }
 0x47a   : > { %v7118_v5 = vmax.f32 %v7086_v52, 0.0  ;;  %v7084_v13 = vadd.f32 %v7052_v41, %v7000_v40  ;;  %v7021_v0 = vadd.f32 %v8787_v4, %v12696_v36 }
 0x47b   : > { %v7012_v7 = vpop.f32.mrf.mxu0 }
 0x47c   : > { %v7954_v8 = vpack.c.bf16 %v7118_v5, %v7117_v44  ;;  %v7116_v29 = vmax.f32 %v7084_v13, 0.0  ;;  %v7013_v10 = vadd.f32 %v12696_v36, %v7012_v7  ;;  %v7089_v24 = vadd.f32 %v7057_v28, %v7021_v0 }
 0x47d   : > { %v8788_v61 = vpop.f32.mrf.mxu0 }
 0x47e   : > { %7994 = vst [vmem:[%s12710_s11 + $0x68] sm:$0xff] %v7954_v8   ;;  %v7949_v14 = vpack.c.bf16 %v7116_v29, %v7115_v47  ;;  %v7024_v1 = vadd.f32 %v8788_v61, %v12696_v36  ;;  %v7087_v63 = vadd.f32 %v7055_v58, %v7013_v10  ;;  %v7121_v37 = vmax.f32 %v7089_v24, 0.0 }
 0x47f   : > { %v7015_v48 = vpop.f32.mrf.mxu0 }
 0x480   : > { %7993 = vst [vmem:[%s12710_s11 + $0x60] sm:$0xff] %v7949_v14   ;;  %v7090_v45 = vadd.f32 %v7058_v27, %v7024_v1  ;;  %v7016_v2 = vadd.f32 %v12696_v36, %v7015_v48  ;;  %v7119_v57 = vmax.f32 %v7087_v63, 0.0 }
 0x482   : > { %v7122_v17 = vmax.f32 %v7090_v45, 0.0  ;;  %v7088_v35 = vadd.f32 %v7056_v46, %v7016_v2 }
 0x484   : > { %v7964_v50 = vpack.c.bf16 %v7122_v17, %v7121_v37  ;;  %v7120_v20 = vmax.f32 %v7088_v35, 0.0 }
 0x486   : > { %7996 = vst [vmem:[%s12710_s11 + $0x78] sm:$0xff] %v7964_v50   ;;  %v7959_v36 = vpack.c.bf16 %v7120_v20, %v7119_v57 }
 0x488   : > { %7995 = vst [vmem:[%s12710_s11 + $0x70] sm:$0xff] %v7959_v36  }
 0x489   : > { %9240 = shalt.err (!%p9237_p10)
}
 0x48a   : > { %s9241_s10 = scalar_lea.hbm %s12769_s1, 2048  ;;  %s9245_s29 = scalar_lea.hbm %s12823_s7, 4096 }
 0x48b   : > { %p9242_p6 = scmp.ne.s32.totalorder %s12769_s1, %s9241_s10  ;;  %p9246_p3 = scmp.lt.s32.totalorder %s12769_s1, %s12823_s7 }
 0x48c   : > { %p9247_p11 = scmp.lt.s32.totalorder %s9245_s29, %s9241_s10 }
 0x48d   : > { %p9243_p4 = pnand %p9242_p6, %p13879_p1 }
 0x48e   : > { %p9248_p5 = por %p9247_p11, %p9246_p3 }
 0x48f   : > { %p9244_p8 = pneg %p9243_p4 }
 0x491   : > { %p9249_p7 = pnand %p9248_p5, %p9244_p8 }
 0x493   : > { %9252 = shalt.err (!%p9249_p7)
}
 0x494   : > { %s9310_s18 = smov 64   ;;  %s9311_s23 = smov 4  }
 0x495   : > { %8819 = dma.vmem_to_hbm [thread:$0]  (%p13879_p1), %s12771_s22, 2048, %s12769_s1, %s7284_s16, %s9310_s18, %s9310_s18, %s9311_s23  }
 0x496 PF: > { %s7312_s12 = sand.u32 1, %s9287_s24   ;;  %p13880_p12 = scmp.ne.s32.totalorder %s13069_s8, 0 }
 0x497   : > { %p13881_p9 = scmp.ge.s32.totalorder %s9299_s27, 2  ;;  %s7313_s28 = scalar_lea.sflag [#allocation5], %s7312_s12 }
 0x499   : > { %p8836_p13 = pnand %p13881_p9, %p13880_p12 }
 0x49b   : > { %p8837_p0 = pneg %p8836_p13 }
 0x49d   : > { %9282 = dma.done.wait (%p8837_p0), %s7313_s28, 2048  }
 0x49e   : > { %9284 = vsyncadd (%p8837_p0), %s7313_s28, 4294965248  ;;  %p22_p2 = scmp.ge.s32.totalorder %s9441_s14, 4   ;;  %s13882_s24 = smov %s9291_s25 }
 0x49f   : > { %s13883_s25 = smov %s9295_s26  ;;  %s13884_s26 = smov %s9451_s17 }
 0x4a0   : > { %s13885_s27 = smov %s9441_s14  ;;  %24 = sbr.rel (!%p22_p2) target bundleno = 9 (0x9), region = 113 }
 0x4a5   :  { %7318 = vsyncpa [#allocation4], 1 }
 0x4a6   :  { %7320 = vsyncpa [#allocation4 + $0x1], 1 }
 0x4a7   :  { %7321 = vsyncpa [#allocation7], 1 }
 0x4a8   :  { %7322 = vsyncpa [#allocation10], 1 }
 0x4a9   :  { %7323 = vsyncpa [#allocation5], 1 }
 0x4aa   :  { %7325 = vsyncpa [#allocation5 + $0x1], 1 }

</bundles_post_ra>
